<compile_context>
chip_gen: v6e
topology: v6e:2x2x1
jax: 0.10.0
libtpu: 0.0.40
codegen_flags: <defaults>
</compile_context>

<pallas_src>
import functools

import jax
import jax.numpy as jnp
from jax.experimental import pallas as pl
from jax.experimental.pallas import tpu as pltpu


# ----------------------------------------------------------------------------
# Plain-JAX glue: coordinate normalization + bilinear grid_sample
# (border padding, align_corners=True) — gather-heavy, kept outside the kernel.
# Produces (B, T, C) directly so no transpose/concat round-trip is needed.
# ----------------------------------------------------------------------------
def normalize_coordinate(p, padding=0.1, plane='xz'):
    if plane == 'xz':
        xy = p[:, :, jnp.array([0, 2])]
    elif plane == 'xy':
        xy = p[:, :, jnp.array([0, 1])]
    else:  # 'yz'
        xy = p[:, :, jnp.array([1, 2])]
    xy_new = xy / (1.0 + padding + 10e-6) + 0.5
    # equivalent to the conditional out-of-range clamping in the torch code
    xy_new = jnp.clip(xy_new, 0.0, 1.0 - 10e-6)
    return xy_new


def _grid_sample_bilinear_border_btc(feat, uv):
    """feat: (B, C, H, W); uv: (B, T, 2) in [-1, 1], uv[...,0]->W, uv[...,1]->H.
    Matches F.grid_sample(mode='bilinear', padding_mode='border',
    align_corners=True). Returns (B, T, C) (lane-dense for the kernel)."""
    B, C, H, W = feat.shape
    x = (uv[..., 0] + 1.0) * 0.5 * (W - 1)
    y = (uv[..., 1] + 1.0) * 0.5 * (H - 1)
    # border padding clips the source coordinate itself
    x = jnp.clip(x, 0.0, W - 1.0)
    y = jnp.clip(y, 0.0, H - 1.0)
    x0 = jnp.floor(x)
    y0 = jnp.floor(y)
    wx1 = x - x0
    wy1 = y - y0
    wx0 = 1.0 - wx1
    wy0 = 1.0 - wy1
    x0i = jnp.clip(x0, 0, W - 1).astype(jnp.int32)
    x1i = jnp.clip(x0 + 1, 0, W - 1).astype(jnp.int32)
    y0i = jnp.clip(y0, 0, H - 1).astype(jnp.int32)
    y1i = jnp.clip(y0 + 1, 0, H - 1).astype(jnp.int32)

    # channel-last feature map so the gather output is already (T, C)
    feat_hwc = jnp.transpose(feat, (0, 2, 3, 1))  # (B, H, W, C) — tiny

    def one_batch(f, y0i, x0i, y1i, x1i, wx0, wx1, wy0, wy1):
        v00 = f[y0i, x0i]  # (T, C)
        v01 = f[y0i, x1i]
        v10 = f[y1i, x0i]
        v11 = f[y1i, x1i]
        return (v00 * (wy0 * wx0)[:, None] + v01 * (wy0 * wx1)[:, None]
                + v10 * (wy1 * wx0)[:, None] + v11 * (wy1 * wx1)[:, None])

    return jax.vmap(one_batch)(feat_hwc, y0i, x0i, y1i, x1i, wx0, wx1, wy0, wy1)


def sample_plane_feature(p, c_feat, plane, padding=0.1):
    xy = normalize_coordinate(p, padding=padding, plane=plane)  # (B, T, 2)
    vgrid = 2.0 * xy - 1.0
    return _grid_sample_bilinear_border_btc(c_feat, vgrid)      # (B, T, C)


# ----------------------------------------------------------------------------
# Pallas kernel: the decoder MLP hot path.
# ----------------------------------------------------------------------------
def _decoder_kernel(n_blocks, hidden,
                    p_ref, c_ref, zc_ref,
                    wp_ref, bp_ref, wcall_ref,
                    w0_ref, b0_ref, w1_ref, b1_ref,
                    wout_ref, bout_ref,
                    out_ref):
    p = p_ref[0]               # (tile_t, dim) f32
    wp = wp_ref[...]           # (dim, hidden) f32
    dim = wp.shape[0]

    # fc_p on the VPU: a K=3 matmul would waste an entire MXU push.
    net = bp_ref[...] + p[:, 0:1] * wp[0:1, :]
    for d in range(1, dim):
        net = net + p[:, d:d + 1] * wp[d:d + 1, :]

    # All n_blocks fc_c projections of the 32-ch plane features fused into a
    # single bf16 MXU matmul (f32 accumulation).  The per-batch z contribution
    # (z @ wc_z[i] + bc[i]) is precomputed outside and simply added per block.
    cw = jnp.dot(c_ref[0], wcall_ref[...],
                 preferred_element_type=jnp.float32)   # (tile_t, n_blocks*H)
    zc = zc_ref[0]                                      # (n_blocks, hidden) f32

    for i in range(n_blocks):                           # static unrolled loop
        net = net + cw[:, i * hidden:(i + 1) * hidden] + zc[i:i + 1, :]
        # ResnetBlockFC: x + fc_1(relu(fc_0(relu(x)))) — bf16 MXU, f32 accum
        h = jnp.maximum(net, 0.0)
        h = jnp.dot(h.astype(w0_ref.dtype), w0_ref[i],
                    preferred_element_type=jnp.float32) + b0_ref[i:i + 1, :]
        h = jnp.maximum(h, 0.0)
        dx = jnp.dot(h.astype(w1_ref.dtype), w1_ref[i],
                     preferred_element_type=jnp.float32) + b1_ref[i:i + 1, :]
        net = net + dx

    # fc_out (hidden -> 1) as a VPU multiply + lane reduction: a 1-column MXU
    # matmul would use 1/256 of the MXU columns.
    out = jnp.sum(jnp.maximum(net, 0.0) * wout_ref[...], axis=-1, keepdims=True)
    out_ref[0] = out + bout_ref[...]


def decoder_mlp_pallas(p, c, z_contrib, wp, bp, wc_all, w0, b0, w1, b1,
                       wout_row, bout, *, tile_t=1024):
    """p: (B, T, dim) f32; c: (B, T, C) bf16; z_contrib: (B, n_blocks, H) f32.
    Returns (B, T, 1) f32."""
    B, T, dim = p.shape
    C = c.shape[-1]
    n_blocks, hidden = z_contrib.shape[1], z_contrib.shape[2]
    nH = wc_all.shape[-1]
    assert nH == n_blocks * hidden

    # Row tile: as large as possible (VMEM is plentiful after the z-split),
    # but never larger than T, and a multiple of 128 when it tiles T.
    tile_t = int(min(tile_t, T))
    if tile_t < T:
        tile_t = max(128, (tile_t // 128) * 128)
    grid = (B, pl.cdiv(T, tile_t))   # ragged T handled by Pallas tile padding

    def rowspec(feat):
        return pl.BlockSpec((1, tile_t, feat), lambda b, t: (b, t, 0))

    full = lambda shape: pl.BlockSpec(shape, lambda b, t: (0,) * len(shape))

    kernel = functools.partial(_decoder_kernel, n_blocks, hidden)

    return pl.pallas_call(
        kernel,
        out_shape=jax.ShapeDtypeStruct((B, T, 1), jnp.float32),
        grid=grid,
        in_specs=[
            rowspec(dim),                               # p rows (f32)
            rowspec(C),                                 # plane-feature rows (bf16)
            pl.BlockSpec((1, n_blocks, hidden), lambda b, t: (b, 0, 0)),  # z_contrib
            full((dim, hidden)),                        # wp (f32)
            full((1, hidden)),                          # bp (f32)
            full((C, nH)),                              # fused fc_c weights (bf16)
            full((n_blocks, hidden, hidden)),           # w0 (bf16)
            full((n_blocks, hidden)),                   # b0 (f32)
            full((n_blocks, hidden, hidden)),           # w1 (bf16)
            full((n_blocks, hidden)),                   # b1 (f32)
            full((1, hidden)),                          # wout row (f32)
            full((1, 1)),                               # bout (f32)
        ],
        out_specs=rowspec(1),
        compiler_params=pltpu.CompilerParams(
            dimension_semantics=("parallel", "parallel")),
    )(p, c, z_contrib, wp, bp, wc_all, w0, b0, w1, b1, wout_row, bout)


# ----------------------------------------------------------------------------
# Full forward (glue + kernel), matching LocalDecoderImage.forward with
# concat_feat=False, no_xyz=False, add_noise=False, leaky=False.
# ----------------------------------------------------------------------------
def local_decoder_image_forward(p, c_plane, z, params, *, n_blocks,
                                padding=0.1, tile_t=1024):
    B, T, _ = p.shape
    hidden = params['wp'].shape[1]
    assert params['wout'].shape[1] == 1  # out_dim=1 (VPU reduction path)
    # TODO(synk): 'grid' (3-D volume) feature sampling not implemented here.

    # Sum of bilinear-sampled plane features, produced directly as (B, T, c_dim).
    c = None
    for plane in ('xz', 'xy', 'yz'):
        if plane in c_plane:
            s = sample_plane_feature(p, c_plane[plane], plane, padding)
            c = s if c is None else c + s
    c_dim = c.shape[-1]

    # z handling: z[:, None, :] concatenated on the feature axis in the module.
    # TODO(synk): torch.cat in the original does not broadcast (only works for
    # T==1 as written); broadcasting z across the T query points is the
    # intended semantics.  Instead of materializing a (B, T, 256) broadcast,
    # its contribution to every fc_c[i] is precomputed here (tiny).
    wc = params['wc']                                   # (n_blocks, c_dim+256, H)
    wc_c = wc[:, :c_dim, :]
    wc_z = wc[:, c_dim:, :]
    z_contrib = (jnp.einsum('bd,ndh->bnh', z.astype(jnp.float32), wc_z)
                 + params['bc'][None])                  # (B, n_blocks, H)
    # Fuse the n_blocks fc_c weights into one (c_dim, n_blocks*H) matrix so the
    # kernel does a single MXU matmul per tile.
    wc_all = jnp.transpose(wc_c, (1, 0, 2)).reshape(c_dim, n_blocks * hidden)

    out = decoder_mlp_pallas(
        p.astype(jnp.float32),
        c.astype(jnp.bfloat16),
        z_contrib.astype(jnp.float32),
        params['wp'].astype(jnp.float32),
        params['bp'].astype(jnp.float32),
        wc_all.astype(jnp.bfloat16),
        params['w0'].astype(jnp.bfloat16),
        params['b0'].astype(jnp.float32),
        params['w1'].astype(jnp.bfloat16),
        params['b1'].astype(jnp.float32),
        jnp.transpose(params['wout']).astype(jnp.float32),   # (1, hidden)
        params['bout'].astype(jnp.float32).reshape(1, 1),
        tile_t=tile_t)
    return out[..., 0]                                  # squeeze(-1) -> (B, T)


# ----------------------------------------------------------------------------
# Pure-JAX references for verification.
# ----------------------------------------------------------------------------
def forward_reference_f32(p, c_plane, z, params, *, n_blocks, padding=0.1):
    """Module semantics, full f32, original concatenated-feature formulation."""
    B, T, _ = p.shape
    c = None
    for plane in ('xz', 'xy', 'yz'):
        if plane in c_plane:
            s = sample_plane_feature(p, c_plane[plane], plane, padding)
            c = s if c is None else c + s
    z_b = jnp.broadcast_to(z[:, None, :], (B, T, z.shape[-1]))
    c = jnp.concatenate([c, z_b], axis=-1)

    net = p.astype(jnp.float32) @ params['wp'] + params['bp']
    for i in range(n_blocks):
        net = net + c @ params['wc'][i] + params['bc'][i]
        h = jax.nn.relu(net)
        h = h @ params['w0'][i] + params['b0'][i]
        h = jax.nn.relu(h)
        net = net + h @ params['w1'][i] + params['b1'][i]
    out = jax.nn.relu(net) @ params['wout'] + params['bout']
    return out[..., 0]


def forward_reference_bf16(p, c_plane, z, params, *, n_blocks, padding=0.1):
    """Mirrors the kernel arithmetic (z-split, bf16 matmul operands, f32 accum)."""
    B, T, _ = p.shape
    c = None
    for plane in ('xz', 'xy', 'yz'):
        if plane in c_plane:
            s = sample_plane_feature(p, c_plane[plane], plane, padding)
            c = s if c is None else c + s
    c_dim = c.shape[-1]
    wc = params['wc']
    wc_c = wc[:, :c_dim, :].astype(jnp.bfloat16)
    wc_z = wc[:, c_dim:, :]
    z_contrib = jnp.einsum('bd,ndh->bnh', z, wc_z) + params['bc'][None]
    c_bf = c.astype(jnp.bfloat16)
    w0 = params['w0'].astype(jnp.bfloat16)
    w1 = params['w1'].astype(jnp.bfloat16)

    net = p.astype(jnp.float32) @ params['wp'] + params['bp']
    for i in range(n_blocks):
        cw = jnp.einsum('btc,ch->bth', c_bf, wc_c[i],
                        preferred_element_type=jnp.float32)
        net = net + cw + z_contrib[:, i:i + 1, :]
        h = jax.nn.relu(net)
        h = jnp.einsum('bth,hk->btk', h.astype(jnp.bfloat16), w0[i],
                       preferred_element_type=jnp.float32) + params['b0'][i]
        h = jax.nn.relu(h)
        dx = jnp.einsum('bth,hk->btk', h.astype(jnp.bfloat16), w1[i],
                        preferred_element_type=jnp.float32) + params['b1'][i]
        net = net + dx
    out = jnp.sum(jax.nn.relu(net) * params['wout'][:, 0], axis=-1)
    return out + params['bout'][0, 0]


# ----------------------------------------------------------------------------
# Deterministic parameter init (weights stored transposed: (in, out)).
# ----------------------------------------------------------------------------
def init_params(key, *, dim, c_total, hidden, n_blocks, out_dim):
    ks = jax.random.split(key, 12)
    s = lambda fan_in: 1.0 / jnp.sqrt(jnp.float32(fan_in))
    return {
        'wp': jax.random.normal(ks[0], (dim, hidden), jnp.float32) * s(dim),
        'bp': jax.random.normal(ks[1], (1, hidden), jnp.float32) * 0.01,
        'wc': jax.random.normal(ks[2], (n_blocks, c_total, hidden), jnp.float32) * s(c_total),
        'bc': jax.random.normal(ks[3], (n_blocks, hidden), jnp.float32) * 0.01,
        'w0': jax.random.normal(ks[4], (n_blocks, hidden, hidden), jnp.float32) * s(hidden),
        'b0': jax.random.normal(ks[5], (n_blocks, hidden), jnp.float32) * 0.01,
        'w1': jax.random.normal(ks[6], (n_blocks, hidden, hidden), jnp.float32) * s(hidden),
        'b1': jax.random.normal(ks[7], (n_blocks, hidden), jnp.float32) * 0.01,
        'wout': jax.random.normal(ks[8], (hidden, out_dim), jnp.float32) * s(hidden),
        'bout': jax.random.normal(ks[9], (1, out_dim), jnp.float32) * 0.01,
    }


if __name__ == "__main__":
    # Small config
    B, T = 2, 256            # grid = (B, T//tile_t) = (2, 1): >=2 steps (v7x 2 TCs)
    DIM = 3                  # 3-D query points
    C_DIM = 32               # latent plane-feature channels
    Z_DIM = 256              # module hard-codes `c_dim += 256`
    HIDDEN = 64
    N_BLOCKS = 3
    OUT_DIM = 1
    RES = 16                 # plane feature resolution
    PADDING = 0.1

    key = jax.random.PRNGKey(0)
    k_p, k_xz, k_xy, k_yz, k_z, k_par = jax.random.split(key, 6)

    p = jax.random.uniform(k_p, (B, T, DIM), jnp.float32, minval=-0.55, maxval=0.55)
    c_plane = {
        'xz': jax.random.normal(k_xz, (B, C_DIM, RES, RES), jnp.float32),
        'xy': jax.random.normal(k_xy, (B, C_DIM, RES, RES), jnp.float32),
        'yz': jax.random.normal(k_yz, (B, C_DIM, RES, RES), jnp.float32),
    }
    z = jax.random.normal(k_z, (B, Z_DIM), jnp.float32)

    params = init_params(k_par, dim=DIM, c_total=C_DIM + Z_DIM,
                         hidden=HIDDEN, n_blocks=N_BLOCKS, out_dim=OUT_DIM)

    fwd = jax.jit(functools.partial(local_decoder_image_forward,
                                    n_blocks=N_BLOCKS, padding=PADDING))
    out = jax.block_until_ready(fwd(p, c_plane, z, params))

    ref16 = jax.block_until_ready(
        forward_reference_bf16(p, c_plane, z, params, n_blocks=N_BLOCKS, padding=PADDING))
    ref32 = jax.block_until_ready(
        forward_reference_f32(p, c_plane, z, params, n_blocks=N_BLOCKS, padding=PADDING))

    assert out.shape == (B, T), out.shape
    # Tight check vs a reference that mirrors the kernel arithmetic exactly.
    assert jnp.allclose(out, ref16, rtol=2e-3, atol=2e-3), (
        float(jnp.max(jnp.abs(out - ref16))))
    # Loose semantic sanity check vs the full-f32 module reference
    # (bf16 matmul operands shift results at the ~1e-2 level).
    scale = float(jnp.max(jnp.abs(ref32))) + 1e-6
    assert float(jnp.max(jnp.abs(out - ref32))) / scale < 0.15, (
        float(jnp.max(jnp.abs(out - ref32))), scale)
    print("KERNEL_OK")
</pallas_src>

<mosaic_0001>
module attributes {stable_mosaic.version = 11 : i64} {
  func.func @_decoder_kernel(%arg0: i32, %arg1: i32, %arg2: memref<1x256x3xf32, #tpu.memory_space<vmem>>, %arg3: memref<1x256x32xbf16, #tpu.memory_space<vmem>>, %arg4: memref<1x3x64xf32, #tpu.memory_space<vmem>>, %arg5: memref<3x64xf32, #tpu.memory_space<vmem>>, %arg6: memref<1x64xf32, #tpu.memory_space<vmem>>, %arg7: memref<32x192xbf16, #tpu.memory_space<vmem>>, %arg8: memref<3x64x64xbf16, #tpu.memory_space<vmem>>, %arg9: memref<3x64xf32, #tpu.memory_space<vmem>>, %arg10: memref<3x64x64xbf16, #tpu.memory_space<vmem>>, %arg11: memref<3x64xf32, #tpu.memory_space<vmem>>, %arg12: memref<1x64xf32, #tpu.memory_space<vmem>>, %arg13: memref<1x1xf32, #tpu.memory_space<vmem>>, %arg14: memref<1x256x1xf32, #tpu.memory_space<vmem>>) attributes {dimension_semantics = [#tpu.dimension_semantics<parallel>, #tpu.dimension_semantics<parallel>], iteration_bounds = array<i64: 2, 1>, scalar_prefetch = 0 : i64, scratch_operands = 0 : i64, tpu.core_type = #tpu.core_type<tc>, window_params = [{transform_indices = @transform_0, window_bounds = array<i64: 1, 256, 3>}, {transform_indices = @transform_1, window_bounds = array<i64: 1, 256, 32>}, {transform_indices = @transform_2, window_bounds = array<i64: 1, 3, 64>}, {pipeline_mode = #tpu.pipeline_mode<synchronous>, transform_indices = @transform_3, window_bounds = array<i64: 3, 64>}, {pipeline_mode = #tpu.pipeline_mode<synchronous>, transform_indices = @transform_4, window_bounds = array<i64: 1, 64>}, {pipeline_mode = #tpu.pipeline_mode<synchronous>, transform_indices = @transform_5, window_bounds = array<i64: 32, 192>}, {pipeline_mode = #tpu.pipeline_mode<synchronous>, transform_indices = @transform_6, window_bounds = array<i64: 3, 64, 64>}, {pipeline_mode = #tpu.pipeline_mode<synchronous>, transform_indices = @transform_7, window_bounds = array<i64: 3, 64>}, {pipeline_mode = #tpu.pipeline_mode<synchronous>, transform_indices = @transform_8, window_bounds = array<i64: 3, 64, 64>}, {pipeline_mode = #tpu.pipeline_mode<synchronous>, transform_indices = @transform_9, window_bounds = array<i64: 3, 64>}, {pipeline_mode = #tpu.pipeline_mode<synchronous>, transform_indices = @transform_10, window_bounds = array<i64: 1, 64>}, {pipeline_mode = #tpu.pipeline_mode<synchronous>, transform_indices = @transform_11, window_bounds = array<i64: 1, 1>}, {transform_indices = @transform_12, window_bounds = array<i64: 1, 256, 1>}]} {
    %c0 = arith.constant 0 : index
    %c0_0 = arith.constant 0 : index
    %c0_1 = arith.constant 0 : index
    %0 = vector.load %arg2[%c0, %c0_0, %c0_1] : memref<1x256x3xf32, #tpu.memory_space<vmem>>, vector<1x256x3xf32>
    %1 = vector.shape_cast %0 : vector<1x256x3xf32> to vector<256x3xf32>
    %c0_2 = arith.constant 0 : index
    %c0_3 = arith.constant 0 : index
    %2 = vector.load %arg5[%c0_2, %c0_3] : memref<3x64xf32, #tpu.memory_space<vmem>>, vector<3x64xf32>
    %c0_4 = arith.constant 0 : index
    %c0_5 = arith.constant 0 : index
    %3 = vector.load %arg6[%c0_4, %c0_5] : memref<1x64xf32, #tpu.memory_space<vmem>>, vector<1x64xf32>
    %4 = vector.extract_strided_slice %1 {offsets = [0, 0], sizes = [256, 1], strides = [1, 1]} : vector<256x3xf32> to vector<256x1xf32>
    %5 = vector.extract_strided_slice %2 {offsets = [0, 0], sizes = [1, 64], strides = [1, 1]} : vector<3x64xf32> to vector<1x64xf32>
    %6 = vector.broadcast %4 : vector<256x1xf32> to vector<256x64xf32>
    %7 = vector.broadcast %5 : vector<1x64xf32> to vector<256x64xf32>
    %8 = arith.mulf %6, %7 : vector<256x64xf32>
    %9 = vector.broadcast %3 : vector<1x64xf32> to vector<256x64xf32>
    %10 = arith.addf %9, %8 : vector<256x64xf32>
    %11 = vector.extract_strided_slice %1 {offsets = [0, 1], sizes = [256, 1], strides = [1, 1]} : vector<256x3xf32> to vector<256x1xf32>
    %12 = vector.extract_strided_slice %2 {offsets = [1, 0], sizes = [1, 64], strides = [1, 1]} : vector<3x64xf32> to vector<1x64xf32>
    %13 = vector.broadcast %11 : vector<256x1xf32> to vector<256x64xf32>
    %14 = vector.broadcast %12 : vector<1x64xf32> to vector<256x64xf32>
    %15 = arith.mulf %13, %14 : vector<256x64xf32>
    %16 = arith.addf %10, %15 : vector<256x64xf32>
    %17 = vector.extract_strided_slice %1 {offsets = [0, 2], sizes = [256, 1], strides = [1, 1]} : vector<256x3xf32> to vector<256x1xf32>
    %18 = vector.extract_strided_slice %2 {offsets = [2, 0], sizes = [1, 64], strides = [1, 1]} : vector<3x64xf32> to vector<1x64xf32>
    %19 = vector.broadcast %17 : vector<256x1xf32> to vector<256x64xf32>
    %20 = vector.broadcast %18 : vector<1x64xf32> to vector<256x64xf32>
    %21 = arith.mulf %19, %20 : vector<256x64xf32>
    %22 = arith.addf %16, %21 : vector<256x64xf32>
    %c0_6 = arith.constant 0 : index
    %c0_7 = arith.constant 0 : index
    %c0_8 = arith.constant 0 : index
    %23 = vector.load %arg3[%c0_6, %c0_7, %c0_8] : memref<1x256x32xbf16, #tpu.memory_space<vmem>>, vector<1x256x32xbf16>
    %24 = vector.shape_cast %23 : vector<1x256x32xbf16> to vector<256x32xbf16>
    %c0_9 = arith.constant 0 : index
    %c0_10 = arith.constant 0 : index
    %25 = vector.load %arg7[%c0_9, %c0_10] : memref<32x192xbf16, #tpu.memory_space<vmem>>, vector<32x192xbf16>
    %cst = arith.constant dense<0.000000e+00> : vector<256x192xf32>
    %26 = tpu.matmul %24, %25, %cst {dimension_numbers = #tpu.dot_dimension_numbers<[1], [0], [0], [1], [0, 0, 1, 1], [], []>} : vector<256x32xbf16>, vector<32x192xbf16>, vector<256x192xf32> -> vector<256x192xf32>
    %c0_11 = arith.constant 0 : index
    %c0_12 = arith.constant 0 : index
    %c0_13 = arith.constant 0 : index
    %27 = vector.load %arg4[%c0_11, %c0_12, %c0_13] : memref<1x3x64xf32, #tpu.memory_space<vmem>>, vector<1x3x64xf32>
    %28 = vector.shape_cast %27 : vector<1x3x64xf32> to vector<3x64xf32>
    %29 = vector.extract_strided_slice %26 {offsets = [0, 0], sizes = [256, 64], strides = [1, 1]} : vector<256x192xf32> to vector<256x64xf32>
    %30 = arith.addf %22, %29 : vector<256x64xf32>
    %31 = vector.extract_strided_slice %28 {offsets = [0, 0], sizes = [1, 64], strides = [1, 1]} : vector<3x64xf32> to vector<1x64xf32>
    %32 = vector.broadcast %31 : vector<1x64xf32> to vector<256x64xf32>
    %33 = arith.addf %30, %32 : vector<256x64xf32>
    %cst_14 = arith.constant 0.000000e+00 : f32
    %34 = vector.broadcast %cst_14 : f32 to vector<256x64xf32>
    %35 = arith.maximumf %33, %34 : vector<256x64xf32>
    %36 = arith.truncf %35 : vector<256x64xf32> to vector<256x64xbf16>
    %c0_15 = arith.constant 0 : index
    %c0_16 = arith.constant 0 : index
    %c0_17 = arith.constant 0 : index
    %37 = vector.load %arg8[%c0_15, %c0_16, %c0_17] : memref<3x64x64xbf16, #tpu.memory_space<vmem>>, vector<1x64x64xbf16>
    %38 = vector.shape_cast %37 : vector<1x64x64xbf16> to vector<64x64xbf16>
    %cst_18 = arith.constant dense<0.000000e+00> : vector<256x64xf32>
    %39 = tpu.matmul %36, %38, %cst_18 {dimension_numbers = #tpu.dot_dimension_numbers<[1], [0], [0], [1], [0, 0, 1, 1], [], []>} : vector<256x64xbf16>, vector<64x64xbf16>, vector<256x64xf32> -> vector<256x64xf32>
    %c0_19 = arith.constant 0 : index
    %c0_20 = arith.constant 0 : index
    %40 = vector.load %arg9[%c0_19, %c0_20] : memref<3x64xf32, #tpu.memory_space<vmem>>, vector<1x64xf32>
    %41 = vector.broadcast %40 : vector<1x64xf32> to vector<256x64xf32>
    %42 = arith.addf %39, %41 : vector<256x64xf32>
    %cst_21 = arith.constant 0.000000e+00 : f32
    %43 = vector.broadcast %cst_21 : f32 to vector<256x64xf32>
    %44 = arith.maximumf %42, %43 : vector<256x64xf32>
    %45 = arith.truncf %44 : vector<256x64xf32> to vector<256x64xbf16>
    %c0_22 = arith.constant 0 : index
    %c0_23 = arith.constant 0 : index
    %c0_24 = arith.constant 0 : index
    %46 = vector.load %arg10[%c0_22, %c0_23, %c0_24] : memref<3x64x64xbf16, #tpu.memory_space<vmem>>, vector<1x64x64xbf16>
    %47 = vector.shape_cast %46 : vector<1x64x64xbf16> to vector<64x64xbf16>
    %cst_25 = arith.constant dense<0.000000e+00> : vector<256x64xf32>
    %48 = tpu.matmul %45, %47, %cst_25 {dimension_numbers = #tpu.dot_dimension_numbers<[1], [0], [0], [1], [0, 0, 1, 1], [], []>} : vector<256x64xbf16>, vector<64x64xbf16>, vector<256x64xf32> -> vector<256x64xf32>
    %c0_26 = arith.constant 0 : index
    %c0_27 = arith.constant 0 : index
    %49 = vector.load %arg11[%c0_26, %c0_27] : memref<3x64xf32, #tpu.memory_space<vmem>>, vector<1x64xf32>
    %50 = vector.broadcast %49 : vector<1x64xf32> to vector<256x64xf32>
    %51 = arith.addf %48, %50 : vector<256x64xf32>
    %52 = arith.addf %33, %51 : vector<256x64xf32>
    %53 = vector.extract_strided_slice %26 {offsets = [0, 64], sizes = [256, 64], strides = [1, 1]} : vector<256x192xf32> to vector<256x64xf32>
    %54 = arith.addf %52, %53 : vector<256x64xf32>
    %55 = vector.extract_strided_slice %28 {offsets = [1, 0], sizes = [1, 64], strides = [1, 1]} : vector<3x64xf32> to vector<1x64xf32>
    %56 = vector.broadcast %55 : vector<1x64xf32> to vector<256x64xf32>
    %57 = arith.addf %54, %56 : vector<256x64xf32>
    %cst_28 = arith.constant 0.000000e+00 : f32
    %58 = vector.broadcast %cst_28 : f32 to vector<256x64xf32>
    %59 = arith.maximumf %57, %58 : vector<256x64xf32>
    %60 = arith.truncf %59 : vector<256x64xf32> to vector<256x64xbf16>
    %c1 = arith.constant 1 : index
    %c0_29 = arith.constant 0 : index
    %c0_30 = arith.constant 0 : index
    %61 = vector.load %arg8[%c1, %c0_29, %c0_30] : memref<3x64x64xbf16, #tpu.memory_space<vmem>>, vector<1x64x64xbf16>
    %62 = vector.shape_cast %61 : vector<1x64x64xbf16> to vector<64x64xbf16>
    %cst_31 = arith.constant dense<0.000000e+00> : vector<256x64xf32>
    %63 = tpu.matmul %60, %62, %cst_31 {dimension_numbers = #tpu.dot_dimension_numbers<[1], [0], [0], [1], [0, 0, 1, 1], [], []>} : vector<256x64xbf16>, vector<64x64xbf16>, vector<256x64xf32> -> vector<256x64xf32>
    %c1_32 = arith.constant 1 : index
    %c0_33 = arith.constant 0 : index
    %64 = vector.load %arg9[%c1_32, %c0_33] : memref<3x64xf32, #tpu.memory_space<vmem>>, vector<1x64xf32>
    %65 = vector.broadcast %64 : vector<1x64xf32> to vector<256x64xf32>
    %66 = arith.addf %63, %65 : vector<256x64xf32>
    %cst_34 = arith.constant 0.000000e+00 : f32
    %67 = vector.broadcast %cst_34 : f32 to vector<256x64xf32>
    %68 = arith.maximumf %66, %67 : vector<256x64xf32>
    %69 = arith.truncf %68 : vector<256x64xf32> to vector<256x64xbf16>
    %c1_35 = arith.constant 1 : index
    %c0_36 = arith.constant 0 : index
    %c0_37 = arith.constant 0 : index
    %70 = vector.load %arg10[%c1_35, %c0_36, %c0_37] : memref<3x64x64xbf16, #tpu.memory_space<vmem>>, vector<1x64x64xbf16>
    %71 = vector.shape_cast %70 : vector<1x64x64xbf16> to vector<64x64xbf16>
    %cst_38 = arith.constant dense<0.000000e+00> : vector<256x64xf32>
    %72 = tpu.matmul %69, %71, %cst_38 {dimension_numbers = #tpu.dot_dimension_numbers<[1], [0], [0], [1], [0, 0, 1, 1], [], []>} : vector<256x64xbf16>, vector<64x64xbf16>, vector<256x64xf32> -> vector<256x64xf32>
    %c1_39 = arith.constant 1 : index
    %c0_40 = arith.constant 0 : index
    %73 = vector.load %arg11[%c1_39, %c0_40] : memref<3x64xf32, #tpu.memory_space<vmem>>, vector<1x64xf32>
    %74 = vector.broadcast %73 : vector<1x64xf32> to vector<256x64xf32>
    %75 = arith.addf %72, %74 : vector<256x64xf32>
    %76 = arith.addf %57, %75 : vector<256x64xf32>
    %77 = vector.extract_strided_slice %26 {offsets = [0, 128], sizes = [256, 64], strides = [1, 1]} : vector<256x192xf32> to vector<256x64xf32>
    %78 = arith.addf %76, %77 : vector<256x64xf32>
    %79 = vector.extract_strided_slice %28 {offsets = [2, 0], sizes = [1, 64], strides = [1, 1]} : vector<3x64xf32> to vector<1x64xf32>
    %80 = vector.broadcast %79 : vector<1x64xf32> to vector<256x64xf32>
    %81 = arith.addf %78, %80 : vector<256x64xf32>
    %cst_41 = arith.constant 0.000000e+00 : f32
    %82 = vector.broadcast %cst_41 : f32 to vector<256x64xf32>
    %83 = arith.maximumf %81, %82 : vector<256x64xf32>
    %84 = arith.truncf %83 : vector<256x64xf32> to vector<256x64xbf16>
    %c2 = arith.constant 2 : index
    %c0_42 = arith.constant 0 : index
    %c0_43 = arith.constant 0 : index
    %85 = vector.load %arg8[%c2, %c0_42, %c0_43] : memref<3x64x64xbf16, #tpu.memory_space<vmem>>, vector<1x64x64xbf16>
    %86 = vector.shape_cast %85 : vector<1x64x64xbf16> to vector<64x64xbf16>
    %cst_44 = arith.constant dense<0.000000e+00> : vector<256x64xf32>
    %87 = tpu.matmul %84, %86, %cst_44 {dimension_numbers = #tpu.dot_dimension_numbers<[1], [0], [0], [1], [0, 0, 1, 1], [], []>} : vector<256x64xbf16>, vector<64x64xbf16>, vector<256x64xf32> -> vector<256x64xf32>
    %c2_45 = arith.constant 2 : index
    %c0_46 = arith.constant 0 : index
    %88 = vector.load %arg9[%c2_45, %c0_46] : memref<3x64xf32, #tpu.memory_space<vmem>>, vector<1x64xf32>
    %89 = vector.broadcast %88 : vector<1x64xf32> to vector<256x64xf32>
    %90 = arith.addf %87, %89 : vector<256x64xf32>
    %cst_47 = arith.constant 0.000000e+00 : f32
    %91 = vector.broadcast %cst_47 : f32 to vector<256x64xf32>
    %92 = arith.maximumf %90, %91 : vector<256x64xf32>
    %93 = arith.truncf %92 : vector<256x64xf32> to vector<256x64xbf16>
    %c2_48 = arith.constant 2 : index
    %c0_49 = arith.constant 0 : index
    %c0_50 = arith.constant 0 : index
    %94 = vector.load %arg10[%c2_48, %c0_49, %c0_50] : memref<3x64x64xbf16, #tpu.memory_space<vmem>>, vector<1x64x64xbf16>
    %95 = vector.shape_cast %94 : vector<1x64x64xbf16> to vector<64x64xbf16>
    %cst_51 = arith.constant dense<0.000000e+00> : vector<256x64xf32>
    %96 = tpu.matmul %93, %95, %cst_51 {dimension_numbers = #tpu.dot_dimension_numbers<[1], [0], [0], [1], [0, 0, 1, 1], [], []>} : vector<256x64xbf16>, vector<64x64xbf16>, vector<256x64xf32> -> vector<256x64xf32>
    %c2_52 = arith.constant 2 : index
    %c0_53 = arith.constant 0 : index
    %97 = vector.load %arg11[%c2_52, %c0_53] : memref<3x64xf32, #tpu.memory_space<vmem>>, vector<1x64xf32>
    %98 = vector.broadcast %97 : vector<1x64xf32> to vector<256x64xf32>
    %99 = arith.addf %96, %98 : vector<256x64xf32>
    %100 = arith.addf %81, %99 : vector<256x64xf32>
    %cst_54 = arith.constant 0.000000e+00 : f32
    %101 = vector.broadcast %cst_54 : f32 to vector<256x64xf32>
    %102 = arith.maximumf %100, %101 : vector<256x64xf32>
    %c0_55 = arith.constant 0 : index
    %c0_56 = arith.constant 0 : index
    %103 = vector.load %arg12[%c0_55, %c0_56] : memref<1x64xf32, #tpu.memory_space<vmem>>, vector<1x64xf32>
    %104 = vector.broadcast %103 : vector<1x64xf32> to vector<256x64xf32>
    %105 = arith.mulf %102, %104 : vector<256x64xf32>
    %cst_57 = arith.constant dense<0.000000e+00> : vector<256xf32>
    %106 = vector.multi_reduction <add>, %105, %cst_57 [1] : vector<256x64xf32> to vector<256xf32>
    %107 = vector.shape_cast %106 : vector<256xf32> to vector<256x1xf32>
    %c0_58 = arith.constant 0 : index
    %c0_59 = arith.constant 0 : index
    %108 = vector.load %arg13[%c0_58, %c0_59] : memref<1x1xf32, #tpu.memory_space<vmem>>, vector<1x1xf32>
    %109 = vector.broadcast %108 : vector<1x1xf32> to vector<256x1xf32>
    %110 = arith.addf %107, %109 : vector<256x1xf32>
    %c0_60 = arith.constant 0 : index
    %c0_61 = arith.constant 0 : index
    %c0_62 = arith.constant 0 : index
    %111 = vector.load %arg14[%c0_60, %c0_61, %c0_62] : memref<1x256x1xf32, #tpu.memory_space<vmem>>, vector<1x256x1xf32>
    %112 = vector.shape_cast %111 : vector<1x256x1xf32> to vector<256x1xf32>
    %113 = vector.shape_cast %110 : vector<256x1xf32> to vector<1x256x1xf32>
    tpu.vector_store %arg14[%c0_60, %c0_61, %c0_62], %113 {strides = array<i32>} : memref<1x256x1xf32, #tpu.memory_space<vmem>>, vector<1x256x1xf32>,
    return
  }
  func.func @transform_0(%arg0: i32, %arg1: i32) -> (i32, i32, i32) {
    %c0_i32 = arith.constant 0 : i32
    %c0_i32_0 = arith.constant 0 : i32
    return %arg0, %arg1, %c0_i32 : i32, i32, i32
  }
  func.func @transform_1(%arg0: i32, %arg1: i32) -> (i32, i32, i32) {
    %c0_i32 = arith.constant 0 : i32
    %c0_i32_0 = arith.constant 0 : i32
    return %arg0, %arg1, %c0_i32 : i32, i32, i32
  }
  func.func @transform_2(%arg0: i32, %arg1: i32) -> (i32, i32, i32) {
    %c0_i32 = arith.constant 0 : i32
    %c0_i32_0 = arith.constant 0 : i32
    %c0_i32_1 = arith.constant 0 : i32
    return %arg0, %c0_i32, %c0_i32_0 : i32, i32, i32
  }
  func.func @transform_3(%arg0: i32, %arg1: i32) -> (i32, i32) {
    %c0_i32 = arith.constant 0 : i32
    %c0_i32_0 = arith.constant 0 : i32
    %c0_i32_1 = arith.constant 0 : i32
    return %c0_i32, %c0_i32_0 : i32, i32
  }
  func.func @transform_4(%arg0: i32, %arg1: i32) -> (i32, i32) {
    %c0_i32 = arith.constant 0 : i32
    %c0_i32_0 = arith.constant 0 : i32
    %c0_i32_1 = arith.constant 0 : i32
    return %c0_i32, %c0_i32_0 : i32, i32
  }
  func.func @transform_5(%arg0: i32, %arg1: i32) -> (i32, i32) {
    %c0_i32 = arith.constant 0 : i32
    %c0_i32_0 = arith.constant 0 : i32
    %c0_i32_1 = arith.constant 0 : i32
    return %c0_i32, %c0_i32_0 : i32, i32
  }
  func.func @transform_6(%arg0: i32, %arg1: i32) -> (i32, i32, i32) {
    %c0_i32 = arith.constant 0 : i32
    %c0_i32_0 = arith.constant 0 : i32
    %c0_i32_1 = arith.constant 0 : i32
    %c0_i32_2 = arith.constant 0 : i32
    return %c0_i32, %c0_i32_0, %c0_i32_1 : i32, i32, i32
  }
  func.func @transform_7(%arg0: i32, %arg1: i32) -> (i32, i32) {
    %c0_i32 = arith.constant 0 : i32
    %c0_i32_0 = arith.constant 0 : i32
    %c0_i32_1 = arith.constant 0 : i32
    return %c0_i32, %c0_i32_0 : i32, i32
  }
  func.func @transform_8(%arg0: i32, %arg1: i32) -> (i32, i32, i32) {
    %c0_i32 = arith.constant 0 : i32
    %c0_i32_0 = arith.constant 0 : i32
    %c0_i32_1 = arith.constant 0 : i32
    %c0_i32_2 = arith.constant 0 : i32
    return %c0_i32, %c0_i32_0, %c0_i32_1 : i32, i32, i32
  }
  func.func @transform_9(%arg0: i32, %arg1: i32) -> (i32, i32) {
    %c0_i32 = arith.constant 0 : i32
    %c0_i32_0 = arith.constant 0 : i32
    %c0_i32_1 = arith.constant 0 : i32
    return %c0_i32, %c0_i32_0 : i32, i32
  }
  func.func @transform_10(%arg0: i32, %arg1: i32) -> (i32, i32) {
    %c0_i32 = arith.constant 0 : i32
    %c0_i32_0 = arith.constant 0 : i32
    %c0_i32_1 = arith.constant 0 : i32
    return %c0_i32, %c0_i32_0 : i32, i32
  }
  func.func @transform_11(%arg0: i32, %arg1: i32) -> (i32, i32) {
    %c0_i32 = arith.constant 0 : i32
    %c0_i32_0 = arith.constant 0 : i32
    %c0_i32_1 = arith.constant 0 : i32
    return %c0_i32, %c0_i32_0 : i32, i32
  }
  func.func @transform_12(%arg0: i32, %arg1: i32) -> (i32, i32, i32) {
    %c0_i32 = arith.constant 0 : i32
    %c0_i32_0 = arith.constant 0 : i32
    return %arg0, %arg1, %c0_i32 : i32, i32, i32
  }
}

</mosaic_0001>

<bundles_post_ra>
// kernel: local_decoder_image_forward.1
= control target key start
LH: loop header
LB: loop body
LE: loop exit
PB: predicated region body
PF: predicated region fallthrough
CT: control target
= control target key end

     0   :  { %s4874_s23 = smov 0   ;;  %s4876_s24 = smov 0   ;;  %s6685_s0 = inlined_call_operand.vmem [shape: f32[2,256,3], index: 0, kind: input, shape index: {}]   ;;  %s6686_s1 = inlined_call_operand.vmem [shape: bf16[2,256,32], index: 1, kind: input, shape index: {}]   ;;  %s6687_s2 = inlined_call_operand.vmem [shape: f32[2,3,64], index: 2, kind: input, shape index: {}]   ;;  %s6688_s3 = inlined_call_operand.vmem [shape: f32[3,64], index: 3, kind: input, shape index: {}]   ;;  %s6689_s4 = inlined_call_operand.vmem [shape: f32[1,64], index: 4, kind: input, shape index: {}]   ;;  %s6690_s5 = inlined_call_operand.vmem [shape: bf16[32,192], index: 5, kind: input, shape index: {}]   ;;  %s6691_s6 = inlined_call_operand.vmem [shape: bf16[3,64,64], index: 6, kind: input, shape index: {}]   ;;  %s6692_s7 = inlined_call_operand.vmem [shape: f32[3,64], index: 7, kind: input, shape index: {}]   ;;  %s6693_s8 = inlined_call_operand.vmem [shape: bf16[3,64,64], index: 8, kind: input, shape index: {}]   ;;  %s6694_s9 = inlined_call_operand.vmem [shape: f32[3,64], index: 9, kind: input, shape index: {}]   ;;  %s6695_s10 = inlined_call_operand.vmem [shape: f32[1,64], index: 10, kind: input, shape index: {}]   ;;  %s6696_s11 = inlined_call_operand.<no memory space> [shape: f32[1,1], index: 11, kind: input, shape index: {}]   ;;  %s6697_s12 = inlined_call_operand.vmem [shape: f32[2,256,1], index: 12, kind: output, shape index: {}]  }
   0x1   :  { %v17_v0 = vstv %s6696_s11  ;;  %s4878_s25 = smov 0  }
   0x2   :  { %18 = vst [vmem:[#allocation2] sm:$0x1] %v17_v0 }
   0x3 LB: > { %s36_s11 = sadd.s32 1, %s4796_s24  ;;  %p4105_p0 = scmp.ge.s32.totalorder %s4800_s25, 1  ;;  %s4800_s25 = sphi %s4878_s25, %s24_s25   ;;  %s4796_s24 = sphi %s4876_s24, %s6763_s24   ;;  %s4792_s23 = sphi %s4874_s23, %s6762_s23  }
   0x4   : > { %p38_p1 = scmp.ge.s32.totalorder %s36_s11, 2  ;;  %p411_p2 = scmp.lt.s32.totalorder %s4800_s25, 3 }
   0x6   : > { %s6765_s11 = smov (%p38_p1, %s36_s11), 0  ;;  %p412_p3 = pnand %p4105_p0, %p411_p2 }
   0x8   : > { %415 = sbr.rel (%p412_p3) target bundleno = 1806 (0x70e), region = 68 }
   0xd   : > { %v4732_v1 = vld [vmem:[%s6690_s5 + $0x14] ss:$8 sps:$4 sm:$0xff]   ;;  %v703_v2 = vlaneseq  ;;  %v4734_v3 = vld [vmem:[%s6690_s5 + $0x10] ss:$8 sps:$4 sm:$0xff]   ;;  %v6701_v4 = vmov 1   ;;  %v6698_v5 = vmov 0  }
   0xe   : > { %4704 = vset.pattern.permute.xlu0 %v6701_v4  ;;  %4703 = vset.pattern.permute.xlu1 %v6698_v5  ;;  %p475_p4 = scmp.lt.s32.totalorder %s4792_s23, 1  ;;  %v4735_v6 = vld [vmem:[%s6690_s5 + $0x4] ss:$8 sps:$4 sm:$0xff]   ;;  %v4737_v8 = vld [vmem:[%s6690_s5] ss:$8 sps:$4 sm:$0xff]   ;;  %vm1305_vm0 = vcmask 261120  }
   0xf   : > { %1366 = vmatprep.subr.bf16.mxu0 %v4732_v1  ;;  %v4903_v7 = vshrl.u32 %v703_v2, 7  ;;  %1386 = vmatprep.mubr.bf16.mxu0 %v6698_v5  ;;  %v6699_v24 = vmov 2   ;;  %v4754_v42 = vld [vmem:[%s6691_s6 + $0x18] sm:$0xff]   ;;  %v4755_v44 = vld [vmem:[%s6691_s6 + $0x10] sm:$0xff]   ;;  %v4756_v45 = vld [vmem:[%s6691_s6 + $0x8] sm:$0xff]   ;;  %vm1701_vm1 = vcmask 523264  }
  0x10   : > { %1367 = vmatpush1.bf16.msra.mxu0 %v4734_v3  ;;  %s6767_s23 = smov (!%p475_p4, %s4792_s23), 1  ;;  %4435 = vmatprep.subr.bf16.mxu1 %v4754_v42  ;;  %v4757_v47 = vld [vmem:[%s6691_s6] sm:$0xff]   ;;  %vm3951_vm2 = vcmask 7168  }
  0x11   : > { %1368 = vmatprep.subr.bf16.mxu0 %v4735_v6  ;;  %v907_v9 = vsub.s32 1, %v4903_v7  ;;  %v1103_v10 = vsub.s32 2, %v4903_v7  ;;  %s4312_s16 = sshll.u32 %s6767_s23, 8  ;;  %s4110_s17 = sshll.u32 %s6767_s23, 2  ;;  %4436 = vmatpush3.bf16.msra.mxu1 %v4754_v42 }
  0x12   : > { %s4920_s20 = scalar_lea.vmem %s6685_s0, %s4312_s16  ;;  %s497_s26 = scalar_lea.vmem %s6687_s2, %s4110_s17  ;;  %4437 = vmatprep.subr.bf16.mxu1 %v4755_v44 }
  0x13   : > { %v511_v11 = vld [vmem:[%s4920_s20 + $0x10] sm:$0xff]  ;;  %v4926_v12 = vld [vmem:[%s497_s26] sm:$0x7]  ;;  %s4313_s27 = sshll.u32 %s6767_s23, 7  ;;  %v512_v16 = vld [vmem:[%s4920_s20 + $0x18] sm:$0xff] }
  0x14   : > { %v4929_v13 = vld [vmem:[%s4920_s20] sm:$0xff]  ;;  %1369 = vmatpush1.bf16.msra.mxu0 %v4737_v8  ;;  %v4935_v14 = vrot.slane %v4926_v12, %v907_v9  ;;  %v4940_v15 = vrot.slane %v4926_v12, %v1103_v10  ;;  %555 = vperm.xlu1 %4703, %v511_v11   ;;  %s4946_s30 = scalar_lea.vmem %s6686_s1, %s4313_s27  ;;  %v514_v18 = vld [vmem:[%s4920_s20 + $0x28] sm:$0xff]  ;;  %v4966_v22 = vld [vmem:[%s4920_s20 + $0x58] sm:$0xff] }
  0x15   : > { %778 = vperm.xlu0 %4704, %v4929_v13   ;;  %v4738_v17 = vld [vmem:[%s4946_s30] sm:$0xff]   ;;  %v4954_v19 = vld [vmem:[%s4920_s20 + $0x8] sm:$0xff]  ;;  %v4740_v23 = vld [vmem:[%s4946_s30 + $0x10] sm:$0xff]   ;;  %4438 = vmatpush3.bf16.msra.mxu1 %v4755_v44 }
  0x16   : > { %6703 = vst [vmem:[#allocation3_spill] sm:$0xff] %v4940_v15  ;;  %v4739_v20 = vld [vmem:[%s4946_s30 + $0x8] sm:$0xff]   ;;  %v4960_v21 = vld [vmem:[%s4920_s20 + $0x40] sm:$0xff]  ;;  %v4741_v26 = vld [vmem:[%s4946_s30 + $0x18] sm:$0xff]   ;;  %4439 = vmatprep.subr.bf16.mxu1 %v4756_v45 }
  0x17   : > { %4134 = vmatmul.mubr.msk.bf16.vlgmr.msra.gmra.mxu0 %vm1305_vm0, %v4738_v17  ;;  %v513_v25 = vld [vmem:[%s4920_s20 + $0x20] sm:$0xff]  ;;  %v516_v27 = vld [vmem:[%s4920_s20 + $0x38] sm:$0xff]  ;;  %v518_v28 = vld [vmem:[%s4920_s20 + $0x48] sm:$0xff] }
  0x18   : > { %560 = vperm.xlu1 %4703, %v512_v16   ;;  %1396 = vmatprep.mubr.bf16.mxu0 %v6698_v5  ;;  %v4742_v29 = vld [vmem:[%s4946_s30 + $0x20] sm:$0xff]   ;;  %v515_v30 = vld [vmem:[%s4920_s20 + $0x30] sm:$0xff]  ;;  %v4992_v32 = vld [vmem:[%s4920_s20 + $0x78] sm:$0xff] }
  0x19   : > { %790 = vperm.xlu0 %4704, %v512_v16   ;;  %v4986_v31 = vld [vmem:[%s4920_s20 + $0x60] sm:$0xff]  ;;  %v4743_v33 = vld [vmem:[%s4946_s30 + $0x28] sm:$0xff]   ;;  %v4744_v36 = vld [vmem:[%s4946_s30 + $0x30] sm:$0xff]   ;;  %4440 = vmatpush3.bf16.msra.mxu1 %v4756_v45 }
  0x1a   : > { %v4998_v34 = vld [vmem:[%s4920_s20 + $0x88] sm:$0xff]  ;;  %v5004_v35 = vld [vmem:[%s4920_s20 + $0xa0] sm:$0xff]  ;;  %v5009_v37 = vld [vmem:[%s4920_s20 + $0xb8] sm:$0xff]  ;;  %4441 = vmatprep.subr.bf16.mxu1 %v4757_v47 }
  0x1b   : > { %v5016_v38 = vld [vmem:[%s4920_s20 + $0xc8] sm:$0xff]  ;;  %v4745_v39 = vld [vmem:[%s4946_s30 + $0x38] sm:$0xff]   ;;  %v519_v40 = vld [vmem:[%s4920_s20 + $0x50] sm:$0xff] }
  0x1c   : > { %4705 = vset.pattern.permute.xlu1 %v6701_v4  ;;  %v4746_v41 = vld [vmem:[%s4946_s30 + $0x40] sm:$0xff]   ;;  %v4747_v43 = vld [vmem:[%s4946_s30 + $0x48] sm:$0xff]   ;;  %v4748_v46 = vld [vmem:[%s4946_s30 + $0x50] sm:$0xff]  }
  0x1d   : > { %798 = vperm.xlu0 %4704, %v514_v18   ;;  %782 = vperm.xlu1 %4705, %v4954_v19   ;;  %v4749_v48 = vld [vmem:[%s4946_s30 + $0x58] sm:$0xff]   ;;  %v522_v49 = vld [vmem:[%s4920_s20 + $0x68] sm:$0xff]  ;;  %v4750_v50 = vld [vmem:[%s4946_s30 + $0x60] sm:$0xff]  }
  0x1e   : > { %4442 = vmatpush3.bf16.msra.mxu1 %v4757_v47  ;;  %v523_v51 = vld [vmem:[%s4920_s20 + $0x70] sm:$0xff]  ;;  %v5070_v52 = vld [vmem:[%s4920_s20 + $0xe0] sm:$0xff]  ;;  %v4751_v53 = vld [vmem:[%s4946_s30 + $0x68] sm:$0xff]  }
  0x1f   : > { %4135 = vmatmul.mubr.msk.bf16.gmra.mxu0 %vm1305_vm0, %v4739_v20  ;;  %v5077_v54 = vld [vmem:[%s4920_s20 + $0xf8] sm:$0xff]  ;;  %v4752_v55 = vld [vmem:[%s4946_s30 + $0x70] sm:$0xff]   ;;  %v525_v56 = vld [vmem:[%s4920_s20 + $0x80] sm:$0xff] }
  0x20   : > { %1406 = vmatprep.mubr.bf16.mxu0 %v6698_v5  ;;  %v4753_v57 = vld [vmem:[%s4946_s30 + $0x78] sm:$0xff]   ;;  %v530_v61 = vld [vmem:[%s4920_s20 + $0xa8] sm:$0xff]  ;;  %v527_v0 = vld [vmem:[%s4920_s20 + $0x90] sm:$0xff]  ;;  %s4805_s30 = smov 64  }
  0x21   : > { %810 = vperm.xlu0 %4704, %v4960_v21   ;;  %786 = vperm.xlu1 %4705, %v511_v11   ;;  %v528_v58 = vld [vmem:[%s4920_s20 + $0x98] sm:$0xff]  ;;  %v5104_v1 = vld [vmem:[%s4920_s20 + $0xc0] sm:$0xff] }
  0x22   : > { %v5112_v6 = vld [vmem:[%s4920_s20 + $0xd8] sm:$0xff] }
  0x25   : > { %822 = vperm.xlu0 %4704, %v4966_v22   ;;  %4706 = vset.pattern.permute.xlu1 %v6699_v24 }
  0x26   : > { %974 = vperm.xlu1 %4706, %v4929_v13  }
  0x27   : > { %4136 = vmatmul.mubr.msk.bf16.gmra.mxu0 %vm1305_vm0, %v4740_v23 }
  0x28   : > { %1416 = vmatprep.mubr.bf16.mxu0 %v6698_v5 }
  0x29   : > { %4712 = vset.pattern.permute.xlu0 %v6699_v24 }
  0x2a   : > { %978 = vperm.xlu0 %4712, %v4954_v19   ;;  %982 = vperm.xlu1 %4706, %v511_v11  }
  0x2e   : > { %990 = vperm.xlu0 %4712, %v513_v25   ;;  %986 = vperm.xlu1 %4706, %v512_v16  }
  0x2f   : > { %4137 = vmatmul.mubr.msk.bf16.gmra.mxu0 %vm1305_vm0, %v4741_v26 }
  0x30   : > { %1426 = vmatprep.mubr.bf16.mxu0 %v6698_v5 }
  0x32   : > { %1002 = vperm.xlu0 %4712, %v516_v27   ;;  %4707 = vset.pattern.permute.xlu1 %v6698_v5 }
  0x33   : > { %570 = vperm.xlu1 %4707, %v514_v18  }
  0x36   : > { %1010 = vperm.xlu0 %4712, %v518_v28  }
  0x37   : > { %575 = vperm.xlu1 %4707, %v515_v30   ;;  %4138 = vmatmul.mubr.msk.bf16.gmra.mxu0 %vm1305_vm0, %v4742_v29 }
  0x38   : > { %1436 = vmatprep.mubr.bf16.mxu0 %v6698_v5 }
  0x3a   : > { %1022 = vperm.xlu0 %4712, %v4986_v31  }
  0x3b   : > { %4708 = vset.pattern.permute.xlu1 %v6701_v4 }
  0x3c   : > { %794 = vperm.xlu1 %4708, %v513_v25  }
  0x3e   : > { %1034 = vperm.xlu0 %4712, %v4992_v32  }
  0x3f   : > { %4139 = vmatmul.mubr.msk.bf16.gmra.mxu0 %vm1305_vm0, %v4743_v33 }
  0x40   : > { %802 = vperm.xlu1 %4708, %v515_v30   ;;  %1446 = vmatprep.mubr.bf16.mxu0 %v6698_v5 }
  0x42   : > { %1042 = vperm.xlu0 %4712, %v4998_v34  }
  0x44   : > { %806 = vperm.xlu1 %4708, %v516_v27  }
  0x46   : > { %1054 = vperm.xlu0 %4712, %v5004_v35  }
  0x47   : > { %4140 = vmatmul.mubr.msk.bf16.gmra.mxu0 %vm1305_vm0, %v4744_v36 }
  0x48   : > { %4709 = vset.pattern.permute.xlu1 %v6699_v24  ;;  %1456 = vmatprep.mubr.bf16.mxu0 %v6698_v5 }
  0x49   : > { %994 = vperm.xlu1 %4709, %v514_v18  }
  0x4a   : > { %1066 = vperm.xlu0 %4712, %v5009_v37  }
  0x4d   : > { %998 = vperm.xlu1 %4709, %v515_v30   ;;  %v531_v30 = vld [vmem:[%s4920_s20 + $0xb0] sm:$0xff] }
  0x4e   : > { %1074 = vperm.xlu0 %4712, %v5016_v38  }
  0x4f   : > { %4141 = vmatmul.mubr.msk.bf16.gmra.mxu0 %vm1305_vm0, %v4745_v39 }
  0x50   : > { %1466 = vmatprep.mubr.bf16.mxu0 %v6698_v5 }
  0x51   : > { %4710 = vset.pattern.permute.xlu1 %v6698_v5 }
  0x52   : > { %4726 = vset.pattern.permute.xlu0 %v6698_v5  ;;  %585 = vperm.xlu1 %4710, %v4960_v21  }
  0x53   : > { %545 = vperm.xlu0 %4726, %v4929_v13   ;;  %v5120_v13 = vld [vmem:[%s4920_s20 + $0xe8] sm:$0xff] }
  0x56   : > { %595 = vperm.xlu1 %4710, %v519_v40  }
  0x57   : > { %550 = vperm.xlu0 %4726, %v4954_v19   ;;  %4142 = vmatmul.mubr.msk.bf16.gmra.mxu0 %vm1305_vm0, %v4746_v41 }
  0x58   : > { %1476 = vmatprep.mubr.bf16.mxu0 %v6698_v5 }
  0x5a   : > { %600 = vperm.xlu1 %4710, %v4966_v22  }
  0x5b   : > { %565 = vperm.xlu0 %4726, %v513_v25  }
  0x5e   : > { %4711 = vset.pattern.permute.xlu1 %v6701_v4 }
  0x5f   : > { %580 = vperm.xlu0 %4726, %v516_v27   ;;  %814 = vperm.xlu1 %4711, %v518_v28  }
  0x60   : > { %4143 = vmatmul.mubr.msk.bf16.gmra.mxu0 %vm1305_vm0, %v4747_v43  ;;  %v541_v43 = vld [vmem:[%s6688_s3] sm:$0x7] }
  0x61   : > { %1486 = vmatprep.mubr.bf16.mxu0 %v6698_v5  ;;  %v5180_v44 = vrot.slane %v541_v43, %v907_v9  ;;  %v5195_v9 = vrot.slane %v541_v43, %v1103_v10 }
  0x63   : > { %590 = vperm.xlu0 %4726, %v518_v28   ;;  %818 = vperm.xlu1 %4711, %v519_v40  }
  0x67   : > { %605 = vperm.xlu0 %4726, %v4986_v31   ;;  %4713 = vset.pattern.permute.xlu1 %v6699_v24 }
  0x68   : > { %4144 = vmatmul.mubr.msk.bf16.gmra.mxu0 %vm1305_vm0, %v4748_v46  ;;  %1006 = vperm.xlu1 %4713, %v4960_v21  }
  0x69   : > { %1496 = vmatprep.mubr.bf16.mxu0 %v6698_v5 }
  0x6b   : > { %620 = vperm.xlu0 %4726, %v4992_v32  }
  0x6c   : > { %1014 = vperm.xlu1 %4713, %v519_v40   ;;  %v705_v40 = vsub.s32 0, %v4903_v7 }
  0x6f   : > { %630 = vperm.xlu0 %4726, %v4998_v34  }
  0x70   : > { %4145 = vmatmul.mubr.msk.bf16.gmra.mxu0 %vm1305_vm0, %v4749_v48  ;;  %1018 = vperm.xlu1 %4713, %v4966_v22   ;;  %v5191_v48 = vld [vmem:[%s6689_s4] ss:$0 sm:$0xff] }
  0x71   : > { %1506 = vmatprep.mubr.bf16.mxu0 %v6698_v5 }
  0x73   : > { %645 = vperm.xlu0 %4726, %v5004_v35  }
  0x74   : > { %4714 = vset.pattern.permute.xlu1 %v6698_v5 }
  0x75   : > { %610 = vperm.xlu1 %4714, %v522_v49  }
  0x77   : > { %660 = vperm.xlu0 %4726, %v5009_v37  }
  0x78   : > { %4146 = vmatmul.mubr.msk.bf16.gmra.mxu0 %vm1305_vm0, %v4750_v50 }
  0x79   : > { %1516 = vmatprep.mubr.bf16.mxu0 %v6698_v5  ;;  %615 = vperm.xlu1 %4714, %v523_v51  }
  0x7b   : > { %670 = vperm.xlu0 %4726, %v5016_v38  }
  0x7d   : > { %4715 = vset.pattern.permute.xlu1 %v6701_v4 }
  0x7e   : > { %826 = vperm.xlu1 %4715, %v4986_v31  }
  0x7f   : > { %685 = vperm.xlu0 %4726, %v5070_v52  }
  0x80   : > { %4147 = vmatmul.mubr.msk.bf16.gmra.mxu0 %vm1305_vm0, %v4751_v53 }
  0x81   : > { %1526 = vmatprep.mubr.bf16.mxu0 %v6698_v5 }
  0x82   : > { %834 = vperm.xlu1 %4715, %v523_v51  }
  0x83   : > { %700 = vperm.xlu0 %4726, %v5077_v54  }
  0x86   : > { %838 = vperm.xlu1 %4715, %v4992_v32  }
  0x87   : > { %4728 = vset.pattern.permute.xlu0 %v6701_v4 }
  0x88   : > { %830 = vperm.xlu0 %4728, %v522_v49   ;;  %4148 = vmatmul.mubr.msk.bf16.gmra.mxu0 %vm1305_vm0, %v4752_v55 }
  0x89   : > { %1536 = vmatprep.mubr.bf16.mxu0 %v6698_v5 }
  0x8a   : > { %4716 = vset.pattern.permute.xlu1 %v6699_v24 }
  0x8b   : > { %1026 = vperm.xlu1 %4716, %v522_v49  }
  0x8c   : > { %842 = vperm.xlu0 %4728, %v525_v56  }
  0x8f   : > { %v5091_v59 = vpop.permute.xlu1 %555  ;;  %1030 = vperm.xlu1 %4716, %v523_v51  }
  0x90   : > { %v5093_v60 = vpop.permute.xlu0 %778  ;;  %854 = vperm.xlu0 %4728, %v528_v58   ;;  %4149 = vmatmul.mubr.msk.bf16.gmra.mxu0 %vm1305_vm0, %v4753_v57 }
  0x91   : > { %v909_v46 = vmul.f32 %v5180_v44, %v5093_v60 }
  0x93   : > { %v5097_v62 = vpop.permute.xlu1 %560  ;;  %4717 = vset.pattern.permute.xlu1 %v6698_v5 }
  0x94   : > { %v5100_v63 = vpop.permute.xlu0 %790  ;;  %862 = vperm.xlu0 %4728, %v530_v61   ;;  %625 = vperm.xlu1 %4717, %v525_v56  }
  0x98   : > { %v5106_v2 = vpop.permute.xlu0 %798  ;;  %874 = vperm.xlu0 %4728, %v5104_v1   ;;  %v5109_v3 = vpop.permute.xlu1 %782  ;;  %635 = vperm.xlu1 %4717, %v527_v0  }
  0x9c   : > { %v5114_v8 = vpop.permute.xlu0 %810  ;;  %886 = vperm.xlu0 %4728, %v5112_v6   ;;  %v5117_v11 = vpop.permute.xlu1 %786  ;;  %640 = vperm.xlu1 %4717, %v528_v58  }
  0xa0   : > { %v5122_v16 = vpop.permute.xlu0 %822  ;;  %894 = vperm.xlu0 %4728, %v5120_v13   ;;  %4718 = vset.pattern.permute.xlu1 %v6701_v4 }
  0xa1   : > { %846 = vperm.xlu1 %4718, %v4998_v34   ;;  %v975_v17 = vpop.permute.xlu1 %974 }
  0xa2   : > { %v1105_v57 = vmul.f32 %v5195_v9, %v975_v17 }
  0xa4   : > { %4730 = vset.pattern.permute.xlu0 %v6699_v24 }
  0xa5   : > { %v979_v18 = vpop.permute.xlu0 %978  ;;  %1086 = vperm.xlu0 %4730, %v5070_v52   ;;  %850 = vperm.xlu1 %4718, %v527_v0   ;;  %v5129_v19 = vpop.permute.xlu1 %982 }
  0xa9   : > { %v5131_v20 = vpop.permute.xlu0 %990  ;;  %1098 = vperm.xlu0 %4730, %v5077_v54   ;;  %4719 = vset.pattern.permute.xlu1 %v6699_v24  ;;  %v5135_v21 = vpop.permute.xlu1 %986 }
  0xaa   : > { %1038 = vperm.xlu1 %4719, %v525_v56   ;;  %v910_v56 = vmul.f32 %v5180_v44, %v5109_v3 }
  0xad   : > { %v5137_v22 = vpop.permute.xlu0 %1002 }
  0xae   : > { %1046 = vperm.xlu1 %4719, %v527_v0   ;;  %v5139_v23 = vpop.permute.xlu1 %570 }
  0xb1   : > { %v5141_v25 = vpop.permute.xlu0 %1010 }
  0xb2   : > { %1050 = vperm.xlu1 %4719, %v528_v58   ;;  %v5143_v26 = vpop.permute.xlu1 %575 }
  0xb5   : > { %v5145_v27 = vpop.permute.xlu0 %1022 }
  0xb6   : > { %4720 = vset.pattern.permute.xlu1 %v6698_v5 }
  0xb7   : > { %650 = vperm.xlu1 %4720, %v530_v61   ;;  %v5148_v28 = vpop.permute.xlu1 %794 }
  0xb9   : > { %v5150_v29 = vpop.permute.xlu0 %1034 }
  0xbb   : > { %655 = vperm.xlu1 %4720, %v531_v30   ;;  %v5153_v31 = vpop.permute.xlu1 %802 }
  0xbd   : > { %v5155_v32 = vpop.permute.xlu0 %1042 }
  0xbf   : > { %4721 = vset.pattern.permute.xlu1 %v6701_v4  ;;  %v5158_v33 = vpop.permute.xlu1 %806 }
  0xc0   : > { %858 = vperm.xlu1 %4721, %v5004_v35   ;;  %v5176_v35 = vrot.slane %v541_v43, %v705_v40  ;;  %v5217_v43 = vld [vmem:[%s4920_s20 + $0xd0] sm:$0xff] }
  0xc1   : > { %v5161_v34 = vpop.permute.xlu0 %1054 }
  0xc2   : > { %v709_v60 = vmul.f32 %v5176_v35, %v5091_v59  ;;  %v710_v3 = vmul.f32 %v5176_v35, %v5097_v62  ;;  %v1107_v62 = vmul.f32 %v5195_v9, %v5129_v19 }
  0xc4   : > { %866 = vperm.xlu1 %4721, %v531_v30   ;;  %v5163_v36 = vpop.permute.xlu1 %994 }
  0xc5   : > { %v5165_v39 = vpop.permute.xlu0 %1066 }
  0xc8   : > { %870 = vperm.xlu1 %4721, %v5009_v37   ;;  %v5169_v41 = vpop.permute.xlu1 %998 }
  0xc9   : > { %v5171_v42 = vpop.permute.xlu0 %1074 }
  0xcc   : > { %4722 = vset.pattern.permute.xlu1 %v6699_v24 }
  0xcd   : > { %1058 = vperm.xlu1 %4722, %v530_v61   ;;  %v5183_v45 = vpop.permute.xlu1 %585  ;;  %v1106_v61 = vmul.f32 %v5195_v9, %v979_v18 }
  0xce   : > { %v546_v37 = vpop.permute.xlu0 %545  ;;  %v715_v15 = vmul.f32 %v5176_v35, %v5183_v45 }
  0xcf   : > { %v707_v47 = vmul.f32 %v5176_v35, %v546_v37  ;;  %v5220_v37 = vrot.slane %v4926_v12, %v705_v40  ;;  %v748_v40 = vadd.f32 %v5191_v48, %v710_v3 }
  0xd1   : > { %v745_v49 = vadd.f32 %v5191_v48, %v707_v47  ;;  %1062 = vperm.xlu1 %4722, %v531_v30   ;;  %v5198_v50 = vpop.permute.xlu1 %595 }
  0xd2   : > { %v551_v51 = vpop.permute.xlu0 %550 }
  0xd3   : > { %v708_v53 = vmul.f32 %v5176_v35, %v551_v51  ;;  %v941_v55 = vadd.f32 %v909_v46, %v745_v49  ;;  %v911_v46 = vmul.f32 %v5180_v44, %v5117_v11  ;;  %v747_v49 = vadd.f32 %v5191_v48, %v709_v60 }
  0xd4   : > { %v912_v11 = vmul.f32 %v5180_v44, %v5100_v63  ;;  %v1108_v60 = vmul.f32 %v5195_v9, %v5135_v21 }
  0xd5   : > { %v746_v58 = vadd.f32 %v5191_v48, %v708_v53  ;;  %4723 = vset.pattern.permute.xlu1 %v6698_v5  ;;  %v5206_v7 = vpop.permute.xlu1 %600  ;;  %v1137_v0 = vadd.f32 %v1105_v57, %v941_v55 }
  0xd6   : > { %v566_v10 = vpop.permute.xlu0 %565  ;;  %665 = vperm.xlu1 %4723, %v5104_v1   ;;  %v944_v3 = vadd.f32 %v912_v11, %v748_v40 }
  0xd7   : > { %v942_v30 = vadd.f32 %v910_v56, %v746_v58  ;;  %v5214_v17 = vpop.f32.mrf.mxu0  ;;  %v711_v51 = vmul.f32 %v5176_v35, %v566_v10  ;;  %v943_v56 = vadd.f32 %v911_v46, %v747_v49  ;;  %v712_v46 = vmul.f32 %v5176_v35, %v5139_v23 }
  0xd8   : > { %v1548_v59 = vadd.f32 %v5214_v17, %v1137_v0  ;;  %v913_v49 = vmul.f32 %v5180_v44, %v5148_v28  ;;  %v1140_v23 = vadd.f32 %v1108_v60, %v944_v3  ;;  %v914_v28 = vmul.f32 %v5180_v44, %v5106_v2 }
  0xd9   : > { %v5225_v47 = vpop.f32.mrf.mxu0  ;;  %v1138_v12 = vadd.f32 %v1106_v61, %v942_v30  ;;  %v749_v61 = vadd.f32 %v5191_v48, %v711_v51  ;;  %v1139_v30 = vadd.f32 %v1107_v62, %v943_v56  ;;  %v1109_v62 = vmul.f32 %v5195_v9, %v5131_v20 }
  0xda   : > { %v581_v18 = vpop.permute.xlu0 %580  ;;  %675 = vperm.xlu1 %4723, %v5217_v43   ;;  %v5232_v53 = vpop.permute.xlu1 %814  ;;  %v5238_v57 = vadd.f32 %v5220_v37, %v1548_v59  ;;  %v750_v5 = vadd.f32 %v5191_v48, %v712_v46  ;;  %v713_v20 = vmul.f32 %v5176_v35, %v5143_v26 }
  0xdb   : > { %v1392_v55 = vpop.f32.mrf.mxu0  ;;  %v945_v11 = vadd.f32 %v913_v49, %v749_v61  ;;  %v714_v61 = vmul.f32 %v5176_v35, %v581_v18  ;;  %v915_v49 = vmul.f32 %v5180_v44, %v5153_v31  ;;  %v1111_v31 = vmul.f32 %v5195_v9, %v5169_v41 }
  0xdc   : > { %v1549_v58 = vadd.f32 %v1392_v55, %v1138_v12  ;;  %2271 = vrot.lane.b32.xlu0 %v1392_v55, %s4805_s30  ;;  %v1616_v51 = vmax.f32 %v5238_v57, 0.0  ;;  %v946_v18 = vadd.f32 %v914_v28, %v750_v5 }
  0xdd   : > { %v5243_v10 = vpop.f32.mrf.mxu0  ;;  %v1141_v46 = vadd.f32 %v1109_v62, %v945_v11 }
  0xde   : > { %v5241_v19 = vpop.permute.xlu0 %590  ;;  %6704 = vst [vmem:[#allocation4_spill] sm:$0xff] %v5243_v10  ;;  %v5249_v63 = vadd.f32 %v5220_v37, %v1549_v58  ;;  %680 = vperm.xlu1 %4723, %v5112_v6   ;;  %v5252_v0 = vpop.permute.xlu1 %818 }
  0xdf   : > { %v5256_v59 = vpop.f32.mrf.mxu0 }
  0xe0   : > { %v1550_v21 = vadd.f32 %v5256_v59, %v1139_v30  ;;  %v1617_v12 = vmax.f32 %v5249_v63, 0.0 }
  0xe1   : > { %v5263_v55 = vpop.f32.mrf.mxu0 }
  0xe2   : > { %6705 = vst [vmem:[#allocation5_spill] sm:$0xff] %v5263_v55  ;;  %v5265_v58 = vpop.permute.xlu0 %605  ;;  %4724 = vset.pattern.permute.xlu1 %v6701_v4  ;;  %v1648_v40 = vpack.c.bf16 %v1617_v12, %v1616_v51  ;;  %v5275_v24 = vadd.f32 %v5220_v37, %v1550_v21 }
  0xe3   : > { %878 = vperm.xlu1 %4724, %v5016_v38   ;;  %v1007_v56 = vpop.permute.xlu1 %1006  ;;  %v1402_v30 = vpop.f32.mrf.mxu0  ;;  %v1110_v38 = vmul.f32 %v5195_v9, %v5163_v36 }
  0xe4   : > { %v1551_v10 = vadd.f32 %v1402_v30, %v1140_v23  ;;  %4443 = vmatprep.mubr.msk.bf16.mxu1 %vm1701_vm1, %v1648_v40  ;;  %2275 = vrot.lane.b32.xlu0 %v1402_v30, %s4805_s30  ;;  %v1618_v51 = vmax.f32 %v5275_v24, 0.0  ;;  %v752_v40 = vadd.f32 %v5191_v48, %v714_v61 }
  0xe5   : > { %v5281_v60 = vpop.f32.mrf.mxu0  ;;  %v1142_v11 = vadd.f32 %v1110_v38, %v946_v18  ;;  %v1112_v38 = vmul.f32 %v5195_v9, %v5137_v22 }
  0xe6   : > { %6706 = vst [vmem:[#allocation6_spill] sm:$0xff] %v5281_v60  ;;  %v5283_v2 = vpop.permute.xlu0 %620  ;;  %v5289_v3 = vadd.f32 %v5220_v37, %v1551_v10  ;;  %v751_v10 = vadd.f32 %v5191_v48, %v713_v20  ;;  %v6708_v60 = vmov 2   ;;  %v916_v20 = vmul.f32 %v5180_v44, %v5158_v33 }
  0xe7   : > { %882 = vperm.xlu1 %4724, %v5217_v43   ;;  %v5294_v21 = vpop.permute.xlu1 %1014  ;;  %v5296_v26 = vpop.f32.mrf.mxu0  ;;  %v716_v33 = vmul.f32 %v5176_v35, %v5241_v19 }
  0xe8   : > { %v1619_v12 = vmax.f32 %v5289_v3, 0.0  ;;  %v1552_v36 = vadd.f32 %v5296_v26, %v1141_v46  ;;  %v947_v4 = vadd.f32 %v915_v49, %v751_v10 }
  0xe9   : > { %v5302_v23 = vpop.f32.mrf.mxu0 }
  0xea   : > { %6707 = vst [vmem:[#allocation7_spill] sm:$0xff] %v5302_v23  ;;  %v5304_v62 = vpop.permute.xlu0 %630  ;;  %v1649_v30 = vpack.c.bf16 %v1619_v12, %v1618_v51  ;;  %v5317_v46 = vadd.f32 %v5220_v37, %v1552_v36  ;;  %v1143_v51 = vadd.f32 %v1111_v31, %v947_v4  ;;  %v948_v12 = vadd.f32 %v916_v20, %v752_v40 }
  0xeb   : > { %4725 = vset.pattern.permute.xlu1 %v6708_v60  ;;  %v5312_v5 = vpop.permute.xlu1 %1018  ;;  %v1412_v28 = vpop.f32.mrf.mxu0  ;;  %v753_v36 = vadd.f32 %v5191_v48, %v715_v15  ;;  %v754_v31 = vadd.f32 %v5191_v48, %v716_v33 }
  0xec   : > { %v1553_v41 = vadd.f32 %v1412_v28, %v1142_v11  ;;  %1070 = vperm.xlu1 %4725, %v5104_v1   ;;  %4444 = vmatmul.mubr.msk.bf16.vlgmr.msra.gmra.mxu1 %vm1701_vm1, %v1649_v30  ;;  %v917_v1 = vmul.f32 %v5180_v44, %v5114_v8  ;;  %v1620_v18 = vmax.f32 %v5317_v46, 0.0  ;;  %v1113_v8 = vmul.f32 %v5195_v9, %v1007_v56 }
  0xed   : > { %v5323_v45 = vpop.f32.mrf.mxu0  ;;  %2279 = vrot.lane.b32.xlu0 %v1412_v28, %s4805_s30  ;;  %v1144_v15 = vadd.f32 %v1112_v38, %v948_v12  ;;  %v1114_v56 = vmul.f32 %v5195_v9, %v5141_v25  ;;  %v919_v25 = vmul.f32 %v5180_v44, %v5252_v0  ;;  %v1115_v0 = vmul.f32 %v5195_v9, %v5294_v21 }
  0xee   : > { %6709 = vst [vmem:[#allocation8_spill] sm:$0xff] %v5323_v45  ;;  %v5325_v61 = vpop.permute.xlu0 %645  ;;  %v5331_v49 = vadd.f32 %v5220_v37, %v1553_v41  ;;  %v949_v20 = vadd.f32 %v917_v1, %v753_v36  ;;  %v918_v41 = vmul.f32 %v5180_v44, %v5232_v53  ;;  %v717_v53 = vmul.f32 %v5176_v35, %v5198_v50 }
  0xef   : > { %v5336_v22 = vpop.f32.mrf.mxu0  ;;  %v718_v36 = vmul.f32 %v5176_v35, %v5206_v7 }
  0xf0   : > { %v1621_v10 = vmax.f32 %v5331_v49, 0.0  ;;  %v1554_v11 = vadd.f32 %v5336_v22, %v1143_v51  ;;  %1078 = vperm.xlu1 %4725, %v5217_v43   ;;  %v611_v19 = vpop.permute.xlu1 %610  ;;  %v950_v1 = vadd.f32 %v918_v41, %v754_v31  ;;  %v719_v31 = vmul.f32 %v5176_v35, %v5265_v58  ;;  %v5390_v41 = vld [vmem:[%s4920_s20 + $0xf0] sm:$0xff]  ;;  %s6547_s20 = scalar_lea.vmem %s6697_s12, %s4312_s16 }
  0xf1   : > { %v5342_v30 = vpop.f32.mrf.mxu0  ;;  %v756_v58 = vadd.f32 %v5191_v48, %v718_v36 }
  0xf2   : > { %6710 = vst [vmem:[#allocation9_spill] sm:$0xff] %v5342_v30  ;;  %v5344_v4 = vpop.permute.xlu0 %660  ;;  %v1650_v40 = vpack.c.bf16 %v1621_v10, %v1620_v18  ;;  %v5351_v51 = vadd.f32 %v5220_v37, %v1554_v11  ;;  %v757_v21 = vadd.f32 %v5191_v48, %v719_v31 }
  0xf3   : > { %v1422_v28 = vpop.f32.mrf.mxu0 }
  0xf4   : > { %v1555_v43 = vadd.f32 %v1422_v28, %v1144_v15  ;;  %1082 = vperm.xlu1 %4725, %v5112_v6   ;;  %v5354_v45 = vpop.permute.xlu1 %615  ;;  %4447 = vmatprep.mubr.msk.bf16.mxu1 %vm1701_vm1, %v1650_v40  ;;  %v1145_v6 = vadd.f32 %v1113_v8, %v949_v20  ;;  %v1622_v10 = vmax.f32 %v5351_v51, 0.0  ;;  %v6712_v15 = vmov 0  }
  0xf5   : > { %v5359_v38 = vpop.f32.mrf.mxu0  ;;  %2283 = vrot.lane.b32.xlu0 %v1422_v28, %s4805_s30  ;;  %v755_v40 = vadd.f32 %v5191_v48, %v717_v53  ;;  %v1146_v20 = vadd.f32 %v1114_v56, %v950_v1 }
  0xf6   : > { %6711 = vst [vmem:[#allocation10_spill] sm:$0xff] %v5359_v38  ;;  %v5361_v33 = vpop.permute.xlu0 %670  ;;  %v5367_v12 = vadd.f32 %v5220_v37, %v1555_v43 }
  0xf7   : > { %v5371_v18 = vpop.f32.mrf.mxu0  ;;  %v951_v38 = vadd.f32 %v919_v25, %v755_v40 }
  0xf8   : > { %v1623_v11 = vmax.f32 %v5367_v12, 0.0  ;;  %v1556_v50 = vadd.f32 %v5371_v18, %v1145_v6  ;;  %4727 = vset.pattern.permute.xlu1 %v6712_v15  ;;  %v920_v6 = vmul.f32 %v5180_v44, %v5122_v16  ;;  %v1116_v16 = vmul.f32 %v5195_v9, %v5312_v5 }
  0xf9   : > { %690 = vperm.xlu1 %4727, %v5120_v13   ;;  %v827_v8 = vpop.permute.xlu1 %826  ;;  %v5382_v7 = vpop.f32.mrf.mxu0  ;;  %v6715_v5 = vmov 1  }
  0xfa   : > { %6713 = vst [vmem:[#allocation11_spill] sm:$0xff] %v5382_v7  ;;  %v5387_v28 = vpop.permute.xlu0 %685  ;;  %v1651_v43 = vpack.c.bf16 %v1623_v11, %v1622_v10  ;;  %v5396_v7 = vadd.f32 %v5220_v37, %v1556_v50  ;;  %v921_v36 = vmul.f32 %v5180_v44, %v827_v8  ;;  %v1147_v11 = vadd.f32 %v1115_v0, %v951_v38 }
  0xfb   : > { %v1432_v15 = vpop.f32.mrf.mxu0 }
  0xfc   : > { %v1557_v53 = vadd.f32 %v1432_v15, %v1146_v20  ;;  %4448 = vmatmul.mubr.msk.bf16.gmra.mxu1 %vm1701_vm1, %v1651_v43  ;;  %2287 = vrot.lane.b32.xlu0 %v1432_v15, %s4805_s30  ;;  %v1624_v31 = vmax.f32 %v5396_v7, 0.0  ;;  %v952_v43 = vadd.f32 %v920_v6, %v756_v58  ;;  %v720_v15 = vmul.f32 %v5176_v35, %v611_v19 }
  0xfd   : > { %695 = vperm.xlu1 %4727, %v5390_v41   ;;  %v835_v56 = vpop.permute.xlu1 %834  ;;  %v5402_v1 = vpop.f32.mrf.mxu0  ;;  %v953_v38 = vadd.f32 %v921_v36, %v757_v21  ;;  %v722_v21 = vmul.f32 %v5176_v35, %v5283_v2 }
  0xfe   : > { %6714 = vst [vmem:[#allocation12_spill] sm:$0xff] %v5402_v1  ;;  %v5408_v25 = vadd.f32 %v5220_v37, %v1557_v53  ;;  %v5410_v10 = vpop.permute.xlu0 %700  ;;  %v1117_v53 = vmul.f32 %v5195_v9, %v5145_v27  ;;  %v1148_v30 = vadd.f32 %v1116_v16, %v952_v43  ;;  %v758_v58 = vadd.f32 %v5191_v48, %v720_v15 }
  0xff   : > { %v5412_v50 = vpop.f32.mrf.mxu0  ;;  %v721_v27 = vmul.f32 %v5176_v35, %v5354_v45 }
 0x100   : > { %v1625_v40 = vmax.f32 %v5408_v25, 0.0  ;;  %v1558_v20 = vadd.f32 %v5412_v50, %v1147_v11  ;;  %v1149_v36 = vadd.f32 %v1117_v53, %v953_v38  ;;  %v760_v53 = vadd.f32 %v5191_v48, %v722_v21 }
 0x101   : > { %4729 = vset.pattern.permute.xlu1 %v6715_v5  ;;  %v839_v8 = vpop.permute.xlu1 %838  ;;  %v5419_v1 = vpop.f32.mrf.mxu0  ;;  %v759_v15 = vadd.f32 %v5191_v48, %v721_v27 }
 0x102   : > { %890 = vperm.xlu1 %4729, %v5070_v52   ;;  %v1652_v23 = vpack.c.bf16 %v1625_v40, %v1624_v31  ;;  %v5426_v6 = vadd.f32 %v5220_v37, %v1558_v20 }
 0x103   : > { %v831_v0 = vpop.permute.xlu0 %830  ;;  %v1442_v11 = vpop.f32.mrf.mxu0 }
 0x104   : > { %v922_v55 = vmul.f32 %v5180_v44, %v831_v0  ;;  %v1559_v19 = vadd.f32 %v1442_v11, %v1148_v30  ;;  %4451 = vmatprep.mubr.msk.bf16.mxu1 %vm1701_vm1, %v1652_v23  ;;  %2291 = vrot.lane.b32.xlu0 %v1442_v11, %s4805_s30  ;;  %v923_v23 = vmul.f32 %v5180_v44, %v835_v56  ;;  %v1626_v45 = vmax.f32 %v5426_v6, 0.0 }
 0x105   : > { %v5433_v52 = vpop.f32.mrf.mxu0  ;;  %v924_v56 = vmul.f32 %v5180_v44, %v839_v8 }
 0x106   : > { %v5438_v16 = vadd.f32 %v5220_v37, %v1559_v19  ;;  %898 = vperm.xlu1 %4729, %v5390_v41   ;;  %v1027_v30 = vpop.permute.xlu1 %1026  ;;  %v954_v31 = vadd.f32 %v922_v55, %v758_v58  ;;  %v955_v11 = vadd.f32 %v923_v23, %v759_v15 }
 0x107   : > { %v1118_v40 = vmul.f32 %v5195_v9, %v1027_v30  ;;  %v5443_v20 = vpop.f32.mrf.mxu0  ;;  %v956_v8 = vadd.f32 %v924_v56, %v760_v53 }
 0x108   : > { %v1627_v43 = vmax.f32 %v5438_v16, 0.0  ;;  %v1560_v2 = vadd.f32 %v5443_v20, %v1149_v36 }
 0x109   : > { %v5449_v5 = vpop.f32.mrf.mxu0  ;;  %v1150_v0 = vadd.f32 %v1118_v40, %v954_v31 }
 0x10a   : > { %902 = vperm.xlu1 %4729, %v5077_v54   ;;  %v1031_v55 = vpop.permute.xlu1 %1030  ;;  %v1653_v38 = vpack.c.bf16 %v1627_v43, %v1626_v45  ;;  %v5456_v30 = vadd.f32 %v5220_v37, %v1560_v2  ;;  %v1120_v54 = vmul.f32 %v5195_v9, %v5150_v29 }
 0x10b   : > { %v1119_v19 = vmul.f32 %v5195_v9, %v1031_v55  ;;  %v1452_v58 = vpop.f32.mrf.mxu0 }
 0x10c   : > { %v1561_v36 = vadd.f32 %v1452_v58, %v1150_v0  ;;  %4452 = vmatmul.mubr.msk.bf16.gmra.mxu1 %vm1701_vm1, %v1653_v38  ;;  %2295 = vrot.lane.b32.xlu0 %v1452_v58, %s4805_s30  ;;  %v1628_v45 = vmax.f32 %v5456_v30, 0.0  ;;  %v1152_v29 = vadd.f32 %v1120_v54, %v956_v8 }
 0x10d   : > { %v5460_v27 = vpop.f32.mrf.mxu0  ;;  %v1151_v21 = vadd.f32 %v1119_v19, %v955_v11  ;;  %v724_v11 = vmul.f32 %v5176_v35, %v5304_v62 }
 0x10e   : > { %6716 = vst [vmem:[#allocation13_spill] sm:$0xff] %v5460_v27  ;;  %v5465_v23 = vadd.f32 %v5220_v37, %v1561_v36  ;;  %4731 = vset.pattern.permute.xlu1 %v6708_v60 }
 0x10f   : > { %1090 = vperm.xlu1 %4731, %v5120_v13   ;;  %v626_v31 = vpop.permute.xlu1 %625  ;;  %v5469_v40 = vpop.f32.mrf.mxu0  ;;  %v762_v8 = vadd.f32 %v5191_v48, %v724_v11 }
 0x110   : > { %v1629_v43 = vmax.f32 %v5465_v23, 0.0  ;;  %v1562_v2 = vadd.f32 %v5469_v40, %v1151_v21 }
 0x111   : > { %v5474_v15 = vpop.f32.mrf.mxu0 }
 0x112   : > { %6717 = vst [vmem:[#allocation14_spill] sm:$0xff] %v5474_v15  ;;  %v1654_v0 = vpack.c.bf16 %v1629_v43, %v1628_v45  ;;  %v5478_v60 = vadd.f32 %v5220_v37, %v1562_v2  ;;  %v723_v2 = vmul.f32 %v5176_v35, %v626_v31  ;;  %v4758_v31 = vld [vmem:[%s6693_s8 + $0x18] sm:$0xff]  }
 0x113   : > { %1094 = vperm.xlu1 %4731, %v5390_v41   ;;  %v636_v53 = vpop.permute.xlu1 %635  ;;  %v1462_v56 = vpop.f32.mrf.mxu0  ;;  %4475 = vmatprep.subr.bf16.mxu1 %v4758_v31 }
 0x114   : > { %v1563_v13 = vadd.f32 %v1462_v56, %v1152_v29  ;;  %4455 = vmatprep.mubr.msk.bf16.mxu1 %vm1701_vm1, %v1654_v0  ;;  %2299 = vrot.lane.b32.xlu0 %v1462_v56, %s4805_s30  ;;  %v1630_v58 = vmax.f32 %v5478_v60, 0.0  ;;  %v843_v29 = vpop.permute.xlu0 %842 }
 0x115   : > { %v5482_v55 = vpop.f32.mrf.mxu0  ;;  %4476 = vmatpush3.bf16.msra.mxu1 %v4758_v31 }
 0x116   : > { %6718 = vst [vmem:[#allocation15_spill] sm:$0xff] %v5482_v55  ;;  %v5485_v38 = vadd.f32 %v5220_v37, %v1563_v13 }
 0x117   : > { %2269 = vrot.lane.b32.xlu1 %v5214_v17, %s4805_s30  ;;  %v641_v41 = vpop.permute.xlu1 %640  ;;  %v5491_v19 = vpop.f32.mrf.mxu0 }
 0x118   : > { %v1631_v36 = vmax.f32 %v5485_v38, 0.0 }
 0x119   : > { %v5495_v21 = vpop.f32.mrf.mxu0 }
 0x11a   : > { %6719 = vst [vmem:[#allocation16_spill] sm:$0xff] %v5495_v21  ;;  %v1655_v54 = vpack.c.bf16 %v1631_v36, %v1630_v58  ;;  %v761_v58 = vadd.f32 %v5191_v48, %v723_v2  ;;  %v925_v36 = vmul.f32 %v5180_v44, %v843_v29  ;;  %v855_v29 = vpop.permute.xlu0 %854 }
 0x11b   : > { %2273 = vrot.lane.b32.xlu1 %v5256_v59, %s4805_s30  ;;  %v1472_v45 = vpop.f32.mrf.mxu0  ;;  %v1122_v59 = vmul.f32 %v5195_v9, %v5155_v32  ;;  %v726_v32 = vmul.f32 %v5176_v35, %v641_v41 }
 0x11c   : > { %v847_v62 = vpop.permute.xlu1 %846  ;;  %4456 = vmatmul.mubr.msk.bf16.gmra.mxu1 %vm1701_vm1, %v1655_v54  ;;  %2303 = vrot.lane.b32.xlu0 %v1472_v45, %s4805_s30  ;;  %v957_v2 = vadd.f32 %v925_v36, %v761_v58 }
 0x11d   : > { %v926_v17 = vmul.f32 %v5180_v44, %v847_v62  ;;  %v5503_v43 = vpop.f32.mrf.mxu0  ;;  %v764_v41 = vadd.f32 %v5191_v48, %v726_v32 }
 0x11e   : > { %6720 = vst [vmem:[#allocation17_spill] sm:$0xff] %v5503_v43 }
 0x11f   : > { %v958_v0 = vadd.f32 %v926_v17, %v762_v8  ;;  %2277 = vrot.lane.b32.xlu1 %v5296_v26, %s4805_s30  ;;  %v725_v8 = vmul.f32 %v5176_v35, %v636_v53 }
 0x120   : > { %v5508_v56 = vpop.f32.mrf.mxu0  ;;  %v851_v13 = vpop.permute.xlu1 %850 }
 0x121   : > { %v1154_v54 = vadd.f32 %v1122_v59, %v958_v0  ;;  %v927_v0 = vmul.f32 %v5180_v44, %v851_v13  ;;  %v763_v53 = vadd.f32 %v5191_v48, %v725_v8 }
 0x122   : > { %v5512_v11 = vpop.f32.mrf.mxu0 }
 0x123   : > { %6721 = vst [vmem:[#allocation18_spill] sm:$0xff] %v5512_v11  ;;  %2281 = vrot.lane.b32.xlu1 %v5336_v22, %s4805_s30  ;;  %v1565_v59 = vadd.f32 %v1472_v45, %v1154_v54  ;;  %v959_v36 = vadd.f32 %v927_v0, %v763_v53 }
 0x124   : > { %v1482_v26 = vpop.f32.mrf.mxu0 }
 0x125   : > { %2307 = vrot.lane.b32.xlu0 %v1482_v26, %s4805_s30  ;;  %v1039_v62 = vpop.permute.xlu1 %1038  ;;  %v5538_v45 = vadd.f32 %v5220_v37, %v1565_v59 }
 0x126   : > { %v5524_v17 = vpop.f32.mrf.mxu0  ;;  %v1121_v43 = vmul.f32 %v5195_v9, %v1039_v62 }
 0x127   : > { %6722 = vst [vmem:[#allocation19_spill] sm:$0xff] %v5524_v17  ;;  %2285 = vrot.lane.b32.xlu1 %v5371_v18, %s4805_s30  ;;  %v928_v17 = vmul.f32 %v5180_v44, %v855_v29  ;;  %v1633_v29 = vmax.f32 %v5538_v45, 0.0 }
 0x128   : > { %v5530_v22 = vpop.f32.mrf.mxu0  ;;  %v1153_v11 = vadd.f32 %v1121_v43, %v957_v2 }
 0x129   : > { %v1047_v31 = vpop.permute.xlu1 %1046  ;;  %v960_v32 = vadd.f32 %v928_v17, %v764_v41 }
 0x12a   : > { %v5535_v58 = vpop.f32.mrf.mxu0  ;;  %v1564_v13 = vadd.f32 %v5491_v19, %v1153_v11  ;;  %v1123_v18 = vmul.f32 %v5195_v9, %v1047_v31  ;;  %v4759_v11 = vld [vmem:[%s6693_s8 + $0x10] sm:$0xff]  }
 0x12b   : > { %6723 = vst [vmem:[#allocation20_spill] sm:$0xff] %v5535_v58  ;;  %2289 = vrot.lane.b32.xlu1 %v5412_v50, %s4805_s30  ;;  %4477 = vmatprep.subr.bf16.mxu1 %v4759_v11  ;;  %v1128_v58 = vmul.f32 %v5195_v9, %v5165_v39 }
 0x12c   : > { %v5544_v54 = vpop.f32.mrf.mxu0  ;;  %v5547_v43 = vadd.f32 %v5220_v37, %v1564_v13  ;;  %v1155_v8 = vadd.f32 %v1123_v18, %v959_v36  ;;  %4478 = vmatpush3.bf16.msra.mxu1 %v4759_v11  ;;  %v4760_v36 = vld [vmem:[%s6693_s8 + $0x8] sm:$0xff]  }
 0x12d   : > { %2311 = vrot.lane.b32.xlu0 %v5544_v54, %s4805_s30  ;;  %v1051_v62 = vpop.permute.xlu1 %1050  ;;  %4479 = vmatprep.subr.bf16.mxu1 %v4760_v36 }
 0x12e   : > { %v5551_v2 = vpop.f32.mrf.mxu0  ;;  %v1566_v50 = vadd.f32 %v5508_v56, %v1155_v8  ;;  %v1124_v0 = vmul.f32 %v5195_v9, %v1051_v62  ;;  %v1632_v59 = vmax.f32 %v5547_v43, 0.0 }
 0x12f   : > { %6724 = vst [vmem:[#allocation21_spill] sm:$0xff] %v5551_v2  ;;  %2293 = vrot.lane.b32.xlu1 %v5443_v20, %s4805_s30  ;;  %v863_v2 = vpop.permute.xlu0 %862 }
 0x130   : > { %v5560_v53 = vpop.f32.mrf.mxu0  ;;  %v1156_v17 = vadd.f32 %v1124_v0, %v960_v32  ;;  %v1656_v41 = vpack.c.bf16 %v1633_v29, %v1632_v59  ;;  %v5570_v13 = vadd.f32 %v5220_v37, %v1566_v50  ;;  %4480 = vmatpush3.bf16.msra.mxu1 %v4760_v36 }
 0x132   : > { %v5564_v31 = vpop.f32.mrf.mxu0  ;;  %v1567_v18 = vadd.f32 %v1482_v26, %v1156_v17  ;;  %v651_v8 = vpop.permute.xlu1 %650  ;;  %4459 = vmatprep.mubr.msk.bf16.mxu1 %vm1701_vm1, %v1656_v41  ;;  %v4761_v26 = vld [vmem:[%s6693_s8] sm:$0xff]   ;;  %v1634_v11 = vmax.f32 %v5570_v13, 0.0  ;;  %v727_v17 = vmul.f32 %v5176_v35, %v5325_v61 }
 0x133   : > { %6725 = vst [vmem:[#allocation22_spill] sm:$0xff] %v5564_v31  ;;  %2297 = vrot.lane.b32.xlu1 %v5469_v40, %s4805_s30  ;;  %4481 = vmatprep.subr.bf16.mxu1 %v4761_v26 }
 0x134   : > { %v5573_v62 = vpop.f32.mrf.mxu0  ;;  %v5578_v20 = vadd.f32 %v5220_v37, %v1567_v18  ;;  %4482 = vmatpush3.bf16.msra.mxu1 %v4761_v26  ;;  %v765_v26 = vadd.f32 %v5191_v48, %v727_v17 }
 0x135   : > { %2315 = vrot.lane.b32.xlu0 %v5573_v62, %s4805_s30 }
 0x136   : > { %v5582_v32 = vpop.f32.mrf.mxu0  ;;  %v1635_v29 = vmax.f32 %v5578_v20, 0.0  ;;  %v656_v50 = vpop.permute.xlu1 %655 }
 0x137   : > { %6726 = vst [vmem:[#allocation23_spill] sm:$0xff] %v5582_v32  ;;  %2301 = vrot.lane.b32.xlu1 %v5491_v19, %s4805_s30 }
 0x138   : > { %v5591_v40 = vpop.f32.mrf.mxu0  ;;  %v1657_v0 = vpack.c.bf16 %v1635_v29, %v1634_v11  ;;  %v728_v29 = vmul.f32 %v5176_v35, %v651_v8  ;;  %v930_v8 = vmul.f32 %v5180_v44, %v863_v2 }
 0x13a   : > { %v5593_v59 = vpop.f32.mrf.mxu0  ;;  %4460 = vmatmul.mubr.msk.bf16.gmra.mxu1 %vm1701_vm1, %v1657_v0 }
 0x13b   : > { %6727 = vst [vmem:[#allocation24_spill] sm:$0xff] %v5593_v59  ;;  %v859_v41 = vpop.permute.xlu1 %858  ;;  %2305 = vrot.lane.b32.xlu1 %v5508_v56, %s4805_s30  ;;  %v730_v56 = vmul.f32 %v5176_v35, %v5344_v4  ;;  %v766_v4 = vadd.f32 %v5191_v48, %v728_v29 }
 0x13c   : > { %v5600_v36 = vpop.f32.mrf.mxu0  ;;  %v929_v19 = vmul.f32 %v5180_v44, %v859_v41  ;;  %v1125_v41 = vmul.f32 %v5195_v9, %v5161_v34  ;;  %v729_v34 = vmul.f32 %v5176_v35, %v656_v50 }
 0x13d   : > { %2319 = vrot.lane.b32.xlu0 %v5600_v36, %s4805_s30  ;;  %v768_v32 = vadd.f32 %v5191_v48, %v730_v56  ;;  %v962_v29 = vadd.f32 %v930_v8, %v766_v4 }
 0x13e   : > { %v5605_v18 = vpop.f32.mrf.mxu0  ;;  %v961_v0 = vadd.f32 %v929_v19, %v765_v26 }
 0x13f   : > { %6728 = vst [vmem:[#allocation25_spill] sm:$0xff] %v5605_v18  ;;  %v867_v11 = vpop.permute.xlu1 %866  ;;  %2309 = vrot.lane.b32.xlu1 %v5530_v22, %s4805_s30 }
 0x140   : > { %v5610_v61 = vpop.f32.mrf.mxu0  ;;  %v1157_v19 = vadd.f32 %v1125_v41, %v961_v0  ;;  %v931_v56 = vmul.f32 %v5180_v44, %v867_v11 }
 0x142   : > { %v5615_v59 = vpop.f32.mrf.mxu0  ;;  %v1568_v2 = vadd.f32 %v5530_v22, %v1157_v19 }
 0x143   : > { %6729 = vst [vmem:[#allocation26_spill] sm:$0xff] %v5615_v59  ;;  %v871_v18 = vpop.permute.xlu1 %870  ;;  %2313 = vrot.lane.b32.xlu1 %v5560_v53, %s4805_s30 }
 0x144   : > { %v5621_v17 = vpop.f32.mrf.mxu0  ;;  %v932_v31 = vmul.f32 %v5180_v44, %v871_v18  ;;  %v5651_v22 = vadd.f32 %v5220_v37, %v1568_v2 }
 0x145   : > { %2323 = vrot.lane.b32.xlu0 %v5621_v17, %s4805_s30 }
 0x146   : > { %v5629_v26 = vpop.f32.mrf.mxu0  ;;  %v964_v59 = vadd.f32 %v932_v31, %v768_v32  ;;  %v767_v31 = vadd.f32 %v5191_v48, %v729_v34  ;;  %v1636_v34 = vmax.f32 %v5651_v22, 0.0 }
 0x147   : > { %6730 = vst [vmem:[#allocation27_spill] sm:$0xff] %v5629_v26  ;;  %2317 = vrot.lane.b32.xlu1 %v5591_v40, %s4805_s30 }
 0x148   : > { %v5636_v18 = vpop.f32.mrf.mxu0  ;;  %v1059_v21 = vpop.permute.xlu1 %1058  ;;  %v1160_v41 = vadd.f32 %v1128_v58, %v964_v59  ;;  %v963_v50 = vadd.f32 %v931_v56, %v767_v31 }
 0x149   : > { %v1126_v0 = vmul.f32 %v5195_v9, %v1059_v21 }
 0x14a   : > { %v5641_v26 = vpop.f32.mrf.mxu0  ;;  %v1571_v58 = vadd.f32 %v5573_v62, %v1160_v41 }
 0x14b   : > { %6731 = vst [vmem:[#allocation28_spill] sm:$0xff] %v5641_v26  ;;  %v1158_v32 = vadd.f32 %v1126_v0, %v962_v29  ;;  %2321 = vrot.lane.b32.xlu1 %v5610_v61, %s4805_s30 }
 0x14c   : > { %v5646_v39 = vpop.f32.mrf.mxu0  ;;  %v1063_v27 = vpop.permute.xlu1 %1062 }
 0x14d   : > { %2327 = vrot.lane.b32.xlu0 %v5646_v39, %s4805_s30  ;;  %v1569_v21 = vadd.f32 %v5544_v54, %v1158_v32  ;;  %v1127_v59 = vmul.f32 %v5195_v9, %v1063_v27  ;;  %v5668_v54 = vadd.f32 %v5220_v37, %v1571_v58  ;;  %v732_v58 = vmul.f32 %v5176_v35, %v5361_v33 }
 0x14e   : > { %v5656_v11 = vpop.f32.mrf.mxu0 }
 0x14f   : > { %6732 = vst [vmem:[#allocation29_spill] sm:$0xff] %v5656_v11  ;;  %v5659_v4 = vadd.f32 %v5220_v37, %v1569_v21  ;;  %v1159_v8 = vadd.f32 %v1127_v59, %v963_v50  ;;  %2325 = vrot.lane.b32.xlu1 %v5636_v18, %s4805_s30  ;;  %v1639_v31 = vmax.f32 %v5668_v54, 0.0 }
 0x150   : > { %v5663_v19 = vpop.f32.mrf.mxu0 }
 0x151   : > { %v1637_v56 = vmax.f32 %v5659_v4, 0.0  ;;  %v1570_v27 = vadd.f32 %v5560_v53, %v1159_v8  ;;  %v666_v62 = vpop.permute.xlu1 %665  ;;  %v770_v8 = vadd.f32 %v5191_v48, %v732_v58 }
 0x152   : > { %v5671_v29 = vpop.f32.mrf.mxu0 }
 0x153   : > { %6733 = vst [vmem:[#allocation30_spill] sm:$0xff] %v5671_v29  ;;  %v5674_v2 = vadd.f32 %v5220_v37, %v1570_v27  ;;  %v1658_v0 = vpack.c.bf16 %v1637_v56, %v1636_v34  ;;  %2329 = vrot.lane.b32.xlu1 %v5663_v19, %s4805_s30  ;;  %v731_v56 = vmul.f32 %v5176_v35, %v666_v62  ;;  %v875_v27 = vpop.permute.xlu0 %874 }
 0x154   : > { %v5678_v41 = vpop.f32.mrf.mxu0 }
 0x155   : > { %v1638_v32 = vmax.f32 %v5674_v2, 0.0  ;;  %v676_v50 = vpop.permute.xlu1 %675  ;;  %4463 = vmatprep.mubr.msk.bf16.mxu1 %vm1701_vm1, %v1658_v0  ;;  %2331 = vrot.lane.b32.xlu0 %v5678_v41, %s4805_s30  ;;  %v1130_v0 = vmul.f32 %v5195_v9, %v5171_v42 }
 0x156   : > { %v733_v33 = vmul.f32 %v5176_v35, %v676_v50 }
 0x157   : > { %v1659_v53 = vpack.c.bf16 %v1639_v31, %v1638_v32  ;;  %v769_v31 = vadd.f32 %v5191_v48, %v731_v56  ;;  %v933_v32 = vmul.f32 %v5180_v44, %v875_v27 }
 0x158   : > { %v771_v42 = vadd.f32 %v5191_v48, %v733_v33 }
 0x159   : > { %v681_v21 = vpop.permute.xlu1 %680  ;;  %4464 = vmatmul.mubr.msk.bf16.gmra.mxu1 %vm1701_vm1, %v1659_v53  ;;  %v965_v55 = vadd.f32 %v933_v32, %v769_v31 }
 0x15a   : > { %v734_v26 = vmul.f32 %v5176_v35, %v681_v21 }
 0x15c   : > { %v772_v56 = vadd.f32 %v5191_v48, %v734_v26 }
 0x15e   : > { %v879_v59 = vpop.permute.xlu1 %878 }
 0x15f   : > { %v934_v34 = vmul.f32 %v5180_v44, %v879_v59  ;;  %v887_v59 = vpop.permute.xlu0 %886 }
 0x161   : > { %v966_v11 = vadd.f32 %v934_v34, %v770_v8 }
 0x162   : > { %v883_v29 = vpop.permute.xlu1 %882 }
 0x163   : > { %v1162_v53 = vadd.f32 %v1130_v0, %v966_v11  ;;  %v935_v62 = vmul.f32 %v5180_v44, %v883_v29  ;;  %v936_v11 = vmul.f32 %v5180_v44, %v887_v59 }
 0x165   : > { %v1573_v8 = vadd.f32 %v5600_v36, %v1162_v53  ;;  %v967_v50 = vadd.f32 %v935_v62, %v771_v42  ;;  %v968_v32 = vadd.f32 %v936_v11, %v772_v56  ;;  %v895_v42 = vpop.permute.xlu0 %894 }
 0x167   : > { %v1071_v58 = vpop.permute.xlu1 %1070  ;;  %v5704_v21 = vadd.f32 %v5220_v37, %v1573_v8 }
 0x168   : > { %v1129_v34 = vmul.f32 %v5195_v9, %v1071_v58 }
 0x16a   : > { %v1161_v15 = vadd.f32 %v1129_v34, %v965_v55  ;;  %v1641_v55 = vmax.f32 %v5704_v21, 0.0 }
 0x16b   : > { %v1079_v27 = vpop.permute.xlu1 %1078 }
 0x16c   : > { %v1572_v0 = vadd.f32 %v5591_v40, %v1161_v15  ;;  %v1131_v29 = vmul.f32 %v5195_v9, %v1079_v27  ;;  %v735_v27 = vmul.f32 %v5176_v35, %v5387_v28 }
 0x16e   : > { %v5709_v36 = vadd.f32 %v5220_v37, %v1572_v0  ;;  %v1163_v31 = vadd.f32 %v1131_v29, %v967_v50  ;;  %v1087_v0 = vpop.permute.xlu0 %1086  ;;  %v773_v29 = vadd.f32 %v5191_v48, %v735_v27 }
 0x16f   : > { %v1083_v53 = vpop.permute.xlu1 %1082 }
 0x170   : > { %v1640_v26 = vmax.f32 %v5709_v36, 0.0  ;;  %v1574_v33 = vadd.f32 %v5610_v61, %v1163_v31  ;;  %v1132_v58 = vmul.f32 %v5195_v9, %v1083_v53 }
 0x172   : > { %v1164_v59 = vadd.f32 %v1132_v58, %v968_v32  ;;  %v1660_v62 = vpack.c.bf16 %v1641_v55, %v1640_v26  ;;  %v5716_v15 = vadd.f32 %v5220_v37, %v1574_v33  ;;  %v1133_v32 = vmul.f32 %v5195_v9, %v1087_v0 }
 0x173   : > { %v738_v26 = vmul.f32 %v5176_v35, %v5410_v10  ;;  %v938_v10 = vmul.f32 %v5180_v44, %v895_v42 }
 0x174   : > { %v1575_v40 = vadd.f32 %v5621_v17, %v1164_v59  ;;  %v691_v8 = vpop.permute.xlu1 %690  ;;  %4467 = vmatprep.mubr.msk.bf16.mxu1 %vm1701_vm1, %v1660_v62  ;;  %v1642_v56 = vmax.f32 %v5716_v15, 0.0 }
 0x175   : > { %v736_v58 = vmul.f32 %v5176_v35, %v691_v8  ;;  %v776_v62 = vadd.f32 %v5191_v48, %v738_v26 }
 0x176   : > { %v5721_v34 = vadd.f32 %v5220_v37, %v1575_v40 }
 0x178   : > { %v1643_v61 = vmax.f32 %v5721_v34, 0.0  ;;  %v696_v11 = vpop.permute.xlu1 %695 }
 0x17a   : > { %v1661_v50 = vpack.c.bf16 %v1643_v61, %v1642_v56  ;;  %v1099_v56 = vpop.permute.xlu0 %1098  ;;  %v774_v61 = vadd.f32 %v5191_v48, %v736_v58 }
 0x17b   : > { %v1136_v27 = vmul.f32 %v5195_v9, %v1099_v56 }
 0x17c   : > { %4468 = vmatmul.mubr.msk.bf16.gmra.mxu1 %vm1701_vm1, %v1661_v50  ;;  %v737_v50 = vmul.f32 %v5176_v35, %v696_v11 }
 0x17d   : > { %v891_v17 = vpop.permute.xlu1 %890 }
 0x17e   : > { %v937_v31 = vmul.f32 %v5180_v44, %v891_v17 }
 0x180   : > { %v969_v53 = vadd.f32 %v937_v31, %v773_v29 }
 0x181   : > { %v899_v55 = vpop.permute.xlu1 %898 }
 0x182   : > { %v1165_v33 = vadd.f32 %v1133_v32, %v969_v53  ;;  %v939_v17 = vmul.f32 %v5180_v44, %v899_v55  ;;  %v775_v32 = vadd.f32 %v5191_v48, %v737_v50  ;;  %v5769_v50 = vld [vmem:[%s6692_s7] ss:$0 sm:$0xff] }
 0x184   : > { %v1576_v28 = vadd.f32 %v5636_v18, %v1165_v33  ;;  %v970_v18 = vadd.f32 %v938_v10, %v774_v61  ;;  %v971_v26 = vadd.f32 %v939_v17, %v775_v32 }
 0x185   : > { %v903_v59 = vpop.permute.xlu1 %902 }
 0x186   : > { %v940_v40 = vmul.f32 %v5180_v44, %v903_v59  ;;  %v5745_v58 = vadd.f32 %v5220_v37, %v1576_v28 }
 0x188   : > { %v972_v0 = vadd.f32 %v940_v40, %v776_v62  ;;  %v1644_v59 = vmax.f32 %v5745_v58, 0.0 }
 0x18a   : > { %v1091_v8 = vpop.permute.xlu1 %1090  ;;  %v1168_v29 = vadd.f32 %v1136_v27, %v972_v0 }
 0x18b   : > { %v1134_v31 = vmul.f32 %v5195_v9, %v1091_v8 }
 0x18c   : > { %v1579_v11 = vadd.f32 %v5678_v41, %v1168_v29 }
 0x18d   : > { %v1166_v53 = vadd.f32 %v1134_v31, %v970_v18 }
 0x18e   : > { %v1095_v33 = vpop.permute.xlu1 %1094  ;;  %v5756_v62 = vadd.f32 %v5220_v37, %v1579_v11 }
 0x18f   : > { %v1577_v35 = vadd.f32 %v5646_v39, %v1166_v53  ;;  %v1135_v42 = vmul.f32 %v5195_v9, %v1095_v33 }
 0x190   : > { %v1647_v41 = vmax.f32 %v5756_v62, 0.0 }
 0x191   : > { %v5751_v44 = vadd.f32 %v5220_v37, %v1577_v35  ;;  %v1167_v55 = vadd.f32 %v1135_v42, %v971_v26 }
 0x193   : > { %v1645_v48 = vmax.f32 %v5751_v44, 0.0  ;;  %v1578_v28 = vadd.f32 %v5663_v19, %v1167_v55 }
 0x195   : > { %v5760_v40 = vadd.f32 %v5220_v37, %v1578_v28  ;;  %v1662_v39 = vpack.c.bf16 %v1645_v48, %v1644_v59 }
 0x197   : > { %v1646_v9 = vmax.f32 %v5760_v40, 0.0  ;;  %4471 = vmatprep.mubr.msk.bf16.mxu1 %vm1701_vm1, %v1662_v39 }
 0x199   : > { %v1663_v56 = vpack.c.bf16 %v1647_v41, %v1646_v9 }
 0x19b   : > { %4472 = vmatmul.mubr.msk.bf16.gmra.mxu1 %vm1701_vm1, %v1663_v56 }
 0x1ac   : > { %v4445_v61 = vpop.f32.mrf.mxu1 }
 0x1ad   : > { %v1793_v10 = vadd.f32 %v4445_v61, %v5769_v50 }
 0x1ae   : > { %v1784_v27 = vpop.f32.mrf.mxu1 }
 0x1af   : > { %v1785_v37 = vadd.f32 %v5769_v50, %v1784_v27  ;;  %v1913_v32 = vmax.f32 %v1793_v10, 0.0 }
 0x1b0   : > { %v4446_v19 = vpop.f32.mrf.mxu1 }
 0x1b1   : > { %v1796_v0 = vadd.f32 %v4446_v19, %v5769_v50  ;;  %v1911_v18 = vmax.f32 %v1785_v37, 0.0 }
 0x1b2   : > { %v1787_v17 = vpop.f32.mrf.mxu1 }
 0x1b3   : > { %v1788_v8 = vadd.f32 %v5769_v50, %v1787_v17  ;;  %v1914_v29 = vmax.f32 %v1796_v0, 0.0 }
 0x1b5   : > { %v1912_v31 = vmax.f32 %v1788_v8, 0.0  ;;  %v1944_v26 = vpack.c.bf16 %v1914_v29, %v1913_v32 }
 0x1b7   : > { %v1943_v53 = vpack.c.bf16 %v1912_v31, %v1911_v18 }
 0x1b9   : > { %4483 = vmatprep.mubr.msk.bf16.mxu1 %vm1701_vm1, %v1943_v53 }
 0x1ba   : > { %4484 = vmatmul.mubr.msk.bf16.vlgmr.msra.gmra.mxu1 %vm1701_vm1, %v1944_v26 }
 0x1bc   : > { %v4449_v33 = vpop.f32.mrf.mxu1 }
 0x1bd   : > { %v1809_v59 = vadd.f32 %v4449_v33, %v5769_v50 }
 0x1be   : > { %v1800_v35 = vpop.f32.mrf.mxu1 }
 0x1bf   : > { %v1801_v42 = vadd.f32 %v5769_v50, %v1800_v35  ;;  %v1917_v56 = vmax.f32 %v1809_v59, 0.0 }
 0x1c0   : > { %v4450_v11 = vpop.f32.mrf.mxu1 }
 0x1c1   : > { %v1812_v55 = vadd.f32 %v4450_v11, %v5769_v50  ;;  %v1915_v41 = vmax.f32 %v1801_v42, 0.0 }
 0x1c2   : > { %v1803_v48 = vpop.f32.mrf.mxu1 }
 0x1c3   : > { %v1804_v28 = vadd.f32 %v5769_v50, %v1803_v48  ;;  %v1918_v39 = vmax.f32 %v1812_v55, 0.0 }
 0x1c5   : > { %v1916_v9 = vmax.f32 %v1804_v28, 0.0  ;;  %v1946_v27 = vpack.c.bf16 %v1918_v39, %v1917_v56 }
 0x1c7   : > { %v1945_v61 = vpack.c.bf16 %v1916_v9, %v1915_v41 }
 0x1c9   : > { %4487 = vmatprep.mubr.msk.bf16.mxu1 %vm1701_vm1, %v1945_v61 }
 0x1ca   : > { %4488 = vmatmul.mubr.msk.bf16.gmra.mxu1 %vm1701_vm1, %v1946_v27 }
 0x1cc   : > { %v4453_v19 = vpop.f32.mrf.mxu1 }
 0x1cd   : > { %v1825_v8 = vadd.f32 %v4453_v19, %v5769_v50 }
 0x1ce   : > { %v1816_v37 = vpop.f32.mrf.mxu1 }
 0x1cf   : > { %v1817_v10 = vadd.f32 %v5769_v50, %v1816_v37  ;;  %v1921_v26 = vmax.f32 %v1825_v8, 0.0 }
 0x1d0   : > { %v4454_v0 = vpop.f32.mrf.mxu1 }
 0x1d1   : > { %v1828_v17 = vadd.f32 %v4454_v0, %v5769_v50  ;;  %v1919_v32 = vmax.f32 %v1817_v10, 0.0 }
 0x1d2   : > { %v1819_v29 = vpop.f32.mrf.mxu1 }
 0x1d3   : > { %v1820_v18 = vadd.f32 %v5769_v50, %v1819_v29  ;;  %v1922_v31 = vmax.f32 %v1828_v17, 0.0  ;;  %v4762_v17 = vld [vmem:[%s6691_s6 + $0x38] sm:$0xff]  }
 0x1d4   : > { %4515 = vmatprep.subr.bf16.mxu0 %v4762_v17 }
 0x1d5   : > { %v1920_v53 = vmax.f32 %v1820_v18, 0.0  ;;  %v1948_v35 = vpack.c.bf16 %v1922_v31, %v1921_v26  ;;  %4516 = vmatpush3.bf16.msra.mxu0 %v4762_v17  ;;  %v4763_v26 = vld [vmem:[%s6691_s6 + $0x30] sm:$0xff]  }
 0x1d6   : > { %4517 = vmatprep.subr.bf16.mxu0 %v4763_v26 }
 0x1d7   : > { %v1947_v33 = vpack.c.bf16 %v1920_v53, %v1919_v32 }
 0x1d9   : > { %4491 = vmatprep.mubr.msk.bf16.mxu1 %vm1701_vm1, %v1947_v33  ;;  %4518 = vmatpush3.bf16.msra.mxu0 %v4763_v26 }
 0x1da   : > { %4492 = vmatmul.mubr.msk.bf16.gmra.mxu1 %vm1701_vm1, %v1948_v35 }
 0x1dc   : > { %v4457_v11 = vpop.f32.mrf.mxu1 }
 0x1dd   : > { %v1841_v28 = vadd.f32 %v4457_v11, %v5769_v50 }
 0x1de   : > { %v1832_v42 = vpop.f32.mrf.mxu1 }
 0x1df   : > { %v1833_v59 = vadd.f32 %v5769_v50, %v1832_v42  ;;  %v1925_v27 = vmax.f32 %v1841_v28, 0.0  ;;  %v4765_v28 = vld [vmem:[%s6691_s6 + $0x20] sm:$0xff]  }
 0x1e0   : > { %v4458_v55 = vpop.f32.mrf.mxu1 }
 0x1e1   : > { %v1844_v48 = vadd.f32 %v4458_v55, %v5769_v50  ;;  %v1923_v56 = vmax.f32 %v1833_v59, 0.0  ;;  %v4764_v59 = vld [vmem:[%s6691_s6 + $0x28] sm:$0xff]  }
 0x1e2   : > { %v1835_v39 = vpop.f32.mrf.mxu1  ;;  %4519 = vmatprep.subr.bf16.mxu0 %v4764_v59 }
 0x1e3   : > { %v1836_v41 = vadd.f32 %v5769_v50, %v1835_v39  ;;  %v1926_v9 = vmax.f32 %v1844_v48, 0.0  ;;  %4520 = vmatpush3.bf16.msra.mxu0 %v4764_v59 }
 0x1e4   : > { %4521 = vmatprep.subr.bf16.mxu0 %v4765_v28 }
 0x1e5   : > { %v1924_v61 = vmax.f32 %v1836_v41, 0.0  ;;  %v1950_v37 = vpack.c.bf16 %v1926_v9, %v1925_v27 }
 0x1e7   : > { %v1949_v19 = vpack.c.bf16 %v1924_v61, %v1923_v56  ;;  %4522 = vmatpush3.bf16.msra.mxu0 %v4765_v28 }
 0x1e9   : > { %4495 = vmatprep.mubr.msk.bf16.mxu1 %vm1701_vm1, %v1949_v19 }
 0x1ea   : > { %4496 = vmatmul.mubr.msk.bf16.gmra.mxu1 %vm1701_vm1, %v1950_v37 }
 0x1fa   : > { %v4461_v0 = vpop.f32.mrf.mxu1 }
 0x1fb   : > { %v1857_v31 = vadd.f32 %v4461_v0, %v5769_v50 }
 0x1fc   : > { %v1848_v10 = vpop.f32.mrf.mxu1 }
 0x1fd   : > { %v1849_v29 = vadd.f32 %v5769_v50, %v1848_v10  ;;  %v1929_v42 = vmax.f32 %v1857_v31, 0.0 }
 0x1fe   : > { %v4462_v8 = vpop.f32.mrf.mxu1 }
 0x1ff   : > { %v1860_v18 = vadd.f32 %v4462_v8, %v5769_v50  ;;  %v1927_v35 = vmax.f32 %v1849_v29, 0.0 }
 0x200   : > { %v1851_v32 = vpop.f32.mrf.mxu1 }
 0x201   : > { %v1852_v53 = vadd.f32 %v5769_v50, %v1851_v32  ;;  %v1930_v33 = vmax.f32 %v1860_v18, 0.0 }
 0x203   : > { %v1928_v11 = vmax.f32 %v1852_v53, 0.0  ;;  %v1952_v48 = vpack.c.bf16 %v1930_v33, %v1929_v42 }
 0x205   : > { %v1951_v55 = vpack.c.bf16 %v1928_v11, %v1927_v35 }
 0x207   : > { %4499 = vmatprep.mubr.msk.bf16.mxu1 %vm1701_vm1, %v1951_v55 }
 0x208   : > { %4500 = vmatmul.mubr.msk.bf16.gmra.mxu1 %vm1701_vm1, %v1952_v48 }
 0x219   : > { %v4465_v39 = vpop.f32.mrf.mxu1 }
 0x21a   : > { %v1873_v27 = vadd.f32 %v4465_v39, %v5769_v50 }
 0x21b   : > { %v1864_v41 = vpop.f32.mrf.mxu1 }
 0x21c   : > { %v1865_v56 = vadd.f32 %v5769_v50, %v1864_v41  ;;  %v1933_v8 = vmax.f32 %v1873_v27, 0.0 }
 0x21d   : > { %v4466_v9 = vpop.f32.mrf.mxu1 }
 0x21e   : > { %v1876_v61 = vadd.f32 %v4466_v9, %v5769_v50  ;;  %v1931_v10 = vmax.f32 %v1865_v56, 0.0 }
 0x21f   : > { %v1867_v19 = vpop.f32.mrf.mxu1 }
 0x220   : > { %v1868_v37 = vadd.f32 %v5769_v50, %v1867_v19  ;;  %v1934_v0 = vmax.f32 %v1876_v61, 0.0 }
 0x222   : > { %v1932_v17 = vmax.f32 %v1868_v37, 0.0  ;;  %v1954_v18 = vpack.c.bf16 %v1934_v0, %v1933_v8 }
 0x224   : > { %v1953_v29 = vpack.c.bf16 %v1932_v17, %v1931_v10 }
 0x226   : > { %4503 = vmatprep.mubr.msk.bf16.mxu1 %vm1701_vm1, %v1953_v29 }
 0x227   : > { %4504 = vmatmul.mubr.msk.bf16.gmra.mxu1 %vm1701_vm1, %v1954_v18 }
 0x23c   : > { %v4469_v31 = vpop.f32.mrf.mxu1 }
 0x23d   : > { %v1889_v35 = vadd.f32 %v4469_v31, %v5769_v50 }
 0x23e   : > { %v1880_v32 = vpop.f32.mrf.mxu1 }
 0x23f   : > { %v1881_v26 = vadd.f32 %v5769_v50, %v1880_v32  ;;  %v1937_v28 = vmax.f32 %v1889_v35, 0.0 }
 0x240   : > { %v4470_v53 = vpop.f32.mrf.mxu1 }
 0x241   : > { %v1892_v33 = vadd.f32 %v4470_v53, %v5769_v50  ;;  %v1935_v59 = vmax.f32 %v1881_v26, 0.0  ;;  %v5834_v53 = vld [vmem:[%s6694_s9] ss:$0 sm:$0xff] }
 0x242   : > { %v1883_v11 = vpop.f32.mrf.mxu1 }
 0x243   : > { %v1884_v42 = vadd.f32 %v5769_v50, %v1883_v11  ;;  %v1938_v55 = vmax.f32 %v1892_v33, 0.0  ;;  %v2270_v33 = vpop.permute.xlu1 %2269 }
 0x245   : > { %v1936_v48 = vmax.f32 %v1884_v42, 0.0  ;;  %v1956_v41 = vpack.c.bf16 %v1938_v55, %v1937_v28  ;;  %v2272_v42 = vpop.permute.xlu0 %2271 }
 0x247   : > { %v1955_v39 = vpack.c.bf16 %v1936_v48, %v1935_v59 }
 0x249   : > { %4507 = vmatprep.mubr.msk.bf16.mxu1 %vm1701_vm1, %v1955_v39 }
 0x24a   : > { %4508 = vmatmul.mubr.msk.bf16.gmra.mxu1 %vm1701_vm1, %v1956_v41  ;;  %v2274_v41 = vpop.permute.xlu1 %2273 }
 0x25b   : > { %v4473_v9 = vpop.f32.mrf.mxu1 }
 0x25c   : > { %v1905_v37 = vadd.f32 %v4473_v9, %v5769_v50 }
 0x25d   : > { %v1896_v56 = vpop.f32.mrf.mxu1 }
 0x25e   : > { %v1897_v27 = vadd.f32 %v5769_v50, %v1896_v56  ;;  %v1941_v18 = vmax.f32 %v1905_v37, 0.0 }
 0x25f   : > { %v4474_v61 = vpop.f32.mrf.mxu1 }
 0x260   : > { %v1908_v19 = vadd.f32 %v4474_v61, %v5769_v50  ;;  %v1939_v8 = vmax.f32 %v1897_v27, 0.0  ;;  %v2276_v27 = vpop.permute.xlu0 %2275 }
 0x261   : > { %v1899_v0 = vpop.f32.mrf.mxu1 }
 0x262   : > { %v1900_v10 = vadd.f32 %v5769_v50, %v1899_v0  ;;  %v1942_v17 = vmax.f32 %v1908_v19, 0.0 }
 0x264   : > { %v1940_v29 = vmax.f32 %v1900_v10, 0.0  ;;  %v1958_v32 = vpack.c.bf16 %v1942_v17, %v1941_v18 }
 0x266   : > { %v1957_v31 = vpack.c.bf16 %v1940_v29, %v1939_v8 }
 0x268   : > { %4511 = vmatprep.mubr.msk.bf16.mxu1 %vm1701_vm1, %v1957_v31 }
 0x269   : > { %4512 = vmatmul.mubr.msk.bf16.gmra.mxu1 %vm1701_vm1, %v1958_v32 }
 0x27a   : > { %v4485_v26 = vpop.f32.mrf.mxu1 }
 0x27b   : > { %v2087_v35 = vadd.f32 %v4485_v26, %v5834_v53 }
 0x27c   : > { %v2078_v50 = vpop.f32.mrf.mxu1 }
 0x27d   : > { %v2079_v11 = vadd.f32 %v5834_v53, %v2078_v50  ;;  %v2207_v55 = vadd.f32 %v2087_v35, %v5275_v24  ;;  %v2278_v50 = vpop.permute.xlu1 %2277 }
 0x27e   : > { %v4486_v59 = vpop.f32.mrf.mxu1 }
 0x27f   : > { %v2205_v48 = vadd.f32 %v2079_v11, %v5238_v57  ;;  %v2090_v28 = vadd.f32 %v4486_v59, %v5834_v53  ;;  %v2367_v19 = vadd.f32 %v2274_v41, %v2207_v55 }
 0x280   : > { %v2081_v39 = vpop.f32.mrf.mxu1 }
 0x281   : > { %v2365_v9 = vadd.f32 %v2270_v33, %v2205_v48  ;;  %v2208_v56 = vadd.f32 %v2090_v28, %v5289_v3  ;;  %v2082_v61 = vadd.f32 %v5834_v53, %v2081_v39  ;;  %v5851_v17 = vadd.f32 %v4935_v14, %v2367_v19  ;;  %v2282_v41 = vpop.permute.xlu1 %2281 }
 0x283   : > { %v2368_v37 = vadd.f32 %v2276_v27, %v2208_v56  ;;  %v2206_v0 = vadd.f32 %v2082_v61, %v5249_v63  ;;  %v5845_v10 = vadd.f32 %v4935_v14, %v2365_v9  ;;  %v2435_v63 = vmax.f32 %v5851_v17, 0.0 }
 0x285   : > { %v5848_v24 = vadd.f32 %v4935_v14, %v2368_v37  ;;  %v2366_v57 = vadd.f32 %v2272_v42, %v2206_v0  ;;  %v2433_v29 = vmax.f32 %v5845_v10, 0.0  ;;  %v2280_v42 = vpop.permute.xlu0 %2279 }
 0x287   : > { %v5854_v8 = vadd.f32 %v4935_v14, %v2366_v57  ;;  %v2436_v3 = vmax.f32 %v5848_v24, 0.0 }
 0x289   : > { %v2434_v18 = vmax.f32 %v5854_v8, 0.0  ;;  %v2466_v33 = vpack.c.bf16 %v2436_v3, %v2435_v63  ;;  %v2284_v27 = vpop.permute.xlu0 %2283 }
 0x28a   : > { %v4489_v31 = vpop.f32.mrf.mxu1 }
 0x28b   : > { %v2103_v32 = vadd.f32 %v4489_v31, %v5834_v53  ;;  %v2465_v26 = vpack.c.bf16 %v2434_v18, %v2433_v29 }
 0x28c   : > { %v2094_v35 = vpop.f32.mrf.mxu1 }
 0x28d   : > { %v2095_v11 = vadd.f32 %v5834_v53, %v2094_v35  ;;  %4523 = vmatprep.mubr.msk.bf16.mxu0 %vm1701_vm1, %v2465_v26  ;;  %v2211_v55 = vadd.f32 %v2103_v32, %v5351_v51 }
 0x28e   : > { %v4490_v59 = vpop.f32.mrf.mxu1  ;;  %4524 = vmatmul.mubr.msk.bf16.vlgmr.msra.gmra.mxu0 %vm1701_vm1, %v2466_v33 }
 0x28f   : > { %v2209_v48 = vadd.f32 %v2095_v11, %v5317_v46  ;;  %v2106_v28 = vadd.f32 %v4490_v59, %v5834_v53  ;;  %v2371_v19 = vadd.f32 %v2282_v41, %v2211_v55 }
 0x290   : > { %v2097_v39 = vpop.f32.mrf.mxu1 }
 0x291   : > { %v2369_v9 = vadd.f32 %v2278_v50, %v2209_v48  ;;  %v2212_v56 = vadd.f32 %v2106_v28, %v5367_v12  ;;  %v2098_v61 = vadd.f32 %v5834_v53, %v2097_v39  ;;  %v5877_v3 = vadd.f32 %v4935_v14, %v2371_v19  ;;  %v2286_v50 = vpop.permute.xlu1 %2285 }
 0x293   : > { %v2372_v37 = vadd.f32 %v2284_v27, %v2212_v56  ;;  %v2210_v0 = vadd.f32 %v2098_v61, %v5331_v49  ;;  %v5871_v51 = vadd.f32 %v4935_v14, %v2369_v9  ;;  %v2439_v49 = vmax.f32 %v5877_v3, 0.0 }
 0x295   : > { %v5874_v57 = vadd.f32 %v4935_v14, %v2372_v37  ;;  %v2370_v46 = vadd.f32 %v2280_v42, %v2210_v0  ;;  %v2437_v18 = vmax.f32 %v5871_v51, 0.0  ;;  %v2288_v42 = vpop.permute.xlu0 %2287  ;;  %v2290_v41 = vpop.permute.xlu1 %2289 }
 0x297   : > { %v5880_v29 = vadd.f32 %v4935_v14, %v2370_v46  ;;  %v2440_v12 = vmax.f32 %v5874_v57, 0.0 }
 0x299   : > { %v2438_v63 = vmax.f32 %v5880_v29, 0.0  ;;  %v2468_v35 = vpack.c.bf16 %v2440_v12, %v2439_v49  ;;  %v2292_v27 = vpop.permute.xlu0 %2291 }
 0x29a   : > { %v4493_v31 = vpop.f32.mrf.mxu1 }
 0x29b   : > { %v2119_v32 = vadd.f32 %v4493_v31, %v5834_v53  ;;  %v2467_v26 = vpack.c.bf16 %v2438_v63, %v2437_v18 }
 0x29c   : > { %v2110_v33 = vpop.f32.mrf.mxu1 }
 0x29d   : > { %v2111_v11 = vadd.f32 %v5834_v53, %v2110_v33  ;;  %4527 = vmatprep.mubr.msk.bf16.mxu0 %vm1701_vm1, %v2467_v26  ;;  %v2215_v55 = vadd.f32 %v2119_v32, %v5426_v6 }
 0x29e   : > { %v4494_v59 = vpop.f32.mrf.mxu1  ;;  %4528 = vmatmul.mubr.msk.bf16.gmra.mxu0 %vm1701_vm1, %v2468_v35 }
 0x29f   : > { %v2213_v48 = vadd.f32 %v2111_v11, %v5396_v7  ;;  %v2122_v28 = vadd.f32 %v4494_v59, %v5834_v53  ;;  %v2375_v19 = vadd.f32 %v2290_v41, %v2215_v55 }
 0x2a0   : > { %v2113_v39 = vpop.f32.mrf.mxu1 }
 0x2a1   : > { %v2373_v9 = vadd.f32 %v2286_v50, %v2213_v48  ;;  %v2216_v56 = vadd.f32 %v2122_v28, %v5438_v16  ;;  %v2114_v61 = vadd.f32 %v5834_v53, %v2113_v39  ;;  %v5903_v12 = vadd.f32 %v4935_v14, %v2375_v19  ;;  %v2294_v50 = vpop.permute.xlu1 %2293 }
 0x2a3   : > { %v2376_v37 = vadd.f32 %v2292_v27, %v2216_v56  ;;  %v2214_v0 = vadd.f32 %v2114_v61, %v5408_v25  ;;  %v5897_v6 = vadd.f32 %v4935_v14, %v2373_v9  ;;  %v2443_v25 = vmax.f32 %v5903_v12, 0.0 }
 0x2a5   : > { %v5900_v46 = vadd.f32 %v4935_v14, %v2376_v37  ;;  %v2374_v7 = vadd.f32 %v2288_v42, %v2214_v0  ;;  %v2441_v63 = vmax.f32 %v5897_v6, 0.0  ;;  %v2296_v42 = vpop.permute.xlu0 %2295  ;;  %v2298_v41 = vpop.permute.xlu1 %2297 }
 0x2a7   : > { %v5906_v18 = vadd.f32 %v4935_v14, %v2374_v7  ;;  %v2444_v16 = vmax.f32 %v5900_v46, 0.0 }
 0x2a9   : > { %v2442_v49 = vmax.f32 %v5906_v18, 0.0  ;;  %v2470_v35 = vpack.c.bf16 %v2444_v16, %v2443_v25  ;;  %v2300_v27 = vpop.permute.xlu0 %2299 }
 0x2aa   : > { %v4497_v31 = vpop.f32.mrf.mxu1 }
 0x2ab   : > { %v2135_v32 = vadd.f32 %v4497_v31, %v5834_v53  ;;  %v2469_v26 = vpack.c.bf16 %v2442_v49, %v2441_v63 }
 0x2ac   : > { %v2126_v33 = vpop.f32.mrf.mxu1 }
 0x2ad   : > { %v2127_v11 = vadd.f32 %v5834_v53, %v2126_v33  ;;  %4531 = vmatprep.mubr.msk.bf16.mxu0 %vm1701_vm1, %v2469_v26  ;;  %v2219_v55 = vadd.f32 %v2135_v32, %v5478_v60  ;;  %v4766_v26 = vld [vmem:[%s6693_s8 + $0x38] sm:$0xff]  }
 0x2ae   : > { %v4498_v59 = vpop.f32.mrf.mxu1  ;;  %4532 = vmatmul.mubr.msk.bf16.gmra.mxu0 %vm1701_vm1, %v2470_v35  ;;  %4555 = vmatprep.subr.bf16.mxu1 %v4766_v26 }
 0x2af   : > { %v2217_v48 = vadd.f32 %v2127_v11, %v5456_v30  ;;  %v2138_v28 = vadd.f32 %v4498_v59, %v5834_v53  ;;  %v2379_v19 = vadd.f32 %v2298_v41, %v2219_v55  ;;  %4556 = vmatpush3.bf16.msra.mxu1 %v4766_v26  ;;  %v2302_v11 = vpop.permute.xlu1 %2301  ;;  %v2304_v55 = vpop.permute.xlu0 %2303  ;;  %v4769_v26 = vld [vmem:[%s6693_s8 + $0x20] sm:$0xff]  }
 0x2b0   : > { %v2129_v39 = vpop.f32.mrf.mxu1 }
 0x2b1   : > { %v2377_v9 = vadd.f32 %v2294_v50, %v2217_v48  ;;  %v2220_v56 = vadd.f32 %v2138_v28, %v5485_v38  ;;  %v2130_v61 = vadd.f32 %v5834_v53, %v2129_v39  ;;  %v5929_v16 = vadd.f32 %v4935_v14, %v2379_v19  ;;  %v4767_v19 = vld [vmem:[%s6693_s8 + $0x30] sm:$0xff]  }
 0x2b2   : > { %4557 = vmatprep.subr.bf16.mxu1 %v4767_v19 }
 0x2b3   : > { %v2380_v37 = vadd.f32 %v2300_v27, %v2220_v56  ;;  %v2218_v0 = vadd.f32 %v2130_v61, %v5465_v23  ;;  %v5923_v60 = vadd.f32 %v4935_v14, %v2377_v9  ;;  %v2447_v23 = vmax.f32 %v5929_v16, 0.0  ;;  %v2306_v9 = vpop.permute.xlu1 %2305  ;;  %4558 = vmatpush3.bf16.msra.mxu1 %v4767_v19 }
 0x2b5   : > { %v5926_v7 = vadd.f32 %v4935_v14, %v2380_v37  ;;  %v2378_v30 = vadd.f32 %v2296_v42, %v2218_v0  ;;  %v2445_v49 = vmax.f32 %v5923_v60, 0.0  ;;  %v2308_v37 = vpop.permute.xlu0 %2307 }
 0x2b7   : > { %v5932_v63 = vadd.f32 %v4935_v14, %v2378_v30  ;;  %v2448_v38 = vmax.f32 %v5926_v7, 0.0 }
 0x2b9   : > { %v2446_v25 = vmax.f32 %v5932_v63, 0.0  ;;  %v2472_v32 = vpack.c.bf16 %v2448_v38, %v2447_v23 }
 0x2bb   : > { %v2471_v31 = vpack.c.bf16 %v2446_v25, %v2445_v49  ;;  %v4768_v49 = vld [vmem:[%s6693_s8 + $0x28] sm:$0xff]  }
 0x2bc   : > { %4559 = vmatprep.subr.bf16.mxu1 %v4768_v49 }
 0x2bd   : > { %4535 = vmatprep.mubr.msk.bf16.mxu0 %vm1701_vm1, %v2471_v31  ;;  %4560 = vmatpush3.bf16.msra.mxu1 %v4768_v49 }
 0x2be   : > { %4536 = vmatmul.mubr.msk.bf16.gmra.mxu0 %vm1701_vm1, %v2472_v32  ;;  %4561 = vmatprep.subr.bf16.mxu1 %v4769_v26 }
 0x2c1   : > { %4562 = vmatpush3.bf16.msra.mxu1 %v4769_v26 }
 0x2c8   : > { %v4501_v33 = vpop.f32.mrf.mxu1 }
 0x2c9   : > { %v2151_v35 = vadd.f32 %v4501_v33, %v5834_v53 }
 0x2ca   : > { %v2142_v50 = vpop.f32.mrf.mxu1 }
 0x2cb   : > { %v2143_v42 = vadd.f32 %v5834_v53, %v2142_v50  ;;  %v2223_v59 = vadd.f32 %v2151_v35, %v5570_v13 }
 0x2cc   : > { %v4502_v48 = vpop.f32.mrf.mxu1 }
 0x2cd   : > { %v2221_v28 = vadd.f32 %v2143_v42, %v5547_v43  ;;  %v2154_v39 = vadd.f32 %v4502_v48, %v5834_v53  ;;  %v2383_v0 = vadd.f32 %v2306_v9, %v2223_v59  ;;  %v2310_v59 = vpop.permute.xlu1 %2309 }
 0x2ce   : > { %v2145_v41 = vpop.f32.mrf.mxu1 }
 0x2cf   : > { %v2381_v56 = vadd.f32 %v2302_v11, %v2221_v28  ;;  %v2224_v61 = vadd.f32 %v2154_v39, %v5578_v20  ;;  %v2146_v27 = vadd.f32 %v5834_v53, %v2145_v41  ;;  %v5964_v25 = vadd.f32 %v4935_v14, %v2383_v0  ;;  %v2312_v28 = vpop.permute.xlu0 %2311 }
 0x2d1   : > { %v2384_v30 = vadd.f32 %v2308_v37, %v2224_v61  ;;  %v2222_v13 = vadd.f32 %v2146_v27, %v5538_v45  ;;  %v5955_v43 = vadd.f32 %v4935_v14, %v2381_v56  ;;  %v2451_v33 = vmax.f32 %v5964_v25, 0.0  ;;  %v2314_v27 = vpop.permute.xlu1 %2313 }
 0x2d3   : > { %v5958_v38 = vadd.f32 %v4935_v14, %v2384_v30  ;;  %v2382_v20 = vadd.f32 %v2304_v55, %v2222_v13  ;;  %v2449_v31 = vmax.f32 %v5955_v43, 0.0  ;;  %v2316_v30 = vpop.permute.xlu0 %2315 }
 0x2d5   : > { %v5967_v23 = vadd.f32 %v4935_v14, %v2382_v20  ;;  %v2452_v45 = vmax.f32 %v5958_v38, 0.0 }
 0x2d7   : > { %v2450_v32 = vmax.f32 %v5967_v23, 0.0  ;;  %v2474_v50 = vpack.c.bf16 %v2452_v45, %v2451_v33 }
 0x2d9   : > { %v2473_v35 = vpack.c.bf16 %v2450_v32, %v2449_v31 }
 0x2db   : > { %4539 = vmatprep.mubr.msk.bf16.mxu0 %vm1701_vm1, %v2473_v35 }
 0x2dc   : > { %4540 = vmatmul.mubr.msk.bf16.gmra.mxu0 %vm1701_vm1, %v2474_v50 }
 0x2e7   : > { %v4505_v11 = vpop.f32.mrf.mxu1 }
 0x2e8   : > { %v2167_v42 = vadd.f32 %v4505_v11, %v5834_v53 }
 0x2e9   : > { %v2158_v55 = vpop.f32.mrf.mxu1 }
 0x2ea   : > { %v2159_v48 = vadd.f32 %v5834_v53, %v2158_v55  ;;  %v2227_v39 = vadd.f32 %v2167_v42, %v5674_v2 }
 0x2eb   : > { %v4506_v41 = vpop.f32.mrf.mxu1 }
 0x2ec   : > { %v2225_v9 = vadd.f32 %v2159_v48, %v5651_v22  ;;  %v2170_v56 = vadd.f32 %v4506_v41, %v5834_v53  ;;  %v2387_v13 = vadd.f32 %v2314_v27, %v2227_v39 }
 0x2ed   : > { %v2161_v61 = vpop.f32.mrf.mxu1 }
 0x2ee   : > { %v2385_v19 = vadd.f32 %v2310_v59, %v2225_v9  ;;  %v2228_v37 = vadd.f32 %v2170_v56, %v5668_v54  ;;  %v2162_v0 = vadd.f32 %v5834_v53, %v2161_v61  ;;  %v5993_v31 = vadd.f32 %v4935_v14, %v2387_v13  ;;  %v2318_v59 = vpop.permute.xlu1 %2317 }
 0x2f0   : > { %v2388_v20 = vadd.f32 %v2316_v30, %v2228_v37  ;;  %v2226_v49 = vadd.f32 %v2162_v0, %v5659_v4  ;;  %v5987_v45 = vadd.f32 %v4935_v14, %v2385_v19  ;;  %v2455_v4 = vmax.f32 %v5993_v31, 0.0 }
 0x2f2   : > { %v5990_v2 = vadd.f32 %v4935_v14, %v2388_v20  ;;  %v2386_v22 = vadd.f32 %v2312_v28, %v2226_v49  ;;  %v2453_v26 = vmax.f32 %v5987_v45, 0.0  ;;  %v2320_v28 = vpop.permute.xlu0 %2319  ;;  %v2322_v27 = vpop.permute.xlu1 %2321 }
 0x2f4   : > { %v5996_v32 = vadd.f32 %v4935_v14, %v2386_v22  ;;  %v2456_v54 = vmax.f32 %v5990_v2, 0.0 }
 0x2f6   : > { %v2454_v33 = vmax.f32 %v5996_v32, 0.0  ;;  %v2476_v50 = vpack.c.bf16 %v2456_v54, %v2455_v4  ;;  %v2324_v30 = vpop.permute.xlu0 %2323 }
 0x2f8   : > { %v2475_v35 = vpack.c.bf16 %v2454_v33, %v2453_v26 }
 0x2fa   : > { %4543 = vmatprep.mubr.msk.bf16.mxu0 %vm1701_vm1, %v2475_v35 }
 0x2fb   : > { %4544 = vmatmul.mubr.msk.bf16.gmra.mxu0 %vm1701_vm1, %v2476_v50 }
 0x30a   : > { %v4509_v11 = vpop.f32.mrf.mxu1 }
 0x30b   : > { %v2183_v42 = vadd.f32 %v4509_v11, %v5834_v53 }
 0x30c   : > { %v2174_v55 = vpop.f32.mrf.mxu1 }
 0x30d   : > { %v2175_v48 = vadd.f32 %v5834_v53, %v2174_v55  ;;  %v2231_v39 = vadd.f32 %v2183_v42, %v5716_v15 }
 0x30e   : > { %v4510_v41 = vpop.f32.mrf.mxu1 }
 0x30f   : > { %v2229_v9 = vadd.f32 %v2175_v48, %v5709_v36  ;;  %v2186_v56 = vadd.f32 %v4510_v41, %v5834_v53  ;;  %v2391_v13 = vadd.f32 %v2322_v27, %v2231_v39 }
 0x310   : > { %v2177_v61 = vpop.f32.mrf.mxu1 }
 0x311   : > { %v2389_v19 = vadd.f32 %v2318_v59, %v2229_v9  ;;  %v2232_v37 = vadd.f32 %v2186_v56, %v5721_v34  ;;  %v2178_v0 = vadd.f32 %v5834_v53, %v2177_v61  ;;  %v6019_v54 = vadd.f32 %v4935_v14, %v2391_v13  ;;  %v2326_v59 = vpop.permute.xlu1 %2325 }
 0x313   : > { %v2392_v20 = vadd.f32 %v2324_v30, %v2232_v37  ;;  %v2230_v49 = vadd.f32 %v2178_v0, %v5704_v21  ;;  %v6013_v22 = vadd.f32 %v4935_v14, %v2389_v19  ;;  %v2459_v21 = vmax.f32 %v6019_v54, 0.0 }
 0x315   : > { %v6016_v15 = vadd.f32 %v4935_v14, %v2392_v20  ;;  %v2390_v36 = vadd.f32 %v2320_v28, %v2230_v49  ;;  %v2457_v33 = vmax.f32 %v6013_v22, 0.0  ;;  %v2328_v28 = vpop.permute.xlu0 %2327  ;;  %v2330_v27 = vpop.permute.xlu1 %2329 }
 0x317   : > { %v6022_v26 = vadd.f32 %v4935_v14, %v2390_v36  ;;  %v2460_v34 = vmax.f32 %v6016_v15, 0.0 }
 0x319   : > { %v2458_v4 = vmax.f32 %v6022_v26, 0.0  ;;  %v2478_v50 = vpack.c.bf16 %v2460_v34, %v2459_v21  ;;  %v2332_v30 = vpop.permute.xlu0 %2331 }
 0x31b   : > { %v2477_v35 = vpack.c.bf16 %v2458_v4, %v2457_v33 }
 0x31d   : > { %4547 = vmatprep.mubr.msk.bf16.mxu0 %vm1701_vm1, %v2477_v35 }
 0x31e   : > { %4548 = vmatmul.mubr.msk.bf16.gmra.mxu0 %vm1701_vm1, %v2478_v50  ;;  %v6056_v50 = vpop.f32.mrf.mxu0 }
 0x329   : > { %v4513_v11 = vpop.f32.mrf.mxu1 }
 0x32a   : > { %v2199_v42 = vadd.f32 %v4513_v11, %v5834_v53 }
 0x32b   : > { %v2190_v55 = vpop.f32.mrf.mxu1 }
 0x32c   : > { %v2191_v48 = vadd.f32 %v5834_v53, %v2190_v55  ;;  %v2235_v39 = vadd.f32 %v2199_v42, %v5760_v40 }
 0x32d   : > { %v4514_v41 = vpop.f32.mrf.mxu1 }
 0x32e   : > { %v2233_v9 = vadd.f32 %v2191_v48, %v5745_v58  ;;  %v2202_v56 = vadd.f32 %v4514_v41, %v5834_v53  ;;  %v2395_v13 = vadd.f32 %v2330_v27, %v2235_v39 }
 0x32f   : > { %v2193_v61 = vpop.f32.mrf.mxu1 }
 0x330   : > { %v2393_v19 = vadd.f32 %v2326_v59, %v2233_v9  ;;  %v2236_v37 = vadd.f32 %v2202_v56, %v5756_v62  ;;  %v2194_v0 = vadd.f32 %v5834_v53, %v2193_v61  ;;  %v6045_v34 = vadd.f32 %v4935_v14, %v2395_v13 }
 0x332   : > { %v2396_v20 = vadd.f32 %v2332_v30, %v2236_v37  ;;  %v2234_v49 = vadd.f32 %v2194_v0, %v5751_v44  ;;  %v6039_v36 = vadd.f32 %v4935_v14, %v2393_v19  ;;  %v2463_v44 = vmax.f32 %v6045_v34, 0.0 }
 0x334   : > { %v6042_v40 = vadd.f32 %v4935_v14, %v2396_v20  ;;  %v2394_v58 = vadd.f32 %v2328_v28, %v2234_v49  ;;  %v2461_v53 = vmax.f32 %v6039_v36, 0.0 }
 0x336   : > { %v6048_v33 = vadd.f32 %v4935_v14, %v2394_v58  ;;  %v2464_v62 = vmax.f32 %v6042_v40, 0.0  ;;  %v6061_v14 = vld [vmem:[%s6692_s7 + $0x1] ss:$0 sm:$0xff] }
 0x338   : > { %v2462_v4 = vmax.f32 %v6048_v33, 0.0  ;;  %v2480_v35 = vpack.c.bf16 %v2464_v62, %v2463_v44 }
 0x33a   : > { %v2479_v21 = vpack.c.bf16 %v2462_v4, %v2461_v53 }
 0x33c   : > { %4551 = vmatprep.mubr.msk.bf16.mxu0 %vm1701_vm1, %v2479_v21 }
 0x33d   : > { %4552 = vmatmul.mubr.msk.bf16.gmra.mxu0 %vm1701_vm1, %v2480_v35 }
 0x34e   : > { %v4525_v11 = vpop.f32.mrf.mxu0 }
 0x34f   : > { %v2610_v28 = vadd.f32 %v4525_v11, %v6061_v14 }
 0x350   : > { %v2601_v42 = vpop.f32.mrf.mxu0 }
 0x351   : > { %v2602_v59 = vadd.f32 %v6061_v14, %v2601_v42  ;;  %v2730_v27 = vmax.f32 %v2610_v28, 0.0 }
 0x352   : > { %v4526_v55 = vpop.f32.mrf.mxu0 }
 0x353   : > { %v2613_v48 = vadd.f32 %v4526_v55, %v6061_v14  ;;  %v2728_v56 = vmax.f32 %v2602_v59, 0.0 }
 0x354   : > { %v2604_v39 = vpop.f32.mrf.mxu0 }
 0x355   : > { %v2605_v41 = vadd.f32 %v6061_v14, %v2604_v39  ;;  %v2731_v9 = vmax.f32 %v2613_v48, 0.0 }
 0x357   : > { %v2729_v61 = vmax.f32 %v2605_v41, 0.0  ;;  %v2761_v37 = vpack.c.bf16 %v2731_v9, %v2730_v27 }
 0x359   : > { %v2760_v19 = vpack.c.bf16 %v2729_v61, %v2728_v56 }
 0x35b   : > { %4563 = vmatprep.mubr.msk.bf16.mxu1 %vm1701_vm1, %v2760_v19 }
 0x35c   : > { %4564 = vmatmul.mubr.msk.bf16.vlgmr.msra.gmra.mxu1 %vm1701_vm1, %v2761_v37 }
 0x35e   : > { %v4529_v0 = vpop.f32.mrf.mxu0 }
 0x35f   : > { %v2626_v58 = vadd.f32 %v4529_v0, %v6061_v14 }
 0x360   : > { %v2617_v30 = vpop.f32.mrf.mxu0 }
 0x361   : > { %v2618_v20 = vadd.f32 %v6061_v14, %v2617_v30  ;;  %v2734_v35 = vmax.f32 %v2626_v58, 0.0 }
 0x362   : > { %v4530_v13 = vpop.f32.mrf.mxu0 }
 0x363   : > { %v2629_v49 = vadd.f32 %v4530_v13, %v6061_v14  ;;  %v2732_v44 = vmax.f32 %v2618_v20, 0.0 }
 0x364   : > { %v2620_v62 = vpop.f32.mrf.mxu0 }
 0x365   : > { %v2621_v53 = vadd.f32 %v6061_v14, %v2620_v62  ;;  %v2735_v4 = vmax.f32 %v2629_v49, 0.0 }
 0x367   : > { %v2733_v21 = vmax.f32 %v2621_v53, 0.0  ;;  %v2763_v42 = vpack.c.bf16 %v2735_v4, %v2734_v35 }
 0x369   : > { %v2762_v11 = vpack.c.bf16 %v2733_v21, %v2732_v44 }
 0x36b   : > { %4567 = vmatprep.mubr.msk.bf16.mxu1 %vm1701_vm1, %v2762_v11 }
 0x36c   : > { %4568 = vmatmul.mubr.msk.bf16.gmra.mxu1 %vm1701_vm1, %v2763_v42 }
 0x36e   : > { %v4533_v55 = vpop.f32.mrf.mxu0 }
 0x36f   : > { %v2642_v41 = vadd.f32 %v4533_v55, %v6061_v14 }
 0x370   : > { %v2633_v59 = vpop.f32.mrf.mxu0 }
 0x371   : > { %v2634_v28 = vadd.f32 %v6061_v14, %v2633_v59  ;;  %v2738_v37 = vmax.f32 %v2642_v41, 0.0 }
 0x372   : > { %v4534_v48 = vpop.f32.mrf.mxu0 }
 0x373   : > { %v2645_v39 = vadd.f32 %v4534_v48, %v6061_v14  ;;  %v2736_v27 = vmax.f32 %v2634_v28, 0.0 }
 0x374   : > { %v2636_v9 = vpop.f32.mrf.mxu0 }
 0x375   : > { %v2637_v56 = vadd.f32 %v6061_v14, %v2636_v9  ;;  %v2739_v61 = vmax.f32 %v2645_v39, 0.0  ;;  %v4770_v39 = vld [vmem:[%s6691_s6 + $0x58] sm:$0xff]  }
 0x376   : > { %4595 = vmatprep.subr.bf16.mxu0 %v4770_v39 }
 0x377   : > { %v2737_v19 = vmax.f32 %v2637_v56, 0.0  ;;  %v2765_v30 = vpack.c.bf16 %v2739_v61, %v2738_v37  ;;  %4596 = vmatpush3.bf16.msra.mxu0 %v4770_v39  ;;  %v4771_v37 = vld [vmem:[%s6691_s6 + $0x50] sm:$0xff]  }
 0x378   : > { %4597 = vmatprep.subr.bf16.mxu0 %v4771_v37 }
 0x379   : > { %v2764_v0 = vpack.c.bf16 %v2737_v19, %v2736_v27 }
 0x37b   : > { %4571 = vmatprep.mubr.msk.bf16.mxu1 %vm1701_vm1, %v2764_v0  ;;  %4598 = vmatpush3.bf16.msra.mxu0 %v4771_v37 }
 0x37c   : > { %4572 = vmatmul.mubr.msk.bf16.gmra.mxu1 %vm1701_vm1, %v2765_v30 }
 0x37e   : > { %v4537_v13 = vpop.f32.mrf.mxu0 }
 0x37f   : > { %v2658_v53 = vadd.f32 %v4537_v13, %v6061_v14 }
 0x380   : > { %v2649_v20 = vpop.f32.mrf.mxu0 }
 0x381   : > { %v2650_v58 = vadd.f32 %v6061_v14, %v2649_v20  ;;  %v2742_v42 = vmax.f32 %v2658_v53, 0.0  ;;  %v4773_v53 = vld [vmem:[%s6691_s6 + $0x40] sm:$0xff]  }
 0x382   : > { %v4538_v49 = vpop.f32.mrf.mxu0 }
 0x383   : > { %v2661_v62 = vadd.f32 %v4538_v49, %v6061_v14  ;;  %v2740_v35 = vmax.f32 %v2650_v58, 0.0  ;;  %v4772_v58 = vld [vmem:[%s6691_s6 + $0x48] sm:$0xff]  }
 0x384   : > { %v2652_v4 = vpop.f32.mrf.mxu0  ;;  %4599 = vmatprep.subr.bf16.mxu0 %v4772_v58 }
 0x385   : > { %v2653_v44 = vadd.f32 %v6061_v14, %v2652_v4  ;;  %v2743_v21 = vmax.f32 %v2661_v62, 0.0  ;;  %4600 = vmatpush3.bf16.msra.mxu0 %v4772_v58 }
 0x386   : > { %4601 = vmatprep.subr.bf16.mxu0 %v4773_v53 }
 0x387   : > { %v2741_v11 = vmax.f32 %v2653_v44, 0.0  ;;  %v2767_v59 = vpack.c.bf16 %v2743_v21, %v2742_v42 }
 0x389   : > { %v2766_v55 = vpack.c.bf16 %v2741_v11, %v2740_v35  ;;  %4602 = vmatpush3.bf16.msra.mxu0 %v4773_v53 }
 0x38b   : > { %4575 = vmatprep.mubr.msk.bf16.mxu1 %vm1701_vm1, %v2766_v55 }
 0x38c   : > { %4576 = vmatmul.mubr.msk.bf16.gmra.mxu1 %vm1701_vm1, %v2767_v59 }
 0x39c   : > { %v4541_v48 = vpop.f32.mrf.mxu0 }
 0x39d   : > { %v2674_v61 = vadd.f32 %v4541_v48, %v6061_v14 }
 0x39e   : > { %v2665_v28 = vpop.f32.mrf.mxu0 }
 0x39f   : > { %v2666_v9 = vadd.f32 %v6061_v14, %v2665_v28  ;;  %v2746_v20 = vmax.f32 %v2674_v61, 0.0 }
 0x3a0   : > { %v4542_v41 = vpop.f32.mrf.mxu0 }
 0x3a1   : > { %v2677_v56 = vadd.f32 %v4542_v41, %v6061_v14  ;;  %v2744_v30 = vmax.f32 %v2666_v9, 0.0 }
 0x3a2   : > { %v2668_v27 = vpop.f32.mrf.mxu0 }
 0x3a3   : > { %v2669_v19 = vadd.f32 %v6061_v14, %v2668_v27  ;;  %v2747_v0 = vmax.f32 %v2677_v56, 0.0 }
 0x3a5   : > { %v2745_v13 = vmax.f32 %v2669_v19, 0.0  ;;  %v2769_v62 = vpack.c.bf16 %v2747_v0, %v2746_v20 }
 0x3a7   : > { %v2768_v49 = vpack.c.bf16 %v2745_v13, %v2744_v30 }
 0x3a9   : > { %4579 = vmatprep.mubr.msk.bf16.mxu1 %vm1701_vm1, %v2768_v49 }
 0x3aa   : > { %4580 = vmatmul.mubr.msk.bf16.gmra.mxu1 %vm1701_vm1, %v2769_v62 }
 0x3bb   : > { %v4545_v4 = vpop.f32.mrf.mxu0 }
 0x3bc   : > { %v2690_v42 = vadd.f32 %v4545_v4, %v6061_v14 }
 0x3bd   : > { %v2681_v44 = vpop.f32.mrf.mxu0 }
 0x3be   : > { %v2682_v35 = vadd.f32 %v6061_v14, %v2681_v44  ;;  %v2750_v41 = vmax.f32 %v2690_v42, 0.0 }
 0x3bf   : > { %v4546_v21 = vpop.f32.mrf.mxu0 }
 0x3c0   : > { %v2693_v11 = vadd.f32 %v4546_v21, %v6061_v14  ;;  %v2748_v28 = vmax.f32 %v2682_v35, 0.0 }
 0x3c1   : > { %v2684_v55 = vpop.f32.mrf.mxu0 }
 0x3c2   : > { %v2685_v59 = vadd.f32 %v6061_v14, %v2684_v55  ;;  %v2751_v48 = vmax.f32 %v2693_v11, 0.0 }
 0x3c4   : > { %v2749_v39 = vmax.f32 %v2685_v59, 0.0  ;;  %v2771_v56 = vpack.c.bf16 %v2751_v48, %v2750_v41 }
 0x3c6   : > { %v2770_v9 = vpack.c.bf16 %v2749_v39, %v2748_v28 }
 0x3c8   : > { %4583 = vmatprep.mubr.msk.bf16.mxu1 %vm1701_vm1, %v2770_v9 }
 0x3c9   : > { %4584 = vmatmul.mubr.msk.bf16.gmra.mxu1 %vm1701_vm1, %v2771_v56 }
 0x3de   : > { %v4549_v61 = vpop.f32.mrf.mxu0 }
 0x3df   : > { %v2706_v30 = vadd.f32 %v4549_v61, %v6061_v14 }
 0x3e0   : > { %v2697_v27 = vpop.f32.mrf.mxu0 }
 0x3e1   : > { %v2698_v37 = vadd.f32 %v6061_v14, %v2697_v27  ;;  %v2754_v53 = vmax.f32 %v2706_v30, 0.0 }
 0x3e2   : > { %v4550_v19 = vpop.f32.mrf.mxu0 }
 0x3e3   : > { %v2709_v0 = vadd.f32 %v4550_v19, %v6061_v14  ;;  %v2752_v58 = vmax.f32 %v2698_v37, 0.0  ;;  %v6126_v19 = vld [vmem:[%s6694_s9 + $0x1] ss:$0 sm:$0xff] }
 0x3e4   : > { %v2700_v13 = vpop.f32.mrf.mxu0 }
 0x3e5   : > { %v2701_v20 = vadd.f32 %v6061_v14, %v2700_v13  ;;  %v2755_v49 = vmax.f32 %v2709_v0, 0.0 }
 0x3e7   : > { %v2753_v62 = vmax.f32 %v2701_v20, 0.0  ;;  %v2773_v44 = vpack.c.bf16 %v2755_v49, %v2754_v53 }
 0x3e9   : > { %v2772_v4 = vpack.c.bf16 %v2753_v62, %v2752_v58 }
 0x3eb   : > { %4587 = vmatprep.mubr.msk.bf16.mxu1 %vm1701_vm1, %v2772_v4 }
 0x3ec   : > { %4588 = vmatmul.mubr.msk.bf16.gmra.mxu1 %vm1701_vm1, %v2773_v44 }
 0x3fd   : > { %v4553_v21 = vpop.f32.mrf.mxu0 }
 0x3fe   : > { %v2722_v59 = vadd.f32 %v4553_v21, %v6061_v14  ;;  %v6734_v21 = vld [vmem:[#allocation5_spill] sm:$0xff] }
 0x3ff   : > { %v2713_v35 = vpop.f32.mrf.mxu0 }
 0x400   : > { %v2714_v42 = vadd.f32 %v6061_v14, %v2713_v35  ;;  %v2758_v56 = vmax.f32 %v2722_v59, 0.0  ;;  %v6736_v59 = vld [vmem:[#allocation3_spill] sm:$0xff] }
 0x401   : > { %v4554_v11 = vpop.f32.mrf.mxu0 }
 0x402   : > { %v2725_v55 = vadd.f32 %v4554_v11, %v6061_v14  ;;  %v2756_v41 = vmax.f32 %v2714_v42, 0.0  ;;  %v6735_v11 = vld [vmem:[#allocation6_spill] sm:$0xff] }
 0x403   : > { %v2716_v48 = vpop.f32.mrf.mxu0 }
 0x404   : > { %v2717_v28 = vadd.f32 %v6061_v14, %v2716_v48  ;;  %v2759_v39 = vmax.f32 %v2725_v55, 0.0  ;;  %v6737_v48 = vld [vmem:[#allocation4_spill] sm:$0xff] }
 0x406   : > { %v2757_v9 = vmax.f32 %v2717_v28, 0.0  ;;  %v2775_v27 = vpack.c.bf16 %v2759_v39, %v2758_v56 }
 0x408   : > { %v2774_v61 = vpack.c.bf16 %v2757_v9, %v2756_v41 }
 0x40a   : > { %4591 = vmatprep.mubr.msk.bf16.mxu1 %vm1701_vm1, %v2774_v61 }
 0x40b   : > { %4592 = vmatmul.mubr.msk.bf16.gmra.mxu1 %vm1701_vm1, %v2775_v27 }
 0x41c   : > { %v4565_v37 = vpop.f32.mrf.mxu1 }
 0x41d   : > { %v2905_v0 = vadd.f32 %v4565_v37, %v6126_v19 }
 0x41e   : > { %v2896_v30 = vpop.f32.mrf.mxu1 }
 0x41f   : > { %v2897_v14 = vadd.f32 %v6126_v19, %v2896_v30  ;;  %v3025_v13 = vadd.f32 %v2905_v0, %v5851_v17 }
 0x420   : > { %v4566_v20 = vpop.f32.mrf.mxu1 }
 0x421   : > { %v3023_v49 = vadd.f32 %v2897_v14, %v5845_v10  ;;  %v2908_v58 = vadd.f32 %v4566_v20, %v6126_v19  ;;  %v3057_v35 = vadd.f32 %v3025_v13, %v6734_v21  ;;  %v6739_v21 = vld [vmem:[#allocation9_spill] sm:$0xff] }
 0x422   : > { %v2899_v62 = vpop.f32.mrf.mxu1 }
 0x423   : > { %v3055_v53 = vadd.f32 %v3023_v49, %v5225_v47  ;;  %v3026_v4 = vadd.f32 %v2908_v58, %v5848_v24  ;;  %v2900_v44 = vadd.f32 %v6126_v19, %v2899_v62  ;;  %v6147_v47 = vadd.f32 %v6736_v59, %v3057_v35  ;;  %v6738_v62 = vld [vmem:[#allocation7_spill] sm:$0xff] }
 0x425   : > { %v3058_v42 = vadd.f32 %v3026_v4, %v6735_v11  ;;  %v3024_v55 = vadd.f32 %v2900_v44, %v5854_v8  ;;  %v6140_v17 = vadd.f32 %v6736_v59, %v3055_v53  ;;  %v3125_v9 = vmax.f32 %v6147_v47, 0.0  ;;  %v6740_v11 = vld [vmem:[#allocation10_spill] sm:$0xff] }
 0x427   : > { %v6143_v10 = vadd.f32 %v6736_v59, %v3058_v42  ;;  %v3056_v28 = vadd.f32 %v3024_v55, %v6737_v48  ;;  %v3123_v41 = vmax.f32 %v6140_v17, 0.0  ;;  %v6741_v48 = vld [vmem:[#allocation8_spill] sm:$0xff] }
 0x429   : > { %v6150_v24 = vadd.f32 %v6736_v59, %v3056_v28  ;;  %v3126_v39 = vmax.f32 %v6143_v10, 0.0 }
 0x42b   : > { %v3124_v8 = vmax.f32 %v6150_v24, 0.0  ;;  %v3156_v37 = vpack.c.bf16 %v3126_v39, %v3125_v9 }
 0x42c   : > { %v4569_v56 = vpop.f32.mrf.mxu1 }
 0x42d   : > { %v2921_v61 = vadd.f32 %v4569_v56, %v6126_v19  ;;  %v3155_v27 = vpack.c.bf16 %v3124_v8, %v3123_v41 }
 0x42e   : > { %v2912_v0 = vpop.f32.mrf.mxu1 }
 0x42f   : > { %v2913_v30 = vadd.f32 %v6126_v19, %v2912_v0  ;;  %4603 = vmatprep.mubr.msk.bf16.mxu0 %vm1701_vm1, %v3155_v27  ;;  %v3029_v14 = vadd.f32 %v2921_v61, %v5877_v3 }
 0x430   : > { %v4570_v13 = vpop.f32.mrf.mxu1  ;;  %4604 = vmatmul.mubr.msk.bf16.vlgmr.msra.gmra.mxu0 %vm1701_vm1, %v3156_v37 }
 0x431   : > { %v3027_v20 = vadd.f32 %v2913_v30, %v5871_v51  ;;  %v2924_v49 = vadd.f32 %v4570_v13, %v6126_v19  ;;  %v3061_v35 = vadd.f32 %v3029_v14, %v6739_v21 }
 0x432   : > { %v2915_v58 = vpop.f32.mrf.mxu1 }
 0x433   : > { %v3059_v53 = vadd.f32 %v3027_v20, %v6738_v62  ;;  %v3030_v4 = vadd.f32 %v2924_v49, %v5874_v57  ;;  %v2916_v44 = vadd.f32 %v6126_v19, %v2915_v58  ;;  %v6177_v39 = vadd.f32 %v6736_v59, %v3061_v35  ;;  %v6742_v62 = vld [vmem:[#allocation11_spill] sm:$0xff] }
 0x435   : > { %v3062_v42 = vadd.f32 %v3030_v4, %v6740_v11  ;;  %v3028_v3 = vadd.f32 %v2916_v44, %v5880_v29  ;;  %v6170_v55 = vadd.f32 %v6736_v59, %v3059_v53  ;;  %v3129_v9 = vmax.f32 %v6177_v39, 0.0 }
 0x437   : > { %v6173_v51 = vadd.f32 %v6736_v59, %v3062_v42  ;;  %v3060_v28 = vadd.f32 %v3028_v3, %v6741_v48  ;;  %v3127_v8 = vmax.f32 %v6170_v55, 0.0  ;;  %v6743_v42 = vld [vmem:[#allocation12_spill] sm:$0xff] }
 0x439   : > { %v6180_v57 = vadd.f32 %v6736_v59, %v3060_v28  ;;  %v3130_v41 = vmax.f32 %v6173_v51, 0.0 }
 0x43b   : > { %v3128_v29 = vmax.f32 %v6180_v57, 0.0  ;;  %v3158_v0 = vpack.c.bf16 %v3130_v41, %v3129_v9 }
 0x43c   : > { %v4573_v56 = vpop.f32.mrf.mxu1 }
 0x43d   : > { %v2937_v61 = vadd.f32 %v4573_v56, %v6126_v19  ;;  %v3157_v27 = vpack.c.bf16 %v3128_v29, %v3127_v8 }
 0x43e   : > { %v2928_v37 = vpop.f32.mrf.mxu1 }
 0x43f   : > { %v2929_v30 = vadd.f32 %v6126_v19, %v2928_v37  ;;  %4607 = vmatprep.mubr.msk.bf16.mxu0 %vm1701_vm1, %v3157_v27  ;;  %v3033_v14 = vadd.f32 %v2937_v61, %v5903_v12 }
 0x440   : > { %v4574_v13 = vpop.f32.mrf.mxu1  ;;  %4608 = vmatmul.mubr.msk.bf16.gmra.mxu0 %vm1701_vm1, %v3158_v0 }
 0x441   : > { %v3031_v20 = vadd.f32 %v2929_v30, %v5897_v6  ;;  %v2940_v49 = vadd.f32 %v4574_v13, %v6126_v19  ;;  %v3065_v21 = vadd.f32 %v3033_v14, %v5419_v1 }
 0x442   : > { %v2931_v58 = vpop.f32.mrf.mxu1 }
 0x443   : > { %v3063_v53 = vadd.f32 %v3031_v20, %v6742_v62  ;;  %v3034_v4 = vadd.f32 %v2940_v49, %v5900_v46  ;;  %v2932_v44 = vadd.f32 %v6126_v19, %v2931_v58  ;;  %v6207_v48 = vadd.f32 %v6736_v59, %v3065_v21  ;;  %v6744_v58 = vld [vmem:[#allocation14_spill] sm:$0xff]  ;;  %v6746_v21 = vld [vmem:[#allocation13_spill] sm:$0xff] }
 0x445   : > { %v3066_v35 = vadd.f32 %v3034_v4, %v5433_v52  ;;  %v3032_v12 = vadd.f32 %v2932_v44, %v5906_v18  ;;  %v6200_v11 = vadd.f32 %v6736_v59, %v3063_v53  ;;  %v3133_v28 = vmax.f32 %v6207_v48, 0.0  ;;  %v6745_v53 = vld [vmem:[#allocation15_spill] sm:$0xff] }
 0x447   : > { %v6203_v6 = vadd.f32 %v6736_v59, %v3066_v35  ;;  %v3064_v3 = vadd.f32 %v3032_v12, %v6743_v42  ;;  %v3131_v52 = vmax.f32 %v6200_v11, 0.0 }
 0x449   : > { %v6210_v46 = vadd.f32 %v6736_v59, %v3064_v3  ;;  %v3134_v1 = vmax.f32 %v6203_v6, 0.0 }
 0x44b   : > { %v3132_v18 = vmax.f32 %v6210_v46, 0.0  ;;  %v3160_v56 = vpack.c.bf16 %v3134_v1, %v3133_v28 }
 0x44c   : > { %v4577_v41 = vpop.f32.mrf.mxu1 }
 0x44d   : > { %v2953_v8 = vadd.f32 %v4577_v41, %v6126_v19  ;;  %v3159_v29 = vpack.c.bf16 %v3132_v18, %v3131_v52  ;;  %v4774_v18 = vld [vmem:[%s6693_s8 + $0x58] sm:$0xff]  }
 0x44e   : > { %v2944_v9 = vpop.f32.mrf.mxu1  ;;  %4635 = vmatprep.subr.bf16.mxu1 %v4774_v18 }
 0x44f   : > { %v2945_v61 = vadd.f32 %v6126_v19, %v2944_v9  ;;  %4611 = vmatprep.mubr.msk.bf16.mxu0 %vm1701_vm1, %v3159_v29  ;;  %v3037_v27 = vadd.f32 %v2953_v8, %v5929_v16  ;;  %4636 = vmatpush3.bf16.msra.mxu1 %v4774_v18 }
 0x450   : > { %v4578_v37 = vpop.f32.mrf.mxu1  ;;  %4612 = vmatmul.mubr.msk.bf16.gmra.mxu0 %vm1701_vm1, %v3160_v56 }
 0x451   : > { %v3035_v0 = vadd.f32 %v2945_v61, %v5923_v60  ;;  %v2956_v30 = vadd.f32 %v4578_v37, %v6126_v19  ;;  %v3069_v62 = vadd.f32 %v3037_v27, %v6744_v58 }
 0x452   : > { %v2947_v14 = vpop.f32.mrf.mxu1 }
 0x453   : > { %v3067_v13 = vadd.f32 %v3035_v0, %v5449_v5  ;;  %v3038_v20 = vadd.f32 %v2956_v30, %v5926_v7  ;;  %v2948_v49 = vadd.f32 %v6126_v19, %v2947_v14  ;;  %v6237_v5 = vadd.f32 %v6736_v59, %v3069_v62  ;;  %v6747_v0 = vld [vmem:[#allocation16_spill] sm:$0xff]  ;;  %v6749_v62 = vld [vmem:[#allocation19_spill] sm:$0xff] }
 0x455   : > { %v3070_v4 = vadd.f32 %v3038_v20, %v6745_v53  ;;  %v3036_v16 = vadd.f32 %v2948_v49, %v5932_v63  ;;  %v6230_v44 = vadd.f32 %v6736_v59, %v3067_v13  ;;  %v3137_v3 = vmax.f32 %v6237_v5, 0.0  ;;  %v4775_v20 = vld [vmem:[%s6693_s8 + $0x50] sm:$0xff]   ;;  %v6748_v49 = vld [vmem:[#allocation18_spill] sm:$0xff] }
 0x456   : > { %4637 = vmatprep.subr.bf16.mxu1 %v4775_v20 }
 0x457   : > { %v6233_v60 = vadd.f32 %v6736_v59, %v3070_v4  ;;  %v3068_v35 = vadd.f32 %v3036_v16, %v6746_v21  ;;  %v3135_v42 = vmax.f32 %v6230_v44, 0.0  ;;  %4638 = vmatpush3.bf16.msra.mxu1 %v4775_v20  ;;  %v4776_v21 = vld [vmem:[%s6693_s8 + $0x48] sm:$0xff]   ;;  %v6752_v20 = vld [vmem:[#allocation22_spill] sm:$0xff] }
 0x458   : > { %4639 = vmatprep.subr.bf16.mxu1 %v4776_v21 }
 0x459   : > { %v6240_v7 = vadd.f32 %v6736_v59, %v3068_v35  ;;  %v3138_v12 = vmax.f32 %v6233_v60, 0.0 }
 0x45b   : > { %v3136_v63 = vmax.f32 %v6240_v7, 0.0  ;;  %v3162_v52 = vpack.c.bf16 %v3138_v12, %v3137_v3  ;;  %4640 = vmatpush3.bf16.msra.mxu1 %v4776_v21  ;;  %v4777_v3 = vld [vmem:[%s6693_s8 + $0x40] sm:$0xff]  }
 0x45c   : > { %4641 = vmatprep.subr.bf16.mxu1 %v4777_v3 }
 0x45d   : > { %v3161_v1 = vpack.c.bf16 %v3136_v63, %v3135_v42 }
 0x45f   : > { %4615 = vmatprep.mubr.msk.bf16.mxu0 %vm1701_vm1, %v3161_v1  ;;  %4642 = vmatpush3.bf16.msra.mxu1 %v4777_v3 }
 0x460   : > { %4616 = vmatmul.mubr.msk.bf16.gmra.mxu0 %vm1701_vm1, %v3162_v52 }
 0x46a   : > { %v4581_v28 = vpop.f32.mrf.mxu1 }
 0x46b   : > { %v2969_v41 = vadd.f32 %v4581_v28, %v6126_v19 }
 0x46c   : > { %v2960_v8 = vpop.f32.mrf.mxu1 }
 0x46d   : > { %v2961_v29 = vadd.f32 %v6126_v19, %v2960_v8  ;;  %v3041_v9 = vadd.f32 %v2969_v41, %v5964_v25 }
 0x46e   : > { %v4582_v56 = vpop.f32.mrf.mxu1 }
 0x46f   : > { %v3039_v61 = vadd.f32 %v2961_v29, %v5955_v43  ;;  %v2972_v27 = vadd.f32 %v4582_v56, %v6126_v19  ;;  %v3073_v58 = vadd.f32 %v3041_v9, %v6748_v49 }
 0x470   : > { %v2963_v37 = vpop.f32.mrf.mxu1 }
 0x471   : > { %v3071_v30 = vadd.f32 %v3039_v61, %v6747_v0  ;;  %v3042_v14 = vadd.f32 %v2972_v27, %v5958_v38  ;;  %v2964_v13 = vadd.f32 %v6126_v19, %v2963_v37  ;;  %v6750_v38 = vld [vmem:[#allocation17_spill] sm:$0xff]  ;;  %v6276_v35 = vadd.f32 %v6736_v59, %v3073_v58  ;;  %v6751_v0 = vld [vmem:[#allocation20_spill] sm:$0xff]  ;;  %v6753_v58 = vld [vmem:[#allocation23_spill] sm:$0xff] }
 0x473   : > { %v3074_v25 = vadd.f32 %v3042_v14, %v6749_v62  ;;  %v3040_v53 = vadd.f32 %v2964_v13, %v5967_v23  ;;  %v6266_v43 = vadd.f32 %v6736_v59, %v3071_v30  ;;  %v3141_v1 = vmax.f32 %v6276_v35, 0.0 }
 0x475   : > { %v6269_v4 = vadd.f32 %v6736_v59, %v3074_v25  ;;  %v3072_v16 = vadd.f32 %v3040_v53, %v6750_v38  ;;  %v3139_v42 = vmax.f32 %v6266_v43, 0.0  ;;  %v6754_v53 = vld [vmem:[#allocation21_spill] sm:$0xff] }
 0x477   : > { %v6279_v12 = vadd.f32 %v6736_v59, %v3072_v16  ;;  %v3142_v23 = vmax.f32 %v6269_v4, 0.0 }
 0x479   : > { %v3140_v63 = vmax.f32 %v6279_v12, 0.0  ;;  %v3164_v18 = vpack.c.bf16 %v3142_v23, %v3141_v1 }
 0x47b   : > { %v3163_v52 = vpack.c.bf16 %v3140_v63, %v3139_v42 }
 0x47d   : > { %4619 = vmatprep.mubr.msk.bf16.mxu0 %vm1701_vm1, %v3163_v52 }
 0x47e   : > { %4620 = vmatmul.mubr.msk.bf16.gmra.mxu0 %vm1701_vm1, %v3164_v18 }
 0x489   : > { %v4585_v28 = vpop.f32.mrf.mxu1 }
 0x48a   : > { %v2985_v41 = vadd.f32 %v4585_v28, %v6126_v19 }
 0x48b   : > { %v2976_v8 = vpop.f32.mrf.mxu1 }
 0x48c   : > { %v2977_v29 = vadd.f32 %v6126_v19, %v2976_v8  ;;  %v3045_v9 = vadd.f32 %v2985_v41, %v5993_v31 }
 0x48d   : > { %v4586_v56 = vpop.f32.mrf.mxu1 }
 0x48e   : > { %v3043_v61 = vadd.f32 %v2977_v29, %v5987_v45  ;;  %v2988_v27 = vadd.f32 %v4586_v56, %v6126_v19  ;;  %v3077_v49 = vadd.f32 %v3045_v9, %v6752_v20 }
 0x48f   : > { %v2979_v37 = vpop.f32.mrf.mxu1 }
 0x490   : > { %v3075_v30 = vadd.f32 %v3043_v61, %v6751_v0  ;;  %v3046_v14 = vadd.f32 %v2988_v27, %v5990_v2  ;;  %v2980_v13 = vadd.f32 %v6126_v19, %v2979_v37  ;;  %v6309_v16 = vadd.f32 %v6736_v59, %v3077_v49  ;;  %v6755_v61 = vld [vmem:[#allocation24_spill] sm:$0xff] }
 0x492   : > { %v3078_v62 = vadd.f32 %v3046_v14, %v6753_v58  ;;  %v3044_v25 = vadd.f32 %v2980_v13, %v5996_v32  ;;  %v6302_v31 = vadd.f32 %v6736_v59, %v3075_v30  ;;  %v3145_v42 = vmax.f32 %v6309_v16, 0.0  ;;  %v6756_v30 = vld [vmem:[#allocation26_spill] sm:$0xff]  ;;  %v6757_v13 = vld [vmem:[#allocation27_spill] sm:$0xff]  ;;  %v6758_v58 = vld [vmem:[#allocation25_spill] sm:$0xff] }
 0x494   : > { %v6305_v45 = vadd.f32 %v6736_v59, %v3078_v62  ;;  %v3076_v38 = vadd.f32 %v3044_v25, %v6754_v53  ;;  %v3143_v23 = vmax.f32 %v6302_v31, 0.0 }
 0x496   : > { %v6312_v2 = vadd.f32 %v6736_v59, %v3076_v38  ;;  %v3146_v21 = vmax.f32 %v6305_v45, 0.0 }
 0x498   : > { %v3144_v32 = vmax.f32 %v6312_v2, 0.0  ;;  %v3166_v3 = vpack.c.bf16 %v3146_v21, %v3145_v42 }
 0x49a   : > { %v3165_v63 = vpack.c.bf16 %v3144_v32, %v3143_v23 }
 0x49c   : > { %4623 = vmatprep.mubr.msk.bf16.mxu0 %vm1701_vm1, %v3165_v63 }
 0x49d   : > { %4624 = vmatmul.mubr.msk.bf16.gmra.mxu0 %vm1701_vm1, %v3166_v3 }
 0x4ac   : > { %v4589_v1 = vpop.f32.mrf.mxu1 }
 0x4ad   : > { %v3001_v52 = vadd.f32 %v4589_v1, %v6126_v19 }
 0x4ae   : > { %v2992_v18 = vpop.f32.mrf.mxu1 }
 0x4af   : > { %v2993_v28 = vadd.f32 %v6126_v19, %v2992_v18  ;;  %v3049_v41 = vadd.f32 %v3001_v52, %v6019_v54 }
 0x4b0   : > { %v4590_v8 = vpop.f32.mrf.mxu1 }
 0x4b1   : > { %v3047_v29 = vadd.f32 %v2993_v28, %v6013_v22  ;;  %v3004_v9 = vadd.f32 %v4590_v8, %v6126_v19  ;;  %v3081_v14 = vadd.f32 %v3049_v41, %v6756_v30 }
 0x4b2   : > { %v2995_v56 = vpop.f32.mrf.mxu1 }
 0x4b3   : > { %v3079_v27 = vadd.f32 %v3047_v29, %v6755_v61  ;;  %v3050_v37 = vadd.f32 %v3004_v9, %v6016_v15  ;;  %v2996_v0 = vadd.f32 %v6126_v19, %v2995_v56  ;;  %v6339_v25 = vadd.f32 %v6736_v59, %v3081_v14  ;;  %v6759_v29 = vld [vmem:[#allocation28_spill] sm:$0xff]  ;;  %v6761_v14 = vld [vmem:[#allocation29_spill] sm:$0xff] }
 0x4b5   : > { %v3082_v20 = vadd.f32 %v3050_v37, %v6757_v13  ;;  %v3048_v49 = vadd.f32 %v2996_v0, %v6022_v26  ;;  %v6332_v54 = vadd.f32 %v6736_v59, %v3079_v27  ;;  %v3149_v21 = vmax.f32 %v6339_v25, 0.0  ;;  %v6760_v27 = vld [vmem:[#allocation30_spill] sm:$0xff] }
 0x4b7   : > { %v6335_v22 = vadd.f32 %v6736_v59, %v3082_v20  ;;  %v3080_v62 = vadd.f32 %v3048_v49, %v6758_v58  ;;  %v3147_v38 = vmax.f32 %v6332_v54, 0.0 }
 0x4b9   : > { %v6342_v15 = vadd.f32 %v6736_v59, %v3080_v62  ;;  %v3150_v53 = vmax.f32 %v6335_v22, 0.0 }
 0x4bb   : > { %v3148_v26 = vmax.f32 %v6342_v15, 0.0  ;;  %v3168_v32 = vpack.c.bf16 %v3150_v53, %v3149_v21 }
 0x4bd   : > { %v3167_v23 = vpack.c.bf16 %v3148_v26, %v3147_v38 }
 0x4bf   : > { %4627 = vmatprep.mubr.msk.bf16.mxu0 %vm1701_vm1, %v3167_v23 }
 0x4c0   : > { %4628 = vmatmul.mubr.msk.bf16.gmra.mxu0 %vm1701_vm1, %v3168_v32 }
 0x4cb   : > { %v4593_v42 = vpop.f32.mrf.mxu1 }
 0x4cc   : > { %v3017_v63 = vadd.f32 %v4593_v42, %v6126_v19 }
 0x4cd   : > { %v3008_v3 = vpop.f32.mrf.mxu1 }
 0x4ce   : > { %v3009_v1 = vadd.f32 %v6126_v19, %v3008_v3  ;;  %v3053_v52 = vadd.f32 %v3017_v63, %v6045_v34 }
 0x4cf   : > { %v4594_v18 = vpop.f32.mrf.mxu1 }
 0x4d0   : > { %v3051_v28 = vadd.f32 %v3009_v1, %v6039_v36  ;;  %v3020_v41 = vadd.f32 %v4594_v18, %v6126_v19  ;;  %v3085_v37 = vadd.f32 %v3053_v52, %v6760_v27 }
 0x4d1   : > { %v3011_v8 = vpop.f32.mrf.mxu1 }
 0x4d2   : > { %v3083_v9 = vadd.f32 %v3051_v28, %v6759_v29  ;;  %v3054_v56 = vadd.f32 %v3020_v41, %v6042_v40  ;;  %v3012_v61 = vadd.f32 %v6126_v19, %v3011_v8  ;;  %v6369_v20 = vadd.f32 %v6736_v59, %v3085_v37 }
 0x4d4   : > { %v3086_v0 = vadd.f32 %v3054_v56, %v6056_v50  ;;  %v3052_v30 = vadd.f32 %v3012_v61, %v6048_v33  ;;  %v6362_v34 = vadd.f32 %v6736_v59, %v3083_v9  ;;  %v3153_v49 = vmax.f32 %v6369_v20, 0.0 }
 0x4d6   : > { %v6365_v36 = vadd.f32 %v6736_v59, %v3086_v0  ;;  %v3084_v13 = vadd.f32 %v3052_v30, %v6761_v14  ;;  %v3151_v50 = vmax.f32 %v6362_v34, 0.0 }
 0x4d8   : > { %v6372_v40 = vadd.f32 %v6736_v59, %v3084_v13  ;;  %v3154_v19 = vmax.f32 %v6365_v36, 0.0  ;;  %v6383_v59 = vld [vmem:[%s6692_s7 + $0x2] ss:$0 sm:$0xff] }
 0x4da   : > { %v3152_v33 = vmax.f32 %v6372_v40, 0.0  ;;  %v3170_v62 = vpack.c.bf16 %v3154_v19, %v3153_v49 }
 0x4dc   : > { %v3169_v58 = vpack.c.bf16 %v3152_v33, %v3151_v50 }
 0x4de   : > { %4631 = vmatprep.mubr.msk.bf16.mxu0 %vm1701_vm1, %v3169_v58 }
 0x4df   : > { %4632 = vmatmul.mubr.msk.bf16.gmra.mxu0 %vm1701_vm1, %v3170_v62 }
 0x4f0   : > { %v4605_v53 = vpop.f32.mrf.mxu0 }
 0x4f1   : > { %v3300_v32 = vadd.f32 %v4605_v53, %v6383_v59 }
 0x4f2   : > { %v3291_v38 = vpop.f32.mrf.mxu0 }
 0x4f3   : > { %v3292_v21 = vadd.f32 %v6383_v59, %v3291_v38  ;;  %v3420_v18 = vmax.f32 %v3300_v32, 0.0 }
 0x4f4   : > { %v4606_v26 = vpop.f32.mrf.mxu0 }
 0x4f5   : > { %v3303_v23 = vadd.f32 %v4606_v26, %v6383_v59  ;;  %v3418_v1 = vmax.f32 %v3292_v21, 0.0 }
 0x4f6   : > { %v3294_v42 = vpop.f32.mrf.mxu0 }
 0x4f7   : > { %v3295_v63 = vadd.f32 %v6383_v59, %v3294_v42  ;;  %v3421_v3 = vmax.f32 %v3303_v23, 0.0 }
 0x4f9   : > { %v3419_v52 = vmax.f32 %v3295_v63, 0.0  ;;  %v3451_v41 = vpack.c.bf16 %v3421_v3, %v3420_v18 }
 0x4fb   : > { %v3450_v28 = vpack.c.bf16 %v3419_v52, %v3418_v1 }
 0x4fd   : > { %4643 = vmatprep.mubr.msk.bf16.mxu1 %vm1701_vm1, %v3450_v28 }
 0x4fe   : > { %4644 = vmatmul.mubr.msk.bf16.vlgmr.msra.gmra.mxu1 %vm1701_vm1, %v3451_v41 }
 0x500   : > { %v4609_v8 = vpop.f32.mrf.mxu0 }
 0x501   : > { %v3316_v27 = vadd.f32 %v4609_v8, %v6383_v59 }
 0x502   : > { %v3307_v29 = vpop.f32.mrf.mxu0 }
 0x503   : > { %v3308_v56 = vadd.f32 %v6383_v59, %v3307_v29  ;;  %v3424_v19 = vmax.f32 %v3316_v27, 0.0 }
 0x504   : > { %v4610_v9 = vpop.f32.mrf.mxu0 }
 0x505   : > { %v3319_v61 = vadd.f32 %v4610_v9, %v6383_v59  ;;  %v3422_v14 = vmax.f32 %v3308_v56, 0.0 }
 0x506   : > { %v3310_v37 = vpop.f32.mrf.mxu0 }
 0x507   : > { %v3311_v0 = vadd.f32 %v6383_v59, %v3310_v37  ;;  %v3425_v30 = vmax.f32 %v3319_v61, 0.0 }
 0x509   : > { %v3423_v13 = vmax.f32 %v3311_v0, 0.0  ;;  %v3453_v33 = vpack.c.bf16 %v3425_v30, %v3424_v19 }
 0x50b   : > { %v3452_v50 = vpack.c.bf16 %v3423_v13, %v3422_v14 }
 0x50d   : > { %4647 = vmatprep.mubr.msk.bf16.mxu1 %vm1701_vm1, %v3452_v50 }
 0x50e   : > { %4648 = vmatmul.mubr.msk.bf16.gmra.mxu1 %vm1701_vm1, %v3453_v33 }
 0x510   : > { %v4613_v49 = vpop.f32.mrf.mxu0 }
 0x511   : > { %v3332_v26 = vadd.f32 %v4613_v49, %v6383_v59 }
 0x512   : > { %v3323_v58 = vpop.f32.mrf.mxu0 }
 0x513   : > { %v3324_v53 = vadd.f32 %v6383_v59, %v3323_v58  ;;  %v3428_v3 = vmax.f32 %v3332_v26, 0.0 }
 0x514   : > { %v4614_v62 = vpop.f32.mrf.mxu0 }
 0x515   : > { %v3335_v38 = vadd.f32 %v4614_v62, %v6383_v59  ;;  %v3426_v42 = vmax.f32 %v3324_v53, 0.0 }
 0x516   : > { %v3326_v21 = vpop.f32.mrf.mxu0 }
 0x517   : > { %v3327_v23 = vadd.f32 %v6383_v59, %v3326_v21  ;;  %v3429_v32 = vmax.f32 %v3335_v38, 0.0 }
 0x519   : > { %v3427_v63 = vmax.f32 %v3327_v23, 0.0  ;;  %v3455_v52 = vpack.c.bf16 %v3429_v32, %v3428_v3 }
 0x51b   : > { %v3454_v1 = vpack.c.bf16 %v3427_v63, %v3426_v42 }
 0x51d   : > { %4651 = vmatprep.mubr.msk.bf16.mxu1 %vm1701_vm1, %v3454_v1 }
 0x51e   : > { %4652 = vmatmul.mubr.msk.bf16.gmra.mxu1 %vm1701_vm1, %v3455_v52 }
 0x520   : > { %v4617_v18 = vpop.f32.mrf.mxu0 }
 0x521   : > { %v3348_v9 = vadd.f32 %v4617_v18, %v6383_v59 }
 0x522   : > { %v3339_v28 = vpop.f32.mrf.mxu0 }
 0x523   : > { %v3340_v8 = vadd.f32 %v6383_v59, %v3339_v28  ;;  %v3432_v30 = vmax.f32 %v3348_v9, 0.0 }
 0x524   : > { %v4618_v41 = vpop.f32.mrf.mxu0 }
 0x525   : > { %v3351_v29 = vadd.f32 %v4618_v41, %v6383_v59  ;;  %v3430_v37 = vmax.f32 %v3340_v8, 0.0 }
 0x526   : > { %v3342_v56 = vpop.f32.mrf.mxu0 }
 0x527   : > { %v3343_v61 = vadd.f32 %v6383_v59, %v3342_v56  ;;  %v3433_v27 = vmax.f32 %v3351_v29, 0.0 }
 0x529   : > { %v3431_v0 = vmax.f32 %v3343_v61, 0.0  ;;  %v3457_v13 = vpack.c.bf16 %v3433_v27, %v3432_v30 }
 0x52b   : > { %v3456_v14 = vpack.c.bf16 %v3431_v0, %v3430_v37 }
 0x52d   : > { %4655 = vmatprep.mubr.msk.bf16.mxu1 %vm1701_vm1, %v3456_v14 }
 0x52e   : > { %4656 = vmatmul.mubr.msk.bf16.gmra.mxu1 %vm1701_vm1, %v3457_v13 }
 0x53e   : > { %v4621_v19 = vpop.f32.mrf.mxu0 }
 0x53f   : > { %v3364_v62 = vadd.f32 %v4621_v19, %v6383_v59 }
 0x540   : > { %v3355_v50 = vpop.f32.mrf.mxu0 }
 0x541   : > { %v3356_v49 = vadd.f32 %v6383_v59, %v3355_v50  ;;  %v3436_v32 = vmax.f32 %v3364_v62, 0.0 }
 0x542   : > { %v4622_v33 = vpop.f32.mrf.mxu0 }
 0x543   : > { %v3367_v58 = vadd.f32 %v4622_v33, %v6383_v59  ;;  %v3434_v21 = vmax.f32 %v3356_v49, 0.0 }
 0x544   : > { %v3358_v53 = vpop.f32.mrf.mxu0 }
 0x545   : > { %v3359_v38 = vadd.f32 %v6383_v59, %v3358_v53  ;;  %v3437_v26 = vmax.f32 %v3367_v58, 0.0 }
 0x547   : > { %v3435_v23 = vmax.f32 %v3359_v38, 0.0  ;;  %v3459_v63 = vpack.c.bf16 %v3437_v26, %v3436_v32 }
 0x549   : > { %v3458_v42 = vpack.c.bf16 %v3435_v23, %v3434_v21 }
 0x54b   : > { %4659 = vmatprep.mubr.msk.bf16.mxu1 %vm1701_vm1, %v3458_v42 }
 0x54c   : > { %4660 = vmatmul.mubr.msk.bf16.gmra.mxu1 %vm1701_vm1, %v3459_v63 }
 0x55d   : > { %v4625_v3 = vpop.f32.mrf.mxu0 }
 0x55e   : > { %v3380_v41 = vadd.f32 %v4625_v3, %v6383_v59 }
 0x55f   : > { %v3371_v1 = vpop.f32.mrf.mxu0 }
 0x560   : > { %v3372_v18 = vadd.f32 %v6383_v59, %v3371_v1  ;;  %v3440_v27 = vmax.f32 %v3380_v41, 0.0 }
 0x561   : > { %v4626_v52 = vpop.f32.mrf.mxu0 }
 0x562   : > { %v3383_v28 = vadd.f32 %v4626_v52, %v6383_v59  ;;  %v3438_v56 = vmax.f32 %v3372_v18, 0.0 }
 0x563   : > { %v3374_v8 = vpop.f32.mrf.mxu0 }
 0x564   : > { %v3375_v29 = vadd.f32 %v6383_v59, %v3374_v8  ;;  %v3441_v9 = vmax.f32 %v3383_v28, 0.0 }
 0x566   : > { %v3439_v61 = vmax.f32 %v3375_v29, 0.0  ;;  %v3461_v0 = vpack.c.bf16 %v3441_v9, %v3440_v27  ;;  %v6436_v27 = vld [vmem:[%s6694_s9 + $0x2] ss:$0 sm:$0xff] }
 0x568   : > { %v3460_v37 = vpack.c.bf16 %v3439_v61, %v3438_v56 }
 0x56a   : > { %4663 = vmatprep.mubr.msk.bf16.mxu1 %vm1701_vm1, %v3460_v37 }
 0x56b   : > { %4664 = vmatmul.mubr.msk.bf16.gmra.mxu1 %vm1701_vm1, %v3461_v0 }
 0x580   : > { %v4629_v30 = vpop.f32.mrf.mxu0 }
 0x581   : > { %v3396_v33 = vadd.f32 %v4629_v30, %v6383_v59 }
 0x582   : > { %v3387_v14 = vpop.f32.mrf.mxu0 }
 0x583   : > { %v3388_v19 = vadd.f32 %v6383_v59, %v3387_v14  ;;  %v3444_v26 = vmax.f32 %v3396_v33, 0.0 }
 0x584   : > { %v4630_v13 = vpop.f32.mrf.mxu0 }
 0x585   : > { %v3399_v50 = vadd.f32 %v4630_v13, %v6383_v59  ;;  %v3442_v53 = vmax.f32 %v3388_v19, 0.0  ;;  %v6444_v19 = vld [vmem:[%s6695_s10] ss:$0 sm:$0xff] }
 0x586   : > { %v3390_v49 = vpop.f32.mrf.mxu0 }
 0x587   : > { %v3391_v58 = vadd.f32 %v6383_v59, %v3390_v49  ;;  %v3445_v62 = vmax.f32 %v3399_v50, 0.0 }
 0x589   : > { %v3443_v38 = vmax.f32 %v3391_v58, 0.0  ;;  %v3463_v23 = vpack.c.bf16 %v3445_v62, %v3444_v26 }
 0x58b   : > { %v3462_v21 = vpack.c.bf16 %v3443_v38, %v3442_v53 }
 0x58d   : > { %4667 = vmatprep.mubr.msk.bf16.mxu1 %vm1701_vm1, %v3462_v21 }
 0x58e   : > { %4668 = vmatmul.mubr.msk.bf16.gmra.mxu1 %vm1701_vm1, %v3463_v23 }
 0x59f   : > { %v4633_v32 = vpop.f32.mrf.mxu0 }
 0x5a0   : > { %v3412_v52 = vadd.f32 %v4633_v32, %v6383_v59 }
 0x5a1   : > { %v3403_v42 = vpop.f32.mrf.mxu0 }
 0x5a2   : > { %v3404_v3 = vadd.f32 %v6383_v59, %v3403_v42  ;;  %v3448_v9 = vmax.f32 %v3412_v52, 0.0 }
 0x5a3   : > { %v4634_v63 = vpop.f32.mrf.mxu0 }
 0x5a4   : > { %v3415_v1 = vadd.f32 %v4634_v63, %v6383_v59  ;;  %v3446_v8 = vmax.f32 %v3404_v3, 0.0 }
 0x5a5   : > { %v3406_v18 = vpop.f32.mrf.mxu0 }
 0x5a6   : > { %v3407_v28 = vadd.f32 %v6383_v59, %v3406_v18  ;;  %v3449_v41 = vmax.f32 %v3415_v1, 0.0 }
 0x5a8   : > { %v3447_v29 = vmax.f32 %v3407_v28, 0.0  ;;  %v3465_v61 = vpack.c.bf16 %v3449_v41, %v3448_v9 }
 0x5aa   : > { %v3464_v56 = vpack.c.bf16 %v3447_v29, %v3446_v8 }
 0x5ac   : > { %4671 = vmatprep.mubr.msk.bf16.mxu1 %vm1701_vm1, %v3464_v56 }
 0x5ad   : > { %4672 = vmatmul.mubr.msk.bf16.gmra.mxu1 %vm1701_vm1, %v3465_v61 }
 0x5be   : > { %v4645_v37 = vpop.f32.mrf.mxu1 }
 0x5bf   : > { %v3595_v0 = vadd.f32 %v4645_v37, %v6436_v27 }
 0x5c0   : > { %v3586_v30 = vpop.f32.mrf.mxu1 }
 0x5c1   : > { %v3715_v59 = vadd.f32 %v3595_v0, %v6147_v47  ;;  %v3587_v14 = vadd.f32 %v6436_v27, %v3586_v30 }
 0x5c2   : > { %v4646_v13 = vpop.f32.mrf.mxu1 }
 0x5c3   : > { %v3747_v50 = vmax.f32 %v3715_v59, 0.0  ;;  %v3713_v33 = vadd.f32 %v3587_v14, %v6140_v17  ;;  %v3598_v49 = vadd.f32 %v4646_v13, %v6436_v27 }
 0x5c4   : > { %v3589_v58 = vpop.f32.mrf.mxu1 }
 0x5c5   : > { %v3745_v62 = vmax.f32 %v3713_v33, 0.0  ;;  %v3716_v53 = vadd.f32 %v3598_v49, %v6143_v10  ;;  %v3590_v38 = vadd.f32 %v6436_v27, %v3589_v58  ;;  %v3786_v47 = vmul.f32 %v6444_v19, %v3747_v50 }
 0x5c7   : > { %v3748_v26 = vmax.f32 %v3716_v53, 0.0  ;;  %v3714_v21 = vadd.f32 %v3590_v38, %v6150_v24  ;;  %v3822_v23 = vsel %vm1701_vm1, %v3786_v47, 0.0  ;;  %v3784_v32 = vmul.f32 %v6444_v19, %v3745_v62 }
 0x5c8   : > { %3823 = vadd.xlane.f32.xlu0 %v3822_v23 }
 0x5c9   : > { %v3746_v42 = vmax.f32 %v3714_v21, 0.0  ;;  %v3816_v17 = vsel %vm1701_vm1, %v3784_v32, 0.0  ;;  %v3787_v63 = vmul.f32 %v6444_v19, %v3748_v26 }
 0x5ca   : > { %3817 = vadd.xlane.f32.xlu1 %v3816_v17 }
 0x5cb   : > { %v3785_v10 = vmul.f32 %v6444_v19, %v3746_v42  ;;  %v3825_v1 = vsel %vm1701_vm1, %v3787_v63, 0.0 }
 0x5cd   : > { %v3819_v3 = vsel %vm1701_vm1, %v3785_v10, 0.0 }
 0x5ce   : > { %v4649_v52 = vpop.f32.mrf.mxu1  ;;  %3820 = vadd.xlane.f32.xlu0 %v3819_v3  ;;  %3826 = vadd.xlane.f32.xlu1 %v3825_v1 }
 0x5cf   : > { %v3611_v24 = vadd.f32 %v4649_v52, %v6436_v27 }
 0x5d0   : > { %v3602_v18 = vpop.f32.mrf.mxu1 }
 0x5d1   : > { %v3719_v28 = vadd.f32 %v3611_v24, %v6177_v39  ;;  %v3603_v41 = vadd.f32 %v6436_v27, %v3602_v18 }
 0x5d2   : > { %v4650_v8 = vpop.f32.mrf.mxu1 }
 0x5d3   : > { %v3751_v29 = vmax.f32 %v3719_v28, 0.0  ;;  %v3717_v9 = vadd.f32 %v3603_v41, %v6170_v55  ;;  %v3614_v56 = vadd.f32 %v4650_v8, %v6436_v27 }
 0x5d4   : > { %v3605_v61 = vpop.f32.mrf.mxu1 }
 0x5d5   : > { %v3749_v37 = vmax.f32 %v3717_v9, 0.0  ;;  %v3720_v0 = vadd.f32 %v3614_v56, %v6173_v51  ;;  %v3606_v30 = vadd.f32 %v6436_v27, %v3605_v61  ;;  %v3790_v59 = vmul.f32 %v6444_v19, %v3751_v29 }
 0x5d7   : > { %v3752_v14 = vmax.f32 %v3720_v0, 0.0  ;;  %v3718_v13 = vadd.f32 %v3606_v30, %v6180_v57  ;;  %v3834_v39 = vsel %vm1701_vm1, %v3790_v59, 0.0  ;;  %v3788_v50 = vmul.f32 %v6444_v19, %v3749_v37 }
 0x5d8   : > { %3835 = vadd.xlane.f32.xlu0 %v3834_v39 }
 0x5d9   : > { %v3750_v33 = vmax.f32 %v3718_v13, 0.0  ;;  %v3791_v55 = vmul.f32 %v6444_v19, %v3752_v14  ;;  %v3828_v49 = vsel %vm1701_vm1, %v3788_v50, 0.0 }
 0x5db   : > { %v3837_v58 = vsel %vm1701_vm1, %v3791_v55, 0.0  ;;  %v3789_v51 = vmul.f32 %v6444_v19, %v3750_v33 }
 0x5dc   : > { %3829 = vadd.xlane.f32.xlu0 %v3828_v49  ;;  %3838 = vadd.xlane.f32.xlu1 %v3837_v58 }
 0x5dd   : > { %v3831_v57 = vsel %vm1701_vm1, %v3789_v51, 0.0 }
 0x5de   : > { %v4653_v62 = vpop.f32.mrf.mxu1 }
 0x5df   : > { %v3627_v53 = vadd.f32 %v4653_v62, %v6436_v27 }
 0x5e0   : > { %v3618_v38 = vpop.f32.mrf.mxu1  ;;  %3832 = vadd.xlane.f32.xlu1 %v3831_v57 }
 0x5e1   : > { %v3723_v47 = vadd.f32 %v3627_v53, %v6207_v48  ;;  %v3619_v26 = vadd.f32 %v6436_v27, %v3618_v38 }
 0x5e2   : > { %v4654_v21 = vpop.f32.mrf.mxu1 }
 0x5e3   : > { %v3755_v23 = vmax.f32 %v3723_v47, 0.0  ;;  %v3721_v32 = vadd.f32 %v3619_v26, %v6200_v11  ;;  %v3630_v42 = vadd.f32 %v4654_v21, %v6436_v27 }
 0x5e4   : > { %v3621_v17 = vpop.f32.mrf.mxu1 }
 0x5e5   : > { %v3753_v63 = vmax.f32 %v3721_v32, 0.0  ;;  %v3724_v10 = vadd.f32 %v3630_v42, %v6203_v6  ;;  %v3622_v3 = vadd.f32 %v6436_v27, %v3621_v17  ;;  %v3794_v1 = vmul.f32 %v6444_v19, %v3755_v23 }
 0x5e7   : > { %v3756_v52 = vmax.f32 %v3724_v10, 0.0  ;;  %v3722_v24 = vadd.f32 %v3622_v3, %v6210_v46  ;;  %v3846_v48 = vsel %vm1701_vm1, %v3794_v1, 0.0  ;;  %v3792_v18 = vmul.f32 %v6444_v19, %v3753_v63 }
 0x5e8   : > { %3847 = vadd.xlane.f32.xlu0 %v3846_v48 }
 0x5e9   : > { %v3754_v28 = vmax.f32 %v3722_v24, 0.0  ;;  %v3795_v11 = vmul.f32 %v6444_v19, %v3756_v52  ;;  %v3840_v41 = vsel %vm1701_vm1, %v3792_v18, 0.0 }
 0x5eb   : > { %v3849_v8 = vsel %vm1701_vm1, %v3795_v11, 0.0  ;;  %v3793_v6 = vmul.f32 %v6444_v19, %v3754_v28 }
 0x5ec   : > { %3841 = vadd.xlane.f32.xlu0 %v3840_v41  ;;  %3850 = vadd.xlane.f32.xlu1 %v3849_v8 }
 0x5ed   : > { %v3843_v46 = vsel %vm1701_vm1, %v3793_v6, 0.0 }
 0x5ee   : > { %v4657_v29 = vpop.f32.mrf.mxu1 }
 0x5ef   : > { %v3643_v9 = vadd.f32 %v4657_v29, %v6436_v27 }
 0x5f0   : > { %v3634_v56 = vpop.f32.mrf.mxu1  ;;  %3844 = vadd.xlane.f32.xlu1 %v3843_v46 }
 0x5f1   : > { %v3727_v61 = vadd.f32 %v3643_v9, %v6237_v5  ;;  %v3635_v37 = vadd.f32 %v6436_v27, %v3634_v56 }
 0x5f2   : > { %v4658_v0 = vpop.f32.mrf.mxu1 }
 0x5f3   : > { %v3759_v30 = vmax.f32 %v3727_v61, 0.0  ;;  %v3725_v59 = vadd.f32 %v3635_v37, %v6230_v44  ;;  %v3646_v14 = vadd.f32 %v4658_v0, %v6436_v27 }
 0x5f4   : > { %v3637_v13 = vpop.f32.mrf.mxu1 }
 0x5f5   : > { %v3757_v39 = vmax.f32 %v3725_v59, 0.0  ;;  %v3728_v50 = vadd.f32 %v3646_v14, %v6233_v60  ;;  %v3638_v33 = vadd.f32 %v6436_v27, %v3637_v13  ;;  %v3798_v55 = vmul.f32 %v6444_v19, %v3759_v30 }
 0x5f7   : > { %v3760_v49 = vmax.f32 %v3728_v50, 0.0  ;;  %v3726_v58 = vadd.f32 %v3638_v33, %v6240_v7  ;;  %v3858_v5 = vsel %vm1701_vm1, %v3798_v55, 0.0  ;;  %v3796_v51 = vmul.f32 %v6444_v19, %v3757_v39 }
 0x5f8   : > { %3859 = vadd.xlane.f32.xlu0 %v3858_v5 }
 0x5f9   : > { %v3758_v62 = vmax.f32 %v3726_v58, 0.0  ;;  %v3799_v44 = vmul.f32 %v6444_v19, %v3760_v49  ;;  %v3852_v53 = vsel %vm1701_vm1, %v3796_v51, 0.0 }
 0x5fb   : > { %v3861_v57 = vsel %vm1701_vm1, %v3799_v44, 0.0  ;;  %v3797_v60 = vmul.f32 %v6444_v19, %v3758_v62 }
 0x5fc   : > { %3853 = vadd.xlane.f32.xlu0 %v3852_v53  ;;  %3862 = vadd.xlane.f32.xlu1 %v3861_v57  ;;  %v6540_v53 = vld [vmem:[#allocation2] ss:$0 sm:$0xff] }
 0x5fd   : > { %v3855_v38 = vsel %vm1701_vm1, %v3797_v60, 0.0 }
 0x600   : > { %3856 = vadd.xlane.f32.xlu1 %v3855_v38 }
 0x60c   : > { %v4661_v7 = vpop.f32.mrf.mxu1 }
 0x60d   : > { %v3659_v47 = vadd.f32 %v4661_v7, %v6436_v27 }
 0x60e   : > { %v3650_v26 = vpop.f32.mrf.mxu1 }
 0x60f   : > { %v3731_v21 = vadd.f32 %v3659_v47, %v6276_v35  ;;  %v3651_v23 = vadd.f32 %v6436_v27, %v3650_v26 }
 0x610   : > { %v4662_v32 = vpop.f32.mrf.mxu1 }
 0x611   : > { %v3763_v42 = vmax.f32 %v3731_v21, 0.0  ;;  %v3729_v17 = vadd.f32 %v3651_v23, %v6266_v43  ;;  %v3662_v63 = vadd.f32 %v4662_v32, %v6436_v27 }
 0x612   : > { %v3653_v10 = vpop.f32.mrf.mxu1 }
 0x613   : > { %v3761_v3 = vmax.f32 %v3729_v17, 0.0  ;;  %v3732_v1 = vadd.f32 %v3662_v63, %v6269_v4  ;;  %v3654_v52 = vadd.f32 %v6436_v27, %v3653_v10  ;;  %v3802_v24 = vmul.f32 %v6444_v19, %v3763_v42 }
 0x615   : > { %v3764_v48 = vmax.f32 %v3732_v1, 0.0  ;;  %v3730_v18 = vadd.f32 %v3654_v52, %v6279_v12  ;;  %v3870_v35 = vsel %vm1701_vm1, %v3802_v24, 0.0  ;;  %v3800_v28 = vmul.f32 %v6444_v19, %v3761_v3 }
 0x616   : > { %3871 = vadd.xlane.f32.xlu0 %v3870_v35 }
 0x617   : > { %v3762_v11 = vmax.f32 %v3730_v18, 0.0  ;;  %v3803_v43 = vmul.f32 %v6444_v19, %v3764_v48  ;;  %v3864_v41 = vsel %vm1701_vm1, %v3800_v28, 0.0 }
 0x619   : > { %v3873_v8 = vsel %vm1701_vm1, %v3803_v43, 0.0  ;;  %v3801_v4 = vmul.f32 %v6444_v19, %v3762_v11 }
 0x61a   : > { %3865 = vadd.xlane.f32.xlu0 %v3864_v41  ;;  %3874 = vadd.xlane.f32.xlu1 %v3873_v8 }
 0x61b   : > { %v3867_v6 = vsel %vm1701_vm1, %v3801_v4, 0.0 }
 0x61e   : > { %3868 = vadd.xlane.f32.xlu1 %v3867_v6 }
 0x62b   : > { %v4665_v12 = vpop.f32.mrf.mxu1 }
 0x62c   : > { %v3675_v29 = vadd.f32 %v4665_v12, %v6436_v27 }
 0x62d   : > { %v3666_v9 = vpop.f32.mrf.mxu1 }
 0x62e   : > { %v3735_v46 = vadd.f32 %v3675_v29, %v6309_v16  ;;  %v3667_v56 = vadd.f32 %v6436_v27, %v3666_v9 }
 0x62f   : > { %v4666_v61 = vpop.f32.mrf.mxu1 }
 0x630   : > { %v3767_v37 = vmax.f32 %v3735_v46, 0.0  ;;  %v3733_v0 = vadd.f32 %v3667_v56, %v6302_v31  ;;  %v3678_v30 = vadd.f32 %v4666_v61, %v6436_v27 }
 0x631   : > { %v3669_v59 = vpop.f32.mrf.mxu1 }
 0x632   : > { %v3765_v14 = vmax.f32 %v3733_v0, 0.0  ;;  %v3736_v13 = vadd.f32 %v3678_v30, %v6305_v45  ;;  %v3670_v39 = vadd.f32 %v6436_v27, %v3669_v59  ;;  %v3806_v50 = vmul.f32 %v6444_v19, %v3767_v37 }
 0x634   : > { %v3768_v33 = vmax.f32 %v3736_v13, 0.0  ;;  %v3734_v55 = vadd.f32 %v3670_v39, %v6312_v2  ;;  %v3882_v16 = vsel %vm1701_vm1, %v3806_v50, 0.0  ;;  %v3804_v49 = vmul.f32 %v6444_v19, %v3765_v14 }
 0x635   : > { %3883 = vadd.xlane.f32.xlu0 %v3882_v16 }
 0x636   : > { %v3766_v31 = vmax.f32 %v3734_v55, 0.0  ;;  %v3807_v58 = vmul.f32 %v6444_v19, %v3768_v33  ;;  %v3876_v5 = vsel %vm1701_vm1, %v3804_v49, 0.0 }
 0x638   : > { %v3885_v45 = vsel %vm1701_vm1, %v3807_v58, 0.0  ;;  %v3805_v51 = vmul.f32 %v6444_v19, %v3766_v31 }
 0x639   : > { %3877 = vadd.xlane.f32.xlu0 %v3876_v5  ;;  %3886 = vadd.xlane.f32.xlu1 %v3885_v45 }
 0x63a   : > { %v3879_v62 = vsel %vm1701_vm1, %v3805_v51, 0.0 }
 0x63d   : > { %3880 = vadd.xlane.f32.xlu1 %v3879_v62 }
 0x64e   : > { %v4669_v2 = vpop.f32.mrf.mxu1 }
 0x64f   : > { %v3691_v44 = vadd.f32 %v4669_v2, %v6436_v27 }
 0x650   : > { %v3682_v57 = vpop.f32.mrf.mxu1 }
 0x651   : > { %v3739_v60 = vadd.f32 %v3691_v44, %v6339_v25  ;;  %v3683_v38 = vadd.f32 %v6436_v27, %v3682_v57  ;;  %v3824_v7 = vpop.xlane.xlu0 %3823 }
 0x652   : > { %v3921_v47 = vadd.f32 %v6540_v53, %v3824_v7  ;;  %v4670_v26 = vpop.f32.mrf.mxu1 }
 0x653   : > { %v3771_v21 = vmax.f32 %v3739_v60, 0.0  ;;  %v3737_v23 = vadd.f32 %v3683_v38, %v6332_v54  ;;  %v3694_v32 = vadd.f32 %v4670_v26, %v6436_v27  ;;  %v3818_v42 = vpop.xlane.xlu1 %3817 }
 0x654   : > { %3954 = vst.msk [vmem:[%s6547_s20 + $0x10] sm:$0xff] %vm3951_vm2, %v3921_v47  ;;  %v3685_v17 = vpop.f32.mrf.mxu1  ;;  %v3919_v63 = vadd.f32 %v6540_v53, %v3818_v42 }
 0x655   : > { %v3769_v25 = vmax.f32 %v3737_v23, 0.0  ;;  %v3740_v10 = vadd.f32 %v3694_v32, %v6335_v22  ;;  %v3686_v3 = vadd.f32 %v6436_v27, %v3685_v17  ;;  %v3810_v1 = vmul.f32 %v6444_v19, %v3771_v21 }
 0x656   : > { %3952 = vst.msk [vmem:[%s6547_s20] sm:$0xff] %vm3951_vm2, %v3919_v63 }
 0x657   : > { %v3772_v54 = vmax.f32 %v3740_v10, 0.0  ;;  %v3738_v52 = vadd.f32 %v3686_v3, %v6342_v15  ;;  %v3894_v24 = vsel %vm1701_vm1, %v3810_v1, 0.0  ;;  %v3821_v48 = vpop.xlane.xlu0 %3820  ;;  %v3827_v18 = vpop.xlane.xlu1 %3826  ;;  %v3808_v35 = vmul.f32 %v6444_v19, %v3769_v25 }
 0x658   : > { %3895 = vadd.xlane.f32.xlu0 %v3894_v24  ;;  %v3920_v22 = vadd.f32 %v6540_v53, %v3821_v48  ;;  %v3922_v28 = vadd.f32 %v6540_v53, %v3827_v18 }
 0x659   : > { %v3770_v11 = vmax.f32 %v3738_v52, 0.0  ;;  %v3811_v43 = vmul.f32 %v6444_v19, %v3772_v54  ;;  %v3888_v15 = vsel %vm1701_vm1, %v3808_v35, 0.0 }
 0x65a   : > { %3953 = vst.msk [vmem:[%s6547_s20 + $0x8] sm:$0xff] %vm3951_vm2, %v3920_v22  ;;  %3955 = vst.msk [vmem:[%s6547_s20 + $0x18] sm:$0xff] %vm3951_vm2, %v3922_v28 }
 0x65b   : > { %v3897_v41 = vsel %vm1701_vm1, %v3811_v43, 0.0  ;;  %v3809_v8 = vmul.f32 %v6444_v19, %v3770_v11 }
 0x65c   : > { %3889 = vadd.xlane.f32.xlu0 %v3888_v15  ;;  %3898 = vadd.xlane.f32.xlu1 %v3897_v41 }
 0x65d   : > { %v3891_v4 = vsel %vm1701_vm1, %v3809_v8, 0.0 }
 0x660   : > { %3892 = vadd.xlane.f32.xlu1 %v3891_v4 }
 0x661   : > { %v3836_v6 = vpop.xlane.xlu0 %3835 }
 0x662   : > { %v3925_v12 = vadd.f32 %v6540_v53, %v3836_v6 }
 0x664   : > { %3958 = vst.msk [vmem:[%s6547_s20 + $0x30] sm:$0xff] %vm3951_vm2, %v3925_v12 }
 0x665   : > { %v3830_v29 = vpop.xlane.xlu0 %3829  ;;  %v3839_v9 = vpop.xlane.xlu1 %3838 }
 0x666   : > { %v3923_v46 = vadd.f32 %v6540_v53, %v3830_v29  ;;  %v3926_v56 = vadd.f32 %v6540_v53, %v3839_v9 }
 0x668   : > { %3956 = vst.msk [vmem:[%s6547_s20 + $0x20] sm:$0xff] %vm3951_vm2, %v3923_v46  ;;  %3959 = vst.msk [vmem:[%s6547_s20 + $0x38] sm:$0xff] %vm3951_vm2, %v3926_v56 }
 0x669   : > { %v3833_v61 = vpop.xlane.xlu1 %3832 }
 0x66a   : > { %v3924_v37 = vadd.f32 %v6540_v53, %v3833_v61 }
 0x66c   : > { %3957 = vst.msk [vmem:[%s6547_s20 + $0x28] sm:$0xff] %vm3951_vm2, %v3924_v37 }
 0x66d   : > { %v4673_v0 = vpop.f32.mrf.mxu1 }
 0x66e   : > { %v3707_v30 = vadd.f32 %v4673_v0, %v6436_v27 }
 0x66f   : > { %v3698_v59 = vpop.f32.mrf.mxu1 }
 0x670   : > { %v3699_v14 = vadd.f32 %v6436_v27, %v3698_v59  ;;  %v3743_v13 = vadd.f32 %v3707_v30, %v6369_v20 }
 0x671   : > { %v4674_v39 = vpop.f32.mrf.mxu1  ;;  %v3848_v50 = vpop.xlane.xlu0 %3847 }
 0x672   : > { %v3741_v33 = vadd.f32 %v3699_v14, %v6362_v34  ;;  %v3710_v55 = vadd.f32 %v4674_v39, %v6436_v27  ;;  %v3929_v16 = vadd.f32 %v6540_v53, %v3848_v50  ;;  %v3775_v45 = vmax.f32 %v3743_v13, 0.0 }
 0x673   : > { %v3701_v49 = vpop.f32.mrf.mxu1 }
 0x674   : > { %v3773_v31 = vmax.f32 %v3741_v33, 0.0  ;;  %v3744_v58 = vadd.f32 %v3710_v55, %v6365_v36  ;;  %3962 = vst.msk [vmem:[%s6547_s20 + $0x50] sm:$0xff] %vm3951_vm2, %v3929_v16  ;;  %v3702_v5 = vadd.f32 %v6436_v27, %v3701_v49  ;;  %v3814_v38 = vmul.f32 %v6444_v19, %v3775_v45 }
 0x675   : > { %v3842_v20 = vpop.xlane.xlu0 %3841  ;;  %v3851_v51 = vpop.xlane.xlu1 %3850 }
 0x676   : > { %v3742_v34 = vadd.f32 %v3702_v5, %v6372_v40  ;;  %v3927_v62 = vadd.f32 %v6540_v53, %v3842_v20  ;;  %v3930_v2 = vadd.f32 %v6540_v53, %v3851_v51  ;;  %v3812_v44 = vmul.f32 %v6444_v19, %v3773_v31 }
 0x677   : > { %v3776_v57 = vmax.f32 %v3744_v58, 0.0  ;;  %v3906_v21 = vsel %vm1701_vm1, %v3814_v38, 0.0 }
 0x678   : > { %v3774_v60 = vmax.f32 %v3742_v34, 0.0  ;;  %3960 = vst.msk [vmem:[%s6547_s20 + $0x40] sm:$0xff] %vm3951_vm2, %v3927_v62  ;;  %3963 = vst.msk [vmem:[%s6547_s20 + $0x58] sm:$0xff] %vm3951_vm2, %v3930_v2  ;;  %v3900_v36 = vsel %vm1701_vm1, %v3812_v44, 0.0 }
 0x679   : > { %v3845_v27 = vpop.xlane.xlu1 %3844  ;;  %3901 = vadd.xlane.f32.xlu0 %v3900_v36  ;;  %v3815_v26 = vmul.f32 %v6444_v19, %v3776_v57 }
 0x67a   : > { %v3928_v40 = vadd.f32 %v6540_v53, %v3845_v27  ;;  %v3813_v7 = vmul.f32 %v6444_v19, %v3774_v60 }
 0x67b   : > { %v3909_v23 = vsel %vm1701_vm1, %v3815_v26, 0.0 }
 0x67c   : > { %3961 = vst.msk [vmem:[%s6547_s20 + $0x48] sm:$0xff] %vm3951_vm2, %v3928_v40  ;;  %v3903_v47 = vsel %vm1701_vm1, %v3813_v7, 0.0 }
 0x67d   : > { %3904 = vadd.xlane.f32.xlu1 %v3903_v47  ;;  %3907 = vadd.xlane.f32.xlu0 %v3906_v21 }
 0x681   : > { %3910 = vadd.xlane.f32.xlu1 %v3909_v23  ;;  %v3860_v32 = vpop.xlane.xlu0 %3859 }
 0x682   : > { %v3933_v42 = vadd.f32 %v6540_v53, %v3860_v32 }
 0x684   : > { %3966 = vst.msk [vmem:[%s6547_s20 + $0x70] sm:$0xff] %vm3951_vm2, %v3933_v42 }
 0x685   : > { %v3854_v17 = vpop.xlane.xlu0 %3853  ;;  %v3863_v63 = vpop.xlane.xlu1 %3862 }
 0x686   : > { %v3931_v19 = vadd.f32 %v6540_v53, %v3854_v17  ;;  %v3934_v25 = vadd.f32 %v6540_v53, %v3863_v63 }
 0x688   : > { %3964 = vst.msk [vmem:[%s6547_s20 + $0x60] sm:$0xff] %vm3951_vm2, %v3931_v19  ;;  %3967 = vst.msk [vmem:[%s6547_s20 + $0x78] sm:$0xff] %vm3951_vm2, %v3934_v25 }
 0x689   : > { %v3857_v10 = vpop.xlane.xlu1 %3856 }
 0x68a   : > { %v3932_v3 = vadd.f32 %v6540_v53, %v3857_v10 }
 0x68c   : > { %3965 = vst.msk [vmem:[%s6547_s20 + $0x68] sm:$0xff] %vm3951_vm2, %v3932_v3 }
 0x69f   : > { %v3872_v1 = vpop.xlane.xlu0 %3871 }
 0x6a0   : > { %v3937_v54 = vadd.f32 %v6540_v53, %v3872_v1 }
 0x6a2   : > { %3970 = vst.msk [vmem:[%s6547_s20 + $0x90] sm:$0xff] %vm3951_vm2, %v3937_v54 }
 0x6a3   : > { %v3866_v52 = vpop.xlane.xlu0 %3865  ;;  %v3875_v24 = vpop.xlane.xlu1 %3874 }
 0x6a4   : > { %v3935_v48 = vadd.f32 %v6540_v53, %v3866_v52  ;;  %v3938_v18 = vadd.f32 %v6540_v53, %v3875_v24 }
 0x6a6   : > { %3968 = vst.msk [vmem:[%s6547_s20 + $0x80] sm:$0xff] %vm3951_vm2, %v3935_v48  ;;  %3971 = vst.msk [vmem:[%s6547_s20 + $0x98] sm:$0xff] %vm3951_vm2, %v3938_v18 }
 0x6a7   : > { %v3869_v35 = vpop.xlane.xlu1 %3868 }
 0x6a8   : > { %v3936_v22 = vadd.f32 %v6540_v53, %v3869_v35 }
 0x6aa   : > { %3969 = vst.msk [vmem:[%s6547_s20 + $0x88] sm:$0xff] %vm3951_vm2, %v3936_v22 }
 0x6be   : > { %v3884_v28 = vpop.xlane.xlu0 %3883 }
 0x6bf   : > { %v3941_v11 = vadd.f32 %v6540_v53, %v3884_v28 }
 0x6c1   : > { %3974 = vst.msk [vmem:[%s6547_s20 + $0xb0] sm:$0xff] %vm3951_vm2, %v3941_v11 }
 0x6c2   : > { %v3878_v43 = vpop.xlane.xlu0 %3877  ;;  %v3887_v15 = vpop.xlane.xlu1 %3886 }
 0x6c3   : > { %v3939_v41 = vadd.f32 %v6540_v53, %v3878_v43  ;;  %v3942_v8 = vadd.f32 %v6540_v53, %v3887_v15 }
 0x6c5   : > { %3972 = vst.msk [vmem:[%s6547_s20 + $0xa0] sm:$0xff] %vm3951_vm2, %v3939_v41  ;;  %3975 = vst.msk [vmem:[%s6547_s20 + $0xb8] sm:$0xff] %vm3951_vm2, %v3942_v8 }
 0x6c6   : > { %v3881_v4 = vpop.xlane.xlu1 %3880 }
 0x6c7   : > { %v3940_v6 = vadd.f32 %v6540_v53, %v3881_v4 }
 0x6c9   : > { %3973 = vst.msk [vmem:[%s6547_s20 + $0xa8] sm:$0xff] %vm3951_vm2, %v3940_v6 }
 0x6e1   : > { %v3896_v12 = vpop.xlane.xlu0 %3895 }
 0x6e2   : > { %v3945_v29 = vadd.f32 %v6540_v53, %v3896_v12 }
 0x6e4   : > { %3978 = vst.msk [vmem:[%s6547_s20 + $0xd0] sm:$0xff] %vm3951_vm2, %v3945_v29 }
 0x6e5   : > { %v3890_v9 = vpop.xlane.xlu0 %3889  ;;  %v3899_v46 = vpop.xlane.xlu1 %3898 }
 0x6e6   : > { %v3943_v56 = vadd.f32 %v6540_v53, %v3890_v9  ;;  %v3946_v61 = vadd.f32 %v6540_v53, %v3899_v46 }
 0x6e8   : > { %3976 = vst.msk [vmem:[%s6547_s20 + $0xc0] sm:$0xff] %vm3951_vm2, %v3943_v56  ;;  %3979 = vst.msk [vmem:[%s6547_s20 + $0xd8] sm:$0xff] %vm3951_vm2, %v3946_v61 }
 0x6e9   : > { %v3893_v37 = vpop.xlane.xlu1 %3892 }
 0x6ea   : > { %v3944_v0 = vadd.f32 %v6540_v53, %v3893_v37 }
 0x6ec   : > { %3977 = vst.msk [vmem:[%s6547_s20 + $0xc8] sm:$0xff] %vm3951_vm2, %v3944_v0 }
 0x702   : > { %v3902_v30 = vpop.xlane.xlu0 %3901 }
 0x703   : > { %v3947_v59 = vadd.f32 %v6540_v53, %v3902_v30 }
 0x705   : > { %3980 = vst.msk [vmem:[%s6547_s20 + $0xe0] sm:$0xff] %vm3951_vm2, %v3947_v59 }
 0x706   : > { %v3905_v14 = vpop.xlane.xlu1 %3904  ;;  %v3908_v39 = vpop.xlane.xlu0 %3907 }
 0x707   : > { %v3948_v13 = vadd.f32 %v6540_v53, %v3905_v14  ;;  %v3949_v50 = vadd.f32 %v6540_v53, %v3908_v39 }
 0x709   : > { %3981 = vst.msk [vmem:[%s6547_s20 + $0xe8] sm:$0xff] %vm3951_vm2, %v3948_v13  ;;  %3982 = vst.msk [vmem:[%s6547_s20 + $0xf0] sm:$0xff] %vm3951_vm2, %v3949_v50 }
 0x70a   : > { %v3911_v33 = vpop.xlane.xlu1 %3910 }
 0x70b   : > { %v3950_v55 = vadd.f32 %v6540_v53, %v3911_v33 }
 0x70d   : > { %3983 = vst.msk [vmem:[%s6547_s20 + $0xf8] sm:$0xff] %vm3951_vm2, %v3950_v55 }
 0x70e PF: > { %s24_s25 = sadd.s32 1, %s4800_s25   ;;  %s6762_s23 = smov %s4796_s24 }
 0x70f   : > { %p21_p5 = scmp.ge.s32.totalorder %s24_s25, 4   ;;  %s6763_s24 = smov %s6765_s11 }
 0x711   :  { %23 = sbr.rel (!%p21_p5) target bundleno = 3 (0x3), region = 108 }

</bundles_post_ra>
